<compile_context>
chip_gen: v7x
topology: tpu7x:2x2x1
jax: 0.10.0
libtpu: 0.0.40
codegen_flags: <defaults>
</compile_context>

<pallas_src>
import math

import jax
import jax.numpy as jnp
from jax import lax
from jax.experimental import pallas as pl
from jax.experimental.pallas import tpu as pltpu

_VMEM = pl.BlockSpec(memory_space=pltpu.MemorySpace.VMEM)
_BN_EPS = 1e-5


# --------------------------------------------------------------------------------------
# Host-side selector construction (one-time, shared by all layers)
# --------------------------------------------------------------------------------------
def _shift_matrix(n, s):
    """(v @ T)[:, c] == v[:, c + s]  (no wraparound; out-of-range columns -> 0)."""
    r = jnp.arange(n)[:, None]
    c = jnp.arange(n)[None, :]
    return (r == c + s).astype(jnp.float32)


def _pool_even_matrix(n, w):
    """(m @ S)[:, c] == m[:, (c//w)*w + 2*(c%w)]  (per-batch-slot even-position gather)."""
    r = jnp.arange(n)[:, None]
    c = jnp.arange(n)[None, :]
    return (((r // w) == (c // w)) & ((r % w) == 2 * (c % w))).astype(jnp.float32)


def _interleave_matrix(n, w, parity):
    """(y @ E)[:, c] == y[:, (c//w)*w + ((c%w)-parity)//2] when (c%w) has that parity."""
    r = jnp.arange(n)[:, None]
    c = jnp.arange(n)[None, :]
    return (((r // w) == (c // w)) & ((c % w) == 2 * (r % w) + parity)).astype(jnp.float32)


# --------------------------------------------------------------------------------------
# One-time packing: coalesced parameter/selector table + static program
# --------------------------------------------------------------------------------------
def pack_model(params, B, L0):
    """Builds the single (rows, 128) f32 table and the static op program."""
    W, N = L0, B * L0
    blocks, program = [], []
    shifts_needed = set()
    row = 0

    def add_block(mat):
        nonlocal row
        mat = jnp.asarray(mat, jnp.float32)
        r, c = mat.shape
        rp = (-r) % 8                               # keep every block 8-row aligned
        buf = jnp.zeros((r + rp, 128), jnp.float32).at[:r, :c].set(mat)
        blocks.append(buf)
        r0 = row
        row += r + rp
        return r0

    def add_col(vec):
        return add_block(jnp.asarray(vec, jnp.float32).reshape(-1, 1))

    L = L0
    out_C = None

    def add_conv(p):
        nonlocal L, out_C
        w = p["w"]                                  # torch Conv1d layout (Cout, Cin, K)
        Cout, Cin, K = w.shape
        wcat = jnp.concatenate([w[:, :, k] for k in range(K)], axis=0)     # (K*Cout, Cin)
        w_row = add_block(wcat)
        bn, relu = bool(p["bn"]), bool(p["relu"])
        if bn:
            g_row = add_col(p["gamma"])
            b_row = add_col(p["beta"])              # conv bias dropped: cancels in BN centering
        else:
            g_row = -1
            b_row = add_col(p["b"])                 # non-BN conv keeps its bias
        Lout = L - K + 1
        program.append(("conv", w_row, Cout, Cin, K, g_row, b_row, bn, relu, Lout))
        shifts_needed.update(range(1, K))
        L = Lout
        out_C = Cout

    down, up, trans = params["down"], params["up"], params["trans"]
    depth = len(down)
    skip_lengths = []

    for i in range(depth - 1):
        for p in down[i]:
            add_conv(p)
        program.append(("push",))
        skip_lengths.append(L)
        program.append(("pool",))
        shifts_needed.add(1)
        L = L // 2
    for p in down[-1]:
        add_conv(p)
    for i in range(depth - 1):
        t = trans[i]
        w = t["w"]                                  # torch ConvTranspose1d layout (Cin, Cout, 2)
        Cin, Cout = w.shape[0], w.shape[1]
        wt = jnp.concatenate([w[:, :, 0].T, w[:, :, 1].T], axis=0)          # (2*Cout, Cin)
        w_row = add_block(wt)
        b_row = add_col(t["b"])
        L = 2 * L
        assert L <= W, "upsampled length must fit the fixed batch slot width"
        program.append(("trans", w_row, Cout, Cin, b_row))
        pad = (skip_lengths.pop() - L) // 2
        if pad:
            shifts_needed.add(pad)
        program.append(("concat", pad))
        for p in up[i]:
            add_conv(p)

    sel_rows = {"shift": {}}
    for s in sorted(shifts_needed):
        sel_rows["shift"][s] = add_block(_shift_matrix(N, s))
    if depth > 1:
        sel_rows["pool"] = add_block(_pool_even_matrix(N, W))
        sel_rows["e0"] = add_block(_interleave_matrix(N, W, 0))
        sel_rows["e1"] = add_block(_interleave_matrix(N, W, 1))

    table = jnp.concatenate(blocks, axis=0)
    return dict(table=table, program=tuple(program), sel_rows=sel_rows,
                B=B, W=W, out_C=out_C, out_L=L)


# --------------------------------------------------------------------------------------
# Fused whole-U-Net kernel
# --------------------------------------------------------------------------------------
def _make_kernel(B, W, program, sel_rows):
    N = B * W

    def kernel(x_ref, tab_ref, out_ref):
        # lane position within each batch slot, hoisted once (used only for BN masks)
        pos = lax.broadcasted_iota(jnp.int32, (1, N), 1) % W

        def sel(r0):                                    # (N, N) selector from the table
            return tab_ref[r0:r0 + N, :]

        def lane_shift(v, s):                           # v[:, c] -> v[:, c + s] via MXU
            if s == 0:
                return v
            return jnp.dot(v, sel(sel_rows["shift"][s]),
                           preferred_element_type=jnp.float32)

        h = x_ref[...].astype(jnp.float32)              # (C0, B*W), batch packed in lanes
        skips = []                                      # static (trace-time) skip stack

        for step in program:
            op = step[0]
            if op == "conv":
                _, w_row, cout, cin, K, g_row, b_row, bn, relu, lout = step
                wcat = tab_ref[w_row:w_row + K * cout, 0:cin]       # stacked taps
                y = jnp.dot(wcat, h, preferred_element_type=jnp.float32)  # (K*cout, N)
                acc = y[0:cout]
                for k in range(1, K):
                    acc = acc + lane_shift(y[k * cout:(k + 1) * cout], k)
                if bn:
                    # training-mode BatchNorm1d over (batch, length) = valid lanes only
                    maskf = (pos < lout).astype(jnp.float32)
                    inv_n = 1.0 / float(B * lout)
                    mean = jnp.sum(acc * maskf, axis=1, keepdims=True) * inv_n
                    cent = acc - mean
                    var = jnp.sum(cent * cent * maskf, axis=1, keepdims=True) * inv_n
                    gamma = tab_ref[g_row:g_row + cout, 0:1]
                    beta = tab_ref[b_row:b_row + cout, 0:1]
                    h = cent * (lax.rsqrt(var + _BN_EPS) * gamma) + beta
                else:
                    h = acc + tab_ref[b_row:b_row + cout, 0:1]
                if relu:
                    h = jnp.maximum(h, 0.0)
            elif op == "push":
                skips.append(h)
            elif op == "pool":
                # MaxPool1d(2,2): pairwise max via one shift, then one even-selector matmul
                m = jnp.maximum(h, lane_shift(h, 1))
                h = jnp.dot(m, sel(sel_rows["pool"]), preferred_element_type=jnp.float32)
            elif op == "trans":
                # ConvTranspose1d(k=2, s=2): one stacked matmul + two interleave selectors
                _, w_row, cout, cin, b_row = step
                wt = tab_ref[w_row:w_row + 2 * cout, 0:cin]
                y = jnp.dot(wt, h, preferred_element_type=jnp.float32)      # (2*cout, N)
                h = (jnp.dot(y[0:cout], sel(sel_rows["e0"]),
                             preferred_element_type=jnp.float32)
                     + jnp.dot(y[cout:2 * cout], sel(sel_rows["e1"]),
                               preferred_element_type=jnp.float32)
                     + tab_ref[b_row:b_row + cout, 0:1])
            elif op == "concat":
                # center-crop of the skip folded into one shift-selector matmul
                h = jnp.concatenate([h, lane_shift(skips.pop(), step[1])], axis=0)

        out_ref[...] = h                                # single lane-dense full-slab store

    return kernel


def embedding_unet_forward(x, packed):
    """Single pallas_call for the whole forward pass (2 inputs, 1 output)."""
    B, C0, L0 = x.shape
    assert B == packed["B"] and L0 == packed["W"]
    out_C, out_L, W = packed["out_C"], packed["out_L"], packed["W"]

    # wrapper-side pack: (B, C0, L0) -> (C0, B*L0), batch in the lane axis
    x_packed = jnp.transpose(x, (1, 0, 2)).reshape(C0, B * L0)

    kernel = _make_kernel(B, W, packed["program"], packed["sel_rows"])
    out = pl.pallas_call(
        kernel,
        out_shape=jax.ShapeDtypeStruct((out_C, B * W), jnp.float32),
        in_specs=[_VMEM, _VMEM],
        out_specs=_VMEM,
    )(x_packed, packed["table"])

    # wrapper-side unpack of the lane-dense slab -> (B, C, L)
    return out.reshape(out_C, B, W)[:, :, :out_L].transpose(1, 0, 2)


# --------------------------------------------------------------------------------------
# Deterministic synthetic parameter initialization (matches the module's shapes)
# --------------------------------------------------------------------------------------
def _conv_block_params(key, in_ch, out_ch, K, block_size, last_block):
    convs = []
    for i in range(block_size):
        key, kw, kb, kg, kbt = jax.random.split(key, 5)
        scale = 1.0 / math.sqrt(in_ch * K)
        w = jax.random.normal(kw, (out_ch, in_ch, K), jnp.float32) * scale
        b = jax.random.normal(kb, (out_ch,), jnp.float32) * 0.05
        has_act = (i < block_size - 1) or (not last_block)
        convs.append(dict(
            w=w, b=b,
            gamma=1.0 + 0.1 * jax.random.normal(kg, (out_ch,), jnp.float32),
            beta=0.1 * jax.random.normal(kbt, (out_ch,), jnp.float32),
            bn=has_act,            # batch_normalization=True
            relu=has_act))
        in_ch = out_ch
    # TODO(synk): nn.Dropout omitted (dropout_rate=0.0 -> identity in forward).
    return convs, key


def init_unet_params(key, input_dim, embedding_dim, kernel_size, block_size=2, depth=3):
    params = dict(down=[], up=[], trans=[])
    in_ch, out_ch = input_dim, embedding_dim
    for _ in range(depth):
        blk, key = _conv_block_params(key, in_ch, out_ch, kernel_size,
                                      block_size, last_block=False)
        params["down"].append(blk)
        in_ch = out_ch
        out_ch *= 2
    in_ch = out_ch // 2
    out_ch = out_ch // 4
    for i in range(depth - 1):
        key, kw = jax.random.split(key)
        # xavier_uniform for ConvTranspose1d weight (Cin, Cout, 2); bias zeroed.
        bound = math.sqrt(6.0 / (in_ch * 2 + out_ch * 2))
        wt = jax.random.uniform(kw, (in_ch, out_ch, 2), jnp.float32, -bound, bound)
        params["trans"].append(dict(w=wt, b=jnp.zeros((out_ch,), jnp.float32)))
        last_block = (i == depth - 2)
        blk, key = _conv_block_params(key, in_ch, out_ch, kernel_size,
                                      block_size, last_block)
        params["up"].append(blk)
        in_ch = out_ch
        out_ch //= 2
    return params


# --------------------------------------------------------------------------------------
# Pure-JAX reference forward (mirrors the PyTorch module semantics)
# --------------------------------------------------------------------------------------
def _ref_conv_block(h, blk):
    for p in blk:
        h = lax.conv_general_dilated(h, p["w"], window_strides=(1,), padding="VALID",
                                     dimension_numbers=("NCH", "OIH", "NCH"),
                                     precision=lax.Precision.HIGHEST)
        h = h + p["b"][None, :, None]
        if p["bn"]:
            m = jnp.mean(h, axis=(0, 2), keepdims=True)
            v = jnp.mean((h - m) ** 2, axis=(0, 2), keepdims=True)
            h = (h - m) / jnp.sqrt(v + _BN_EPS) * p["gamma"][None, :, None] \
                + p["beta"][None, :, None]
        if p["relu"]:
            h = jnp.maximum(h, 0.0)
    return h


def reference_forward(x, params):
    down_results = []
    h = x
    for blk in params["down"][:-1]:
        h = _ref_conv_block(h, blk)
        down_results.append(h)
        Bb, Cc, Ll = h.shape
        h = h[:, :, :(Ll // 2) * 2].reshape(Bb, Cc, Ll // 2, 2).max(axis=-1)
    h = _ref_conv_block(h, params["down"][-1])
    for i, blk in enumerate(params["up"]):
        t = params["trans"][i]
        w = t["w"]                                   # (Cin, Cout, 2)
        Bb, Cc, Ll = h.shape
        y = jnp.einsum("bcl,cok->bolk", h, w,
                       precision=lax.Precision.HIGHEST).reshape(Bb, w.shape[1], 2 * Ll)
        h = y + t["b"][None, :, None]
        d = down_results.pop()
        pad = (d.shape[2] - h.shape[2]) // 2
        d = d[:, :, pad:pad + h.shape[2]]
        h = jnp.concatenate([h, d], axis=1)
        h = _ref_conv_block(h, blk)
    return h


# --------------------------------------------------------------------------------------
if __name__ == "__main__":
    B, input_dim, L = 2, 4, 64
    embedding_dim, kernel_size, block_size, depth = 8, 3, 2, 3

    key = jax.random.PRNGKey(0)
    key, xk = jax.random.split(key)
    x = jax.random.normal(xk, (B, input_dim, L), jnp.float32)
    params = init_unet_params(key, input_dim, embedding_dim, kernel_size,
                              block_size, depth)

    packed = pack_model(params, B, L)        # one-time coalesced table + static program

    out = embedding_unet_forward(x, packed)
    out = jax.block_until_ready(out)

    # length trace for L=64, K=3, depth=3: 64->60 ->pool 30->26 ->pool 13->9
    #   up0: 18 (+skip crop 26->18) -> 14 ; up1: 28 (+skip crop 60->28) -> 24
    ref = reference_forward(x, params)
    assert out.shape == ref.shape == (B, embedding_dim, 24), (out.shape, ref.shape)
    assert out.dtype == jnp.float32
    err = float(jnp.max(jnp.abs(out - ref)))
    scale = float(jnp.max(jnp.abs(ref)))
    assert err <= 5e-3 * max(1.0, scale), f"kernel/reference mismatch: {err} (scale {scale})"

    print("KERNEL_OK")
</pallas_src>

<mosaic_0001>
module attributes {stable_mosaic.version = 11 : i64} {
  func.func @kernel(%arg0: memref<4x128xf32, #tpu.memory_space<vmem>>, %arg1: memref<1760x128xf32, #tpu.memory_space<vmem>>, %arg2: memref<8x128xf32, #tpu.memory_space<vmem>>) attributes {dimension_semantics = [], scalar_prefetch = 0 : i64, scratch_operands = 0 : i64, tpu.core_type = #tpu.core_type<tc>} {
    %0 = tpu.iota {dimensions = array<i32: 1>} : vector<1x128xi32>
    %c64_i32 = arith.constant 64 : i32
    %c0_i32 = arith.constant 0 : i32
    %1 = arith.cmpi eq, %c64_i32, %c0_i32 : i32
    %c1_i32 = arith.constant 1 : i32
    %2 = arith.select %1, %c1_i32, %c64_i32 : i32
    %3 = vector.broadcast %2 : i32 to vector<1x128xi32>
    %4 = arith.remsi %0, %3 : vector<1x128xi32>
    %c0_i32_0 = arith.constant 0 : i32
    %5 = vector.broadcast %c0_i32_0 : i32 to vector<1x128xi32>
    %6 = arith.cmpi ne, %4, %5 : vector<1x128xi32>
    %c0_i32_1 = arith.constant 0 : i32
    %7 = vector.broadcast %c0_i32_1 : i32 to vector<1x128xi32>
    %8 = arith.cmpi slt, %4, %7 : vector<1x128xi32>
    %c0_i32_2 = arith.constant 0 : i32
    %9 = arith.cmpi slt, %2, %c0_i32_2 : i32
    %10 = vector.broadcast %9 : i1 to vector<1x128xi1>
    %11 = vector.broadcast %10 : vector<1x128xi1> to vector<1x128xi1>
    %12 = arith.xori %8, %11 : vector<1x128xi1>
    %13 = arith.andi %12, %6 : vector<1x128xi1>
    %14 = vector.broadcast %2 : i32 to vector<1x128xi32>
    %15 = arith.addi %4, %14 : vector<1x128xi32>
    %16 = arith.select %13, %15, %4 : vector<1x128xi1>, vector<1x128xi32>
    %c0 = arith.constant 0 : index
    %c0_3 = arith.constant 0 : index
    %17 = vector.load %arg0[%c0, %c0_3] : memref<4x128xf32, #tpu.memory_space<vmem>>, vector<4x128xf32>
    %c0_4 = arith.constant 0 : index
    %c0_5 = arith.constant 0 : index
    %18 = vector.load %arg1[%c0_4, %c0_5] : memref<1760x128xf32, #tpu.memory_space<vmem>>, vector<24x4xf32>
    %cst = arith.constant dense<0.000000e+00> : vector<24x128xf32>
    %19 = tpu.matmul %18, %17, %cst {dimension_numbers = #tpu.dot_dimension_numbers<[1], [0], [0], [1], [0, 0, 1, 1], [], []>} : vector<24x4xf32>, vector<4x128xf32>, vector<24x128xf32> -> vector<24x128xf32>
    %20 = vector.extract_strided_slice %19 {offsets = [0, 0], sizes = [8, 128], strides = [1, 1]} : vector<24x128xf32> to vector<8x128xf32>
    %21 = vector.extract_strided_slice %19 {offsets = [8, 0], sizes = [8, 128], strides = [1, 1]} : vector<24x128xf32> to vector<8x128xf32>
    %c864 = arith.constant 864 : index
    %c0_6 = arith.constant 0 : index
    %22 = vector.load %arg1[%c864, %c0_6] : memref<1760x128xf32, #tpu.memory_space<vmem>>, vector<128x128xf32>
    %cst_7 = arith.constant dense<0.000000e+00> : vector<8x128xf32>
    %23 = tpu.matmul %21, %22, %cst_7 {dimension_numbers = #tpu.dot_dimension_numbers<[1], [0], [0], [1], [0, 0, 1, 1], [], []>} : vector<8x128xf32>, vector<128x128xf32>, vector<8x128xf32> -> vector<8x128xf32>
    %24 = arith.addf %20, %23 : vector<8x128xf32>
    %25 = vector.extract_strided_slice %19 {offsets = [16, 0], sizes = [8, 128], strides = [1, 1]} : vector<24x128xf32> to vector<8x128xf32>
    %c992 = arith.constant 992 : index
    %c0_8 = arith.constant 0 : index
    %26 = vector.load %arg1[%c992, %c0_8] : memref<1760x128xf32, #tpu.memory_space<vmem>>, vector<128x128xf32>
    %cst_9 = arith.constant dense<0.000000e+00> : vector<8x128xf32>
    %27 = tpu.matmul %25, %26, %cst_9 {dimension_numbers = #tpu.dot_dimension_numbers<[1], [0], [0], [1], [0, 0, 1, 1], [], []>} : vector<8x128xf32>, vector<128x128xf32>, vector<8x128xf32> -> vector<8x128xf32>
    %28 = arith.addf %24, %27 : vector<8x128xf32>
    %c62_i32 = arith.constant 62 : i32
    %29 = vector.broadcast %c62_i32 : i32 to vector<1x128xi32>
    %30 = arith.cmpi slt, %16, %29 : vector<1x128xi32>
    %31 = arith.extui %30 : vector<1x128xi1> to vector<1x128xi32>
    %32 = arith.sitofp %31 : vector<1x128xi32> to vector<1x128xf32>
    %33 = vector.broadcast %32 : vector<1x128xf32> to vector<8x128xf32>
    %34 = arith.mulf %28, %33 : vector<8x128xf32>
    %cst_10 = arith.constant dense<0.000000e+00> : vector<8xf32>
    %35 = vector.multi_reduction <add>, %34, %cst_10 [1] : vector<8x128xf32> to vector<8xf32>
    %36 = vector.shape_cast %35 : vector<8xf32> to vector<8x1xf32>
    %cst_11 = arith.constant 0.00806451589 : f32
    %37 = vector.broadcast %cst_11 : f32 to vector<8x1xf32>
    %38 = arith.mulf %36, %37 : vector<8x1xf32>
    %39 = vector.broadcast %38 : vector<8x1xf32> to vector<8x128xf32>
    %40 = arith.subf %28, %39 : vector<8x128xf32>
    %41 = arith.mulf %40, %40 : vector<8x128xf32>
    %42 = vector.broadcast %32 : vector<1x128xf32> to vector<8x128xf32>
    %43 = arith.mulf %41, %42 : vector<8x128xf32>
    %cst_12 = arith.constant dense<0.000000e+00> : vector<8xf32>
    %44 = vector.multi_reduction <add>, %43, %cst_12 [1] : vector<8x128xf32> to vector<8xf32>
    %45 = vector.shape_cast %44 : vector<8xf32> to vector<8x1xf32>
    %cst_13 = arith.constant 0.00806451589 : f32
    %46 = vector.broadcast %cst_13 : f32 to vector<8x1xf32>
    %47 = arith.mulf %45, %46 : vector<8x1xf32>
    %c24 = arith.constant 24 : index
    %c0_14 = arith.constant 0 : index
    %48 = vector.load %arg1[%c24, %c0_14] : memref<1760x128xf32, #tpu.memory_space<vmem>>, vector<8x1xf32>
    %c32 = arith.constant 32 : index
    %c0_15 = arith.constant 0 : index
    %49 = vector.load %arg1[%c32, %c0_15] : memref<1760x128xf32, #tpu.memory_space<vmem>>, vector<8x1xf32>
    %cst_16 = arith.constant 9.99999974E-6 : f32
    %50 = vector.broadcast %cst_16 : f32 to vector<8x1xf32>
    %51 = arith.addf %47, %50 : vector<8x1xf32>
    %52 = math.rsqrt %51 : vector<8x1xf32>
    %53 = arith.mulf %52, %48 : vector<8x1xf32>
    %54 = vector.broadcast %53 : vector<8x1xf32> to vector<8x128xf32>
    %55 = arith.mulf %40, %54 : vector<8x128xf32>
    %56 = vector.broadcast %49 : vector<8x1xf32> to vector<8x128xf32>
    %57 = arith.addf %55, %56 : vector<8x128xf32>
    %cst_17 = arith.constant 0.000000e+00 : f32
    %58 = vector.broadcast %cst_17 : f32 to vector<8x128xf32>
    %59 = arith.maximumf %57, %58 : vector<8x128xf32>
    %c40 = arith.constant 40 : index
    %c0_18 = arith.constant 0 : index
    %60 = vector.load %arg1[%c40, %c0_18] : memref<1760x128xf32, #tpu.memory_space<vmem>>, vector<24x8xf32>
    %cst_19 = arith.constant dense<0.000000e+00> : vector<24x128xf32>
    %61 = tpu.matmul %60, %59, %cst_19 {dimension_numbers = #tpu.dot_dimension_numbers<[1], [0], [0], [1], [0, 0, 1, 1], [], []>} : vector<24x8xf32>, vector<8x128xf32>, vector<24x128xf32> -> vector<24x128xf32>
    %62 = vector.extract_strided_slice %61 {offsets = [0, 0], sizes = [8, 128], strides = [1, 1]} : vector<24x128xf32> to vector<8x128xf32>
    %63 = vector.extract_strided_slice %61 {offsets = [8, 0], sizes = [8, 128], strides = [1, 1]} : vector<24x128xf32> to vector<8x128xf32>
    %c864_20 = arith.constant 864 : index
    %c0_21 = arith.constant 0 : index
    %64 = vector.load %arg1[%c864_20, %c0_21] : memref<1760x128xf32, #tpu.memory_space<vmem>>, vector<128x128xf32>
    %cst_22 = arith.constant dense<0.000000e+00> : vector<8x128xf32>
    %65 = tpu.matmul %63, %64, %cst_22 {dimension_numbers = #tpu.dot_dimension_numbers<[1], [0], [0], [1], [0, 0, 1, 1], [], []>} : vector<8x128xf32>, vector<128x128xf32>, vector<8x128xf32> -> vector<8x128xf32>
    %66 = arith.addf %62, %65 : vector<8x128xf32>
    %67 = vector.extract_strided_slice %61 {offsets = [16, 0], sizes = [8, 128], strides = [1, 1]} : vector<24x128xf32> to vector<8x128xf32>
    %c992_23 = arith.constant 992 : index
    %c0_24 = arith.constant 0 : index
    %68 = vector.load %arg1[%c992_23, %c0_24] : memref<1760x128xf32, #tpu.memory_space<vmem>>, vector<128x128xf32>
    %cst_25 = arith.constant dense<0.000000e+00> : vector<8x128xf32>
    %69 = tpu.matmul %67, %68, %cst_25 {dimension_numbers = #tpu.dot_dimension_numbers<[1], [0], [0], [1], [0, 0, 1, 1], [], []>} : vector<8x128xf32>, vector<128x128xf32>, vector<8x128xf32> -> vector<8x128xf32>
    %70 = arith.addf %66, %69 : vector<8x128xf32>
    %c60_i32 = arith.constant 60 : i32
    %71 = vector.broadcast %c60_i32 : i32 to vector<1x128xi32>
    %72 = arith.cmpi slt, %16, %71 : vector<1x128xi32>
    %73 = arith.extui %72 : vector<1x128xi1> to vector<1x128xi32>
    %74 = arith.sitofp %73 : vector<1x128xi32> to vector<1x128xf32>
    %75 = vector.broadcast %74 : vector<1x128xf32> to vector<8x128xf32>
    %76 = arith.mulf %70, %75 : vector<8x128xf32>
    %cst_26 = arith.constant dense<0.000000e+00> : vector<8xf32>
    %77 = vector.multi_reduction <add>, %76, %cst_26 [1] : vector<8x128xf32> to vector<8xf32>
    %78 = vector.shape_cast %77 : vector<8xf32> to vector<8x1xf32>
    %cst_27 = arith.constant 0.00833333377 : f32
    %79 = vector.broadcast %cst_27 : f32 to vector<8x1xf32>
    %80 = arith.mulf %78, %79 : vector<8x1xf32>
    %81 = vector.broadcast %80 : vector<8x1xf32> to vector<8x128xf32>
    %82 = arith.subf %70, %81 : vector<8x128xf32>
    %83 = arith.mulf %82, %82 : vector<8x128xf32>
    %84 = vector.broadcast %74 : vector<1x128xf32> to vector<8x128xf32>
    %85 = arith.mulf %83, %84 : vector<8x128xf32>
    %cst_28 = arith.constant dense<0.000000e+00> : vector<8xf32>
    %86 = vector.multi_reduction <add>, %85, %cst_28 [1] : vector<8x128xf32> to vector<8xf32>
    %87 = vector.shape_cast %86 : vector<8xf32> to vector<8x1xf32>
    %cst_29 = arith.constant 0.00833333377 : f32
    %88 = vector.broadcast %cst_29 : f32 to vector<8x1xf32>
    %89 = arith.mulf %87, %88 : vector<8x1xf32>
    %c64 = arith.constant 64 : index
    %c0_30 = arith.constant 0 : index
    %90 = vector.load %arg1[%c64, %c0_30] : memref<1760x128xf32, #tpu.memory_space<vmem>>, vector<8x1xf32>
    %c72 = arith.constant 72 : index
    %c0_31 = arith.constant 0 : index
    %91 = vector.load %arg1[%c72, %c0_31] : memref<1760x128xf32, #tpu.memory_space<vmem>>, vector<8x1xf32>
    %cst_32 = arith.constant 9.99999974E-6 : f32
    %92 = vector.broadcast %cst_32 : f32 to vector<8x1xf32>
    %93 = arith.addf %89, %92 : vector<8x1xf32>
    %94 = math.rsqrt %93 : vector<8x1xf32>
    %95 = arith.mulf %94, %90 : vector<8x1xf32>
    %96 = vector.broadcast %95 : vector<8x1xf32> to vector<8x128xf32>
    %97 = arith.mulf %82, %96 : vector<8x128xf32>
    %98 = vector.broadcast %91 : vector<8x1xf32> to vector<8x128xf32>
    %99 = arith.addf %97, %98 : vector<8x128xf32>
    %cst_33 = arith.constant 0.000000e+00 : f32
    %100 = vector.broadcast %cst_33 : f32 to vector<8x128xf32>
    %101 = arith.maximumf %99, %100 : vector<8x128xf32>
    %c864_34 = arith.constant 864 : index
    %c0_35 = arith.constant 0 : index
    %102 = vector.load %arg1[%c864_34, %c0_35] : memref<1760x128xf32, #tpu.memory_space<vmem>>, vector<128x128xf32>
    %cst_36 = arith.constant dense<0.000000e+00> : vector<8x128xf32>
    %103 = tpu.matmul %101, %102, %cst_36 {dimension_numbers = #tpu.dot_dimension_numbers<[1], [0], [0], [1], [0, 0, 1, 1], [], []>} : vector<8x128xf32>, vector<128x128xf32>, vector<8x128xf32> -> vector<8x128xf32>
    %104 = arith.maximumf %101, %103 : vector<8x128xf32>
    %c1376 = arith.constant 1376 : index
    %c0_37 = arith.constant 0 : index
    %105 = vector.load %arg1[%c1376, %c0_37] : memref<1760x128xf32, #tpu.memory_space<vmem>>, vector<128x128xf32>
    %cst_38 = arith.constant dense<0.000000e+00> : vector<8x128xf32>
    %106 = tpu.matmul %104, %105, %cst_38 {dimension_numbers = #tpu.dot_dimension_numbers<[1], [0], [0], [1], [0, 0, 1, 1], [], []>} : vector<8x128xf32>, vector<128x128xf32>, vector<8x128xf32> -> vector<8x128xf32>
    %c80 = arith.constant 80 : index
    %c0_39 = arith.constant 0 : index
    %107 = vector.load %arg1[%c80, %c0_39] : memref<1760x128xf32, #tpu.memory_space<vmem>>, vector<48x8xf32>
    %cst_40 = arith.constant dense<0.000000e+00> : vector<48x128xf32>
    %108 = tpu.matmul %107, %106, %cst_40 {dimension_numbers = #tpu.dot_dimension_numbers<[1], [0], [0], [1], [0, 0, 1, 1], [], []>} : vector<48x8xf32>, vector<8x128xf32>, vector<48x128xf32> -> vector<48x128xf32>
    %109 = vector.extract_strided_slice %108 {offsets = [0, 0], sizes = [16, 128], strides = [1, 1]} : vector<48x128xf32> to vector<16x128xf32>
    %110 = vector.extract_strided_slice %108 {offsets = [16, 0], sizes = [16, 128], strides = [1, 1]} : vector<48x128xf32> to vector<16x128xf32>
    %c864_41 = arith.constant 864 : index
    %c0_42 = arith.constant 0 : index
    %111 = vector.load %arg1[%c864_41, %c0_42] : memref<1760x128xf32, #tpu.memory_space<vmem>>, vector<128x128xf32>
    %cst_43 = arith.constant dense<0.000000e+00> : vector<16x128xf32>
    %112 = tpu.matmul %110, %111, %cst_43 {dimension_numbers = #tpu.dot_dimension_numbers<[1], [0], [0], [1], [0, 0, 1, 1], [], []>} : vector<16x128xf32>, vector<128x128xf32>, vector<16x128xf32> -> vector<16x128xf32>
    %113 = arith.addf %109, %112 : vector<16x128xf32>
    %114 = vector.extract_strided_slice %108 {offsets = [32, 0], sizes = [16, 128], strides = [1, 1]} : vector<48x128xf32> to vector<16x128xf32>
    %c992_44 = arith.constant 992 : index
    %c0_45 = arith.constant 0 : index
    %115 = vector.load %arg1[%c992_44, %c0_45] : memref<1760x128xf32, #tpu.memory_space<vmem>>, vector<128x128xf32>
    %cst_46 = arith.constant dense<0.000000e+00> : vector<16x128xf32>
    %116 = tpu.matmul %114, %115, %cst_46 {dimension_numbers = #tpu.dot_dimension_numbers<[1], [0], [0], [1], [0, 0, 1, 1], [], []>} : vector<16x128xf32>, vector<128x128xf32>, vector<16x128xf32> -> vector<16x128xf32>
    %117 = arith.addf %113, %116 : vector<16x128xf32>
    %c28_i32 = arith.constant 28 : i32
    %118 = vector.broadcast %c28_i32 : i32 to vector<1x128xi32>
    %119 = arith.cmpi slt, %16, %118 : vector<1x128xi32>
    %120 = arith.extui %119 : vector<1x128xi1> to vector<1x128xi32>
    %121 = arith.sitofp %120 : vector<1x128xi32> to vector<1x128xf32>
    %122 = vector.broadcast %121 : vector<1x128xf32> to vector<16x128xf32>
    %123 = arith.mulf %117, %122 : vector<16x128xf32>
    %cst_47 = arith.constant dense<0.000000e+00> : vector<16xf32>
    %124 = vector.multi_reduction <add>, %123, %cst_47 [1] : vector<16x128xf32> to vector<16xf32>
    %125 = vector.shape_cast %124 : vector<16xf32> to vector<16x1xf32>
    %cst_48 = arith.constant 0.0178571437 : f32
    %126 = vector.broadcast %cst_48 : f32 to vector<16x1xf32>
    %127 = arith.mulf %125, %126 : vector<16x1xf32>
    %128 = vector.broadcast %127 : vector<16x1xf32> to vector<16x128xf32>
    %129 = arith.subf %117, %128 : vector<16x128xf32>
    %130 = arith.mulf %129, %129 : vector<16x128xf32>
    %131 = vector.broadcast %121 : vector<1x128xf32> to vector<16x128xf32>
    %132 = arith.mulf %130, %131 : vector<16x128xf32>
    %cst_49 = arith.constant dense<0.000000e+00> : vector<16xf32>
    %133 = vector.multi_reduction <add>, %132, %cst_49 [1] : vector<16x128xf32> to vector<16xf32>
    %134 = vector.shape_cast %133 : vector<16xf32> to vector<16x1xf32>
    %cst_50 = arith.constant 0.0178571437 : f32
    %135 = vector.broadcast %cst_50 : f32 to vector<16x1xf32>
    %136 = arith.mulf %134, %135 : vector<16x1xf32>
    %c128 = arith.constant 128 : index
    %c0_51 = arith.constant 0 : index
    %137 = vector.load %arg1[%c128, %c0_51] : memref<1760x128xf32, #tpu.memory_space<vmem>>, vector<16x1xf32>
    %c144 = arith.constant 144 : index
    %c0_52 = arith.constant 0 : index
    %138 = vector.load %arg1[%c144, %c0_52] : memref<1760x128xf32, #tpu.memory_space<vmem>>, vector<16x1xf32>
    %cst_53 = arith.constant 9.99999974E-6 : f32
    %139 = vector.broadcast %cst_53 : f32 to vector<16x1xf32>
    %140 = arith.addf %136, %139 : vector<16x1xf32>
    %141 = math.rsqrt %140 : vector<16x1xf32>
    %142 = arith.mulf %141, %137 : vector<16x1xf32>
    %143 = vector.broadcast %142 : vector<16x1xf32> to vector<16x128xf32>
    %144 = arith.mulf %129, %143 : vector<16x128xf32>
    %145 = vector.broadcast %138 : vector<16x1xf32> to vector<16x128xf32>
    %146 = arith.addf %144, %145 : vector<16x128xf32>
    %cst_54 = arith.constant 0.000000e+00 : f32
    %147 = vector.broadcast %cst_54 : f32 to vector<16x128xf32>
    %148 = arith.maximumf %146, %147 : vector<16x128xf32>
    %c160 = arith.constant 160 : index
    %c0_55 = arith.constant 0 : index
    %149 = vector.load %arg1[%c160, %c0_55] : memref<1760x128xf32, #tpu.memory_space<vmem>>, vector<48x16xf32>
    %cst_56 = arith.constant dense<0.000000e+00> : vector<48x128xf32>
    %150 = tpu.matmul %149, %148, %cst_56 {dimension_numbers = #tpu.dot_dimension_numbers<[1], [0], [0], [1], [0, 0, 1, 1], [], []>} : vector<48x16xf32>, vector<16x128xf32>, vector<48x128xf32> -> vector<48x128xf32>
    %151 = vector.extract_strided_slice %150 {offsets = [0, 0], sizes = [16, 128], strides = [1, 1]} : vector<48x128xf32> to vector<16x128xf32>
    %152 = vector.extract_strided_slice %150 {offsets = [16, 0], sizes = [16, 128], strides = [1, 1]} : vector<48x128xf32> to vector<16x128xf32>
    %c864_57 = arith.constant 864 : index
    %c0_58 = arith.constant 0 : index
    %153 = vector.load %arg1[%c864_57, %c0_58] : memref<1760x128xf32, #tpu.memory_space<vmem>>, vector<128x128xf32>
    %cst_59 = arith.constant dense<0.000000e+00> : vector<16x128xf32>
    %154 = tpu.matmul %152, %153, %cst_59 {dimension_numbers = #tpu.dot_dimension_numbers<[1], [0], [0], [1], [0, 0, 1, 1], [], []>} : vector<16x128xf32>, vector<128x128xf32>, vector<16x128xf32> -> vector<16x128xf32>
    %155 = arith.addf %151, %154 : vector<16x128xf32>
    %156 = vector.extract_strided_slice %150 {offsets = [32, 0], sizes = [16, 128], strides = [1, 1]} : vector<48x128xf32> to vector<16x128xf32>
    %c992_60 = arith.constant 992 : index
    %c0_61 = arith.constant 0 : index
    %157 = vector.load %arg1[%c992_60, %c0_61] : memref<1760x128xf32, #tpu.memory_space<vmem>>, vector<128x128xf32>
    %cst_62 = arith.constant dense<0.000000e+00> : vector<16x128xf32>
    %158 = tpu.matmul %156, %157, %cst_62 {dimension_numbers = #tpu.dot_dimension_numbers<[1], [0], [0], [1], [0, 0, 1, 1], [], []>} : vector<16x128xf32>, vector<128x128xf32>, vector<16x128xf32> -> vector<16x128xf32>
    %159 = arith.addf %155, %158 : vector<16x128xf32>
    %c26_i32 = arith.constant 26 : i32
    %160 = vector.broadcast %c26_i32 : i32 to vector<1x128xi32>
    %161 = arith.cmpi slt, %16, %160 : vector<1x128xi32>
    %162 = arith.extui %161 : vector<1x128xi1> to vector<1x128xi32>
    %163 = arith.sitofp %162 : vector<1x128xi32> to vector<1x128xf32>
    %164 = vector.broadcast %163 : vector<1x128xf32> to vector<16x128xf32>
    %165 = arith.mulf %159, %164 : vector<16x128xf32>
    %cst_63 = arith.constant dense<0.000000e+00> : vector<16xf32>
    %166 = vector.multi_reduction <add>, %165, %cst_63 [1] : vector<16x128xf32> to vector<16xf32>
    %167 = vector.shape_cast %166 : vector<16xf32> to vector<16x1xf32>
    %cst_64 = arith.constant 0.0192307699 : f32
    %168 = vector.broadcast %cst_64 : f32 to vector<16x1xf32>
    %169 = arith.mulf %167, %168 : vector<16x1xf32>
    %170 = vector.broadcast %169 : vector<16x1xf32> to vector<16x128xf32>
    %171 = arith.subf %159, %170 : vector<16x128xf32>
    %172 = arith.mulf %171, %171 : vector<16x128xf32>
    %173 = vector.broadcast %163 : vector<1x128xf32> to vector<16x128xf32>
    %174 = arith.mulf %172, %173 : vector<16x128xf32>
    %cst_65 = arith.constant dense<0.000000e+00> : vector<16xf32>
    %175 = vector.multi_reduction <add>, %174, %cst_65 [1] : vector<16x128xf32> to vector<16xf32>
    %176 = vector.shape_cast %175 : vector<16xf32> to vector<16x1xf32>
    %cst_66 = arith.constant 0.0192307699 : f32
    %177 = vector.broadcast %cst_66 : f32 to vector<16x1xf32>
    %178 = arith.mulf %176, %177 : vector<16x1xf32>
    %c208 = arith.constant 208 : index
    %c0_67 = arith.constant 0 : index
    %179 = vector.load %arg1[%c208, %c0_67] : memref<1760x128xf32, #tpu.memory_space<vmem>>, vector<16x1xf32>
    %c224 = arith.constant 224 : index
    %c0_68 = arith.constant 0 : index
    %180 = vector.load %arg1[%c224, %c0_68] : memref<1760x128xf32, #tpu.memory_space<vmem>>, vector<16x1xf32>
    %cst_69 = arith.constant 9.99999974E-6 : f32
    %181 = vector.broadcast %cst_69 : f32 to vector<16x1xf32>
    %182 = arith.addf %178, %181 : vector<16x1xf32>
    %183 = math.rsqrt %182 : vector<16x1xf32>
    %184 = arith.mulf %183, %179 : vector<16x1xf32>
    %185 = vector.broadcast %184 : vector<16x1xf32> to vector<16x128xf32>
    %186 = arith.mulf %171, %185 : vector<16x128xf32>
    %187 = vector.broadcast %180 : vector<16x1xf32> to vector<16x128xf32>
    %188 = arith.addf %186, %187 : vector<16x128xf32>
    %cst_70 = arith.constant 0.000000e+00 : f32
    %189 = vector.broadcast %cst_70 : f32 to vector<16x128xf32>
    %190 = arith.maximumf %188, %189 : vector<16x128xf32>
    %c864_71 = arith.constant 864 : index
    %c0_72 = arith.constant 0 : index
    %191 = vector.load %arg1[%c864_71, %c0_72] : memref<1760x128xf32, #tpu.memory_space<vmem>>, vector<128x128xf32>
    %cst_73 = arith.constant dense<0.000000e+00> : vector<16x128xf32>
    %192 = tpu.matmul %190, %191, %cst_73 {dimension_numbers = #tpu.dot_dimension_numbers<[1], [0], [0], [1], [0, 0, 1, 1], [], []>} : vector<16x128xf32>, vector<128x128xf32>, vector<16x128xf32> -> vector<16x128xf32>
    %193 = arith.maximumf %190, %192 : vector<16x128xf32>
    %c1376_74 = arith.constant 1376 : index
    %c0_75 = arith.constant 0 : index
    %194 = vector.load %arg1[%c1376_74, %c0_75] : memref<1760x128xf32, #tpu.memory_space<vmem>>, vector<128x128xf32>
    %cst_76 = arith.constant dense<0.000000e+00> : vector<16x128xf32>
    %195 = tpu.matmul %193, %194, %cst_76 {dimension_numbers = #tpu.dot_dimension_numbers<[1], [0], [0], [1], [0, 0, 1, 1], [], []>} : vector<16x128xf32>, vector<128x128xf32>, vector<16x128xf32> -> vector<16x128xf32>
    %c240 = arith.constant 240 : index
    %c0_77 = arith.constant 0 : index
    %196 = vector.load %arg1[%c240, %c0_77] : memref<1760x128xf32, #tpu.memory_space<vmem>>, vector<96x16xf32>
    %cst_78 = arith.constant dense<0.000000e+00> : vector<96x128xf32>
    %197 = tpu.matmul %196, %195, %cst_78 {dimension_numbers = #tpu.dot_dimension_numbers<[1], [0], [0], [1], [0, 0, 1, 1], [], []>} : vector<96x16xf32>, vector<16x128xf32>, vector<96x128xf32> -> vector<96x128xf32>
    %198 = vector.extract_strided_slice %197 {offsets = [0, 0], sizes = [32, 128], strides = [1, 1]} : vector<96x128xf32> to vector<32x128xf32>
    %199 = vector.extract_strided_slice %197 {offsets = [32, 0], sizes = [32, 128], strides = [1, 1]} : vector<96x128xf32> to vector<32x128xf32>
    %c864_79 = arith.constant 864 : index
    %c0_80 = arith.constant 0 : index
    %200 = vector.load %arg1[%c864_79, %c0_80] : memref<1760x128xf32, #tpu.memory_space<vmem>>, vector<128x128xf32>
    %cst_81 = arith.constant dense<0.000000e+00> : vector<32x128xf32>
    %201 = tpu.matmul %199, %200, %cst_81 {dimension_numbers = #tpu.dot_dimension_numbers<[1], [0], [0], [1], [0, 0, 1, 1], [], []>} : vector<32x128xf32>, vector<128x128xf32>, vector<32x128xf32> -> vector<32x128xf32>
    %202 = arith.addf %198, %201 : vector<32x128xf32>
    %203 = vector.extract_strided_slice %197 {offsets = [64, 0], sizes = [32, 128], strides = [1, 1]} : vector<96x128xf32> to vector<32x128xf32>
    %c992_82 = arith.constant 992 : index
    %c0_83 = arith.constant 0 : index
    %204 = vector.load %arg1[%c992_82, %c0_83] : memref<1760x128xf32, #tpu.memory_space<vmem>>, vector<128x128xf32>
    %cst_84 = arith.constant dense<0.000000e+00> : vector<32x128xf32>
    %205 = tpu.matmul %203, %204, %cst_84 {dimension_numbers = #tpu.dot_dimension_numbers<[1], [0], [0], [1], [0, 0, 1, 1], [], []>} : vector<32x128xf32>, vector<128x128xf32>, vector<32x128xf32> -> vector<32x128xf32>
    %206 = arith.addf %202, %205 : vector<32x128xf32>
    %c11_i32 = arith.constant 11 : i32
    %207 = vector.broadcast %c11_i32 : i32 to vector<1x128xi32>
    %208 = arith.cmpi slt, %16, %207 : vector<1x128xi32>
    %209 = arith.extui %208 : vector<1x128xi1> to vector<1x128xi32>
    %210 = arith.sitofp %209 : vector<1x128xi32> to vector<1x128xf32>
    %211 = vector.broadcast %210 : vector<1x128xf32> to vector<32x128xf32>
    %212 = arith.mulf %206, %211 : vector<32x128xf32>
    %cst_85 = arith.constant dense<0.000000e+00> : vector<32xf32>
    %213 = vector.multi_reduction <add>, %212, %cst_85 [1] : vector<32x128xf32> to vector<32xf32>
    %214 = vector.shape_cast %213 : vector<32xf32> to vector<32x1xf32>
    %cst_86 = arith.constant 0.0454545468 : f32
    %215 = vector.broadcast %cst_86 : f32 to vector<32x1xf32>
    %216 = arith.mulf %214, %215 : vector<32x1xf32>
    %217 = vector.broadcast %216 : vector<32x1xf32> to vector<32x128xf32>
    %218 = arith.subf %206, %217 : vector<32x128xf32>
    %219 = arith.mulf %218, %218 : vector<32x128xf32>
    %220 = vector.broadcast %210 : vector<1x128xf32> to vector<32x128xf32>
    %221 = arith.mulf %219, %220 : vector<32x128xf32>
    %cst_87 = arith.constant dense<0.000000e+00> : vector<32xf32>
    %222 = vector.multi_reduction <add>, %221, %cst_87 [1] : vector<32x128xf32> to vector<32xf32>
    %223 = vector.shape_cast %222 : vector<32xf32> to vector<32x1xf32>
    %cst_88 = arith.constant 0.0454545468 : f32
    %224 = vector.broadcast %cst_88 : f32 to vector<32x1xf32>
    %225 = arith.mulf %223, %224 : vector<32x1xf32>
    %c336 = arith.constant 336 : index
    %c0_89 = arith.constant 0 : index
    %226 = vector.load %arg1[%c336, %c0_89] : memref<1760x128xf32, #tpu.memory_space<vmem>>, vector<32x1xf32>
    %c368 = arith.constant 368 : index
    %c0_90 = arith.constant 0 : index
    %227 = vector.load %arg1[%c368, %c0_90] : memref<1760x128xf32, #tpu.memory_space<vmem>>, vector<32x1xf32>
    %cst_91 = arith.constant 9.99999974E-6 : f32
    %228 = vector.broadcast %cst_91 : f32 to vector<32x1xf32>
    %229 = arith.addf %225, %228 : vector<32x1xf32>
    %230 = math.rsqrt %229 : vector<32x1xf32>
    %231 = arith.mulf %230, %226 : vector<32x1xf32>
    %232 = vector.broadcast %231 : vector<32x1xf32> to vector<32x128xf32>
    %233 = arith.mulf %218, %232 : vector<32x128xf32>
    %234 = vector.broadcast %227 : vector<32x1xf32> to vector<32x128xf32>
    %235 = arith.addf %233, %234 : vector<32x128xf32>
    %cst_92 = arith.constant 0.000000e+00 : f32
    %236 = vector.broadcast %cst_92 : f32 to vector<32x128xf32>
    %237 = arith.maximumf %235, %236 : vector<32x128xf32>
    %c400 = arith.constant 400 : index
    %c0_93 = arith.constant 0 : index
    %238 = vector.load %arg1[%c400, %c0_93] : memref<1760x128xf32, #tpu.memory_space<vmem>>, vector<96x32xf32>
    %cst_94 = arith.constant dense<0.000000e+00> : vector<96x128xf32>
    %239 = tpu.matmul %238, %237, %cst_94 {dimension_numbers = #tpu.dot_dimension_numbers<[1], [0], [0], [1], [0, 0, 1, 1], [], []>} : vector<96x32xf32>, vector<32x128xf32>, vector<96x128xf32> -> vector<96x128xf32>
    %240 = vector.extract_strided_slice %239 {offsets = [0, 0], sizes = [32, 128], strides = [1, 1]} : vector<96x128xf32> to vector<32x128xf32>
    %241 = vector.extract_strided_slice %239 {offsets = [32, 0], sizes = [32, 128], strides = [1, 1]} : vector<96x128xf32> to vector<32x128xf32>
    %c864_95 = arith.constant 864 : index
    %c0_96 = arith.constant 0 : index
    %242 = vector.load %arg1[%c864_95, %c0_96] : memref<1760x128xf32, #tpu.memory_space<vmem>>, vector<128x128xf32>
    %cst_97 = arith.constant dense<0.000000e+00> : vector<32x128xf32>
    %243 = tpu.matmul %241, %242, %cst_97 {dimension_numbers = #tpu.dot_dimension_numbers<[1], [0], [0], [1], [0, 0, 1, 1], [], []>} : vector<32x128xf32>, vector<128x128xf32>, vector<32x128xf32> -> vector<32x128xf32>
    %244 = arith.addf %240, %243 : vector<32x128xf32>
    %245 = vector.extract_strided_slice %239 {offsets = [64, 0], sizes = [32, 128], strides = [1, 1]} : vector<96x128xf32> to vector<32x128xf32>
    %c992_98 = arith.constant 992 : index
    %c0_99 = arith.constant 0 : index
    %246 = vector.load %arg1[%c992_98, %c0_99] : memref<1760x128xf32, #tpu.memory_space<vmem>>, vector<128x128xf32>
    %cst_100 = arith.constant dense<0.000000e+00> : vector<32x128xf32>
    %247 = tpu.matmul %245, %246, %cst_100 {dimension_numbers = #tpu.dot_dimension_numbers<[1], [0], [0], [1], [0, 0, 1, 1], [], []>} : vector<32x128xf32>, vector<128x128xf32>, vector<32x128xf32> -> vector<32x128xf32>
    %248 = arith.addf %244, %247 : vector<32x128xf32>
    %c9_i32 = arith.constant 9 : i32
    %249 = vector.broadcast %c9_i32 : i32 to vector<1x128xi32>
    %250 = arith.cmpi slt, %16, %249 : vector<1x128xi32>
    %251 = arith.extui %250 : vector<1x128xi1> to vector<1x128xi32>
    %252 = arith.sitofp %251 : vector<1x128xi32> to vector<1x128xf32>
    %253 = vector.broadcast %252 : vector<1x128xf32> to vector<32x128xf32>
    %254 = arith.mulf %248, %253 : vector<32x128xf32>
    %cst_101 = arith.constant dense<0.000000e+00> : vector<32xf32>
    %255 = vector.multi_reduction <add>, %254, %cst_101 [1] : vector<32x128xf32> to vector<32xf32>
    %256 = vector.shape_cast %255 : vector<32xf32> to vector<32x1xf32>
    %cst_102 = arith.constant 0.055555556 : f32
    %257 = vector.broadcast %cst_102 : f32 to vector<32x1xf32>
    %258 = arith.mulf %256, %257 : vector<32x1xf32>
    %259 = vector.broadcast %258 : vector<32x1xf32> to vector<32x128xf32>
    %260 = arith.subf %248, %259 : vector<32x128xf32>
    %261 = arith.mulf %260, %260 : vector<32x128xf32>
    %262 = vector.broadcast %252 : vector<1x128xf32> to vector<32x128xf32>
    %263 = arith.mulf %261, %262 : vector<32x128xf32>
    %cst_103 = arith.constant dense<0.000000e+00> : vector<32xf32>
    %264 = vector.multi_reduction <add>, %263, %cst_103 [1] : vector<32x128xf32> to vector<32xf32>
    %265 = vector.shape_cast %264 : vector<32xf32> to vector<32x1xf32>
    %cst_104 = arith.constant 0.055555556 : f32
    %266 = vector.broadcast %cst_104 : f32 to vector<32x1xf32>
    %267 = arith.mulf %265, %266 : vector<32x1xf32>
    %c496 = arith.constant 496 : index
    %c0_105 = arith.constant 0 : index
    %268 = vector.load %arg1[%c496, %c0_105] : memref<1760x128xf32, #tpu.memory_space<vmem>>, vector<32x1xf32>
    %c528 = arith.constant 528 : index
    %c0_106 = arith.constant 0 : index
    %269 = vector.load %arg1[%c528, %c0_106] : memref<1760x128xf32, #tpu.memory_space<vmem>>, vector<32x1xf32>
    %cst_107 = arith.constant 9.99999974E-6 : f32
    %270 = vector.broadcast %cst_107 : f32 to vector<32x1xf32>
    %271 = arith.addf %267, %270 : vector<32x1xf32>
    %272 = math.rsqrt %271 : vector<32x1xf32>
    %273 = arith.mulf %272, %268 : vector<32x1xf32>
    %274 = vector.broadcast %273 : vector<32x1xf32> to vector<32x128xf32>
    %275 = arith.mulf %260, %274 : vector<32x128xf32>
    %276 = vector.broadcast %269 : vector<32x1xf32> to vector<32x128xf32>
    %277 = arith.addf %275, %276 : vector<32x128xf32>
    %cst_108 = arith.constant 0.000000e+00 : f32
    %278 = vector.broadcast %cst_108 : f32 to vector<32x128xf32>
    %279 = arith.maximumf %277, %278 : vector<32x128xf32>
    %c560 = arith.constant 560 : index
    %c0_109 = arith.constant 0 : index
    %280 = vector.load %arg1[%c560, %c0_109] : memref<1760x128xf32, #tpu.memory_space<vmem>>, vector<32x32xf32>
    %cst_110 = arith.constant dense<0.000000e+00> : vector<32x128xf32>
    %281 = tpu.matmul %280, %279, %cst_110 {dimension_numbers = #tpu.dot_dimension_numbers<[1], [0], [0], [1], [0, 0, 1, 1], [], []>} : vector<32x32xf32>, vector<32x128xf32>, vector<32x128xf32> -> vector<32x128xf32>
    %282 = vector.extract_strided_slice %281 {offsets = [0, 0], sizes = [16, 128], strides = [1, 1]} : vector<32x128xf32> to vector<16x128xf32>
    %c1504 = arith.constant 1504 : index
    %c0_111 = arith.constant 0 : index
    %283 = vector.load %arg1[%c1504, %c0_111] : memref<1760x128xf32, #tpu.memory_space<vmem>>, vector<128x128xf32>
    %cst_112 = arith.constant dense<0.000000e+00> : vector<16x128xf32>
    %284 = tpu.matmul %282, %283, %cst_112 {dimension_numbers = #tpu.dot_dimension_numbers<[1], [0], [0], [1], [0, 0, 1, 1], [], []>} : vector<16x128xf32>, vector<128x128xf32>, vector<16x128xf32> -> vector<16x128xf32>
    %285 = vector.extract_strided_slice %281 {offsets = [16, 0], sizes = [16, 128], strides = [1, 1]} : vector<32x128xf32> to vector<16x128xf32>
    %c1632 = arith.constant 1632 : index
    %c0_113 = arith.constant 0 : index
    %286 = vector.load %arg1[%c1632, %c0_113] : memref<1760x128xf32, #tpu.memory_space<vmem>>, vector<128x128xf32>
    %cst_114 = arith.constant dense<0.000000e+00> : vector<16x128xf32>
    %287 = tpu.matmul %285, %286, %cst_114 {dimension_numbers = #tpu.dot_dimension_numbers<[1], [0], [0], [1], [0, 0, 1, 1], [], []>} : vector<16x128xf32>, vector<128x128xf32>, vector<16x128xf32> -> vector<16x128xf32>
    %288 = arith.addf %284, %287 : vector<16x128xf32>
    %c592 = arith.constant 592 : index
    %c0_115 = arith.constant 0 : index
    %289 = vector.load %arg1[%c592, %c0_115] : memref<1760x128xf32, #tpu.memory_space<vmem>>, vector<16x1xf32>
    %290 = vector.broadcast %289 : vector<16x1xf32> to vector<16x128xf32>
    %291 = arith.addf %288, %290 : vector<16x128xf32>
    %c1120 = arith.constant 1120 : index
    %c0_116 = arith.constant 0 : index
    %292 = vector.load %arg1[%c1120, %c0_116] : memref<1760x128xf32, #tpu.memory_space<vmem>>, vector<128x128xf32>
    %cst_117 = arith.constant dense<0.000000e+00> : vector<16x128xf32>
    %293 = tpu.matmul %190, %292, %cst_117 {dimension_numbers = #tpu.dot_dimension_numbers<[1], [0], [0], [1], [0, 0, 1, 1], [], []>} : vector<16x128xf32>, vector<128x128xf32>, vector<16x128xf32> -> vector<16x128xf32>
    %294 = tpu.concatenate %291, %293 in 0 : vector<16x128xf32>, vector<16x128xf32> -> vector<32x128xf32>
    %c608 = arith.constant 608 : index
    %c0_118 = arith.constant 0 : index
    %295 = vector.load %arg1[%c608, %c0_118] : memref<1760x128xf32, #tpu.memory_space<vmem>>, vector<48x32xf32>
    %cst_119 = arith.constant dense<0.000000e+00> : vector<48x128xf32>
    %296 = tpu.matmul %295, %294, %cst_119 {dimension_numbers = #tpu.dot_dimension_numbers<[1], [0], [0], [1], [0, 0, 1, 1], [], []>} : vector<48x32xf32>, vector<32x128xf32>, vector<48x128xf32> -> vector<48x128xf32>
    %297 = vector.extract_strided_slice %296 {offsets = [0, 0], sizes = [16, 128], strides = [1, 1]} : vector<48x128xf32> to vector<16x128xf32>
    %298 = vector.extract_strided_slice %296 {offsets = [16, 0], sizes = [16, 128], strides = [1, 1]} : vector<48x128xf32> to vector<16x128xf32>
    %c864_120 = arith.constant 864 : index
    %c0_121 = arith.constant 0 : index
    %299 = vector.load %arg1[%c864_120, %c0_121] : memref<1760x128xf32, #tpu.memory_space<vmem>>, vector<128x128xf32>
    %cst_122 = arith.constant dense<0.000000e+00> : vector<16x128xf32>
    %300 = tpu.matmul %298, %299, %cst_122 {dimension_numbers = #tpu.dot_dimension_numbers<[1], [0], [0], [1], [0, 0, 1, 1], [], []>} : vector<16x128xf32>, vector<128x128xf32>, vector<16x128xf32> -> vector<16x128xf32>
    %301 = arith.addf %297, %300 : vector<16x128xf32>
    %302 = vector.extract_strided_slice %296 {offsets = [32, 0], sizes = [16, 128], strides = [1, 1]} : vector<48x128xf32> to vector<16x128xf32>
    %c992_123 = arith.constant 992 : index
    %c0_124 = arith.constant 0 : index
    %303 = vector.load %arg1[%c992_123, %c0_124] : memref<1760x128xf32, #tpu.memory_space<vmem>>, vector<128x128xf32>
    %cst_125 = arith.constant dense<0.000000e+00> : vector<16x128xf32>
    %304 = tpu.matmul %302, %303, %cst_125 {dimension_numbers = #tpu.dot_dimension_numbers<[1], [0], [0], [1], [0, 0, 1, 1], [], []>} : vector<16x128xf32>, vector<128x128xf32>, vector<16x128xf32> -> vector<16x128xf32>
    %305 = arith.addf %301, %304 : vector<16x128xf32>
    %c16_i32 = arith.constant 16 : i32
    %306 = vector.broadcast %c16_i32 : i32 to vector<1x128xi32>
    %307 = arith.cmpi slt, %16, %306 : vector<1x128xi32>
    %308 = arith.extui %307 : vector<1x128xi1> to vector<1x128xi32>
    %309 = arith.sitofp %308 : vector<1x128xi32> to vector<1x128xf32>
    %310 = vector.broadcast %309 : vector<1x128xf32> to vector<16x128xf32>
    %311 = arith.mulf %305, %310 : vector<16x128xf32>
    %cst_126 = arith.constant dense<0.000000e+00> : vector<16xf32>
    %312 = vector.multi_reduction <add>, %311, %cst_126 [1] : vector<16x128xf32> to vector<16xf32>
    %313 = vector.shape_cast %312 : vector<16xf32> to vector<16x1xf32>
    %cst_127 = arith.constant 3.125000e-02 : f32
    %314 = vector.broadcast %cst_127 : f32 to vector<16x1xf32>
    %315 = arith.mulf %313, %314 : vector<16x1xf32>
    %316 = vector.broadcast %315 : vector<16x1xf32> to vector<16x128xf32>
    %317 = arith.subf %305, %316 : vector<16x128xf32>
    %318 = arith.mulf %317, %317 : vector<16x128xf32>
    %319 = vector.broadcast %309 : vector<1x128xf32> to vector<16x128xf32>
    %320 = arith.mulf %318, %319 : vector<16x128xf32>
    %cst_128 = arith.constant dense<0.000000e+00> : vector<16xf32>
    %321 = vector.multi_reduction <add>, %320, %cst_128 [1] : vector<16x128xf32> to vector<16xf32>
    %322 = vector.shape_cast %321 : vector<16xf32> to vector<16x1xf32>
    %cst_129 = arith.constant 3.125000e-02 : f32
    %323 = vector.broadcast %cst_129 : f32 to vector<16x1xf32>
    %324 = arith.mulf %322, %323 : vector<16x1xf32>
    %c656 = arith.constant 656 : index
    %c0_130 = arith.constant 0 : index
    %325 = vector.load %arg1[%c656, %c0_130] : memref<1760x128xf32, #tpu.memory_space<vmem>>, vector<16x1xf32>
    %c672 = arith.constant 672 : index
    %c0_131 = arith.constant 0 : index
    %326 = vector.load %arg1[%c672, %c0_131] : memref<1760x128xf32, #tpu.memory_space<vmem>>, vector<16x1xf32>
    %cst_132 = arith.constant 9.99999974E-6 : f32
    %327 = vector.broadcast %cst_132 : f32 to vector<16x1xf32>
    %328 = arith.addf %324, %327 : vector<16x1xf32>
    %329 = math.rsqrt %328 : vector<16x1xf32>
    %330 = arith.mulf %329, %325 : vector<16x1xf32>
    %331 = vector.broadcast %330 : vector<16x1xf32> to vector<16x128xf32>
    %332 = arith.mulf %317, %331 : vector<16x128xf32>
    %333 = vector.broadcast %326 : vector<16x1xf32> to vector<16x128xf32>
    %334 = arith.addf %332, %333 : vector<16x128xf32>
    %cst_133 = arith.constant 0.000000e+00 : f32
    %335 = vector.broadcast %cst_133 : f32 to vector<16x128xf32>
    %336 = arith.maximumf %334, %335 : vector<16x128xf32>
    %c688 = arith.constant 688 : index
    %c0_134 = arith.constant 0 : index
    %337 = vector.load %arg1[%c688, %c0_134] : memref<1760x128xf32, #tpu.memory_space<vmem>>, vector<48x16xf32>
    %cst_135 = arith.constant dense<0.000000e+00> : vector<48x128xf32>
    %338 = tpu.matmul %337, %336, %cst_135 {dimension_numbers = #tpu.dot_dimension_numbers<[1], [0], [0], [1], [0, 0, 1, 1], [], []>} : vector<48x16xf32>, vector<16x128xf32>, vector<48x128xf32> -> vector<48x128xf32>
    %339 = vector.extract_strided_slice %338 {offsets = [0, 0], sizes = [16, 128], strides = [1, 1]} : vector<48x128xf32> to vector<16x128xf32>
    %340 = vector.extract_strided_slice %338 {offsets = [16, 0], sizes = [16, 128], strides = [1, 1]} : vector<48x128xf32> to vector<16x128xf32>
    %c864_136 = arith.constant 864 : index
    %c0_137 = arith.constant 0 : index
    %341 = vector.load %arg1[%c864_136, %c0_137] : memref<1760x128xf32, #tpu.memory_space<vmem>>, vector<128x128xf32>
    %cst_138 = arith.constant dense<0.000000e+00> : vector<16x128xf32>
    %342 = tpu.matmul %340, %341, %cst_138 {dimension_numbers = #tpu.dot_dimension_numbers<[1], [0], [0], [1], [0, 0, 1, 1], [], []>} : vector<16x128xf32>, vector<128x128xf32>, vector<16x128xf32> -> vector<16x128xf32>
    %343 = arith.addf %339, %342 : vector<16x128xf32>
    %344 = vector.extract_strided_slice %338 {offsets = [32, 0], sizes = [16, 128], strides = [1, 1]} : vector<48x128xf32> to vector<16x128xf32>
    %c992_139 = arith.constant 992 : index
    %c0_140 = arith.constant 0 : index
    %345 = vector.load %arg1[%c992_139, %c0_140] : memref<1760x128xf32, #tpu.memory_space<vmem>>, vector<128x128xf32>
    %cst_141 = arith.constant dense<0.000000e+00> : vector<16x128xf32>
    %346 = tpu.matmul %344, %345, %cst_141 {dimension_numbers = #tpu.dot_dimension_numbers<[1], [0], [0], [1], [0, 0, 1, 1], [], []>} : vector<16x128xf32>, vector<128x128xf32>, vector<16x128xf32> -> vector<16x128xf32>
    %347 = arith.addf %343, %346 : vector<16x128xf32>
    %c14_i32 = arith.constant 14 : i32
    %348 = vector.broadcast %c14_i32 : i32 to vector<1x128xi32>
    %349 = arith.cmpi slt, %16, %348 : vector<1x128xi32>
    %350 = arith.extui %349 : vector<1x128xi1> to vector<1x128xi32>
    %351 = arith.sitofp %350 : vector<1x128xi32> to vector<1x128xf32>
    %352 = vector.broadcast %351 : vector<1x128xf32> to vector<16x128xf32>
    %353 = arith.mulf %347, %352 : vector<16x128xf32>
    %cst_142 = arith.constant dense<0.000000e+00> : vector<16xf32>
    %354 = vector.multi_reduction <add>, %353, %cst_142 [1] : vector<16x128xf32> to vector<16xf32>
    %355 = vector.shape_cast %354 : vector<16xf32> to vector<16x1xf32>
    %cst_143 = arith.constant 0.0357142873 : f32
    %356 = vector.broadcast %cst_143 : f32 to vector<16x1xf32>
    %357 = arith.mulf %355, %356 : vector<16x1xf32>
    %358 = vector.broadcast %357 : vector<16x1xf32> to vector<16x128xf32>
    %359 = arith.subf %347, %358 : vector<16x128xf32>
    %360 = arith.mulf %359, %359 : vector<16x128xf32>
    %361 = vector.broadcast %351 : vector<1x128xf32> to vector<16x128xf32>
    %362 = arith.mulf %360, %361 : vector<16x128xf32>
    %cst_144 = arith.constant dense<0.000000e+00> : vector<16xf32>
    %363 = vector.multi_reduction <add>, %362, %cst_144 [1] : vector<16x128xf32> to vector<16xf32>
    %364 = vector.shape_cast %363 : vector<16xf32> to vector<16x1xf32>
    %cst_145 = arith.constant 0.0357142873 : f32
    %365 = vector.broadcast %cst_145 : f32 to vector<16x1xf32>
    %366 = arith.mulf %364, %365 : vector<16x1xf32>
    %c736 = arith.constant 736 : index
    %c0_146 = arith.constant 0 : index
    %367 = vector.load %arg1[%c736, %c0_146] : memref<1760x128xf32, #tpu.memory_space<vmem>>, vector<16x1xf32>
    %c752 = arith.constant 752 : index
    %c0_147 = arith.constant 0 : index
    %368 = vector.load %arg1[%c752, %c0_147] : memref<1760x128xf32, #tpu.memory_space<vmem>>, vector<16x1xf32>
    %cst_148 = arith.constant 9.99999974E-6 : f32
    %369 = vector.broadcast %cst_148 : f32 to vector<16x1xf32>
    %370 = arith.addf %366, %369 : vector<16x1xf32>
    %371 = math.rsqrt %370 : vector<16x1xf32>
    %372 = arith.mulf %371, %367 : vector<16x1xf32>
    %373 = vector.broadcast %372 : vector<16x1xf32> to vector<16x128xf32>
    %374 = arith.mulf %359, %373 : vector<16x128xf32>
    %375 = vector.broadcast %368 : vector<16x1xf32> to vector<16x128xf32>
    %376 = arith.addf %374, %375 : vector<16x128xf32>
    %cst_149 = arith.constant 0.000000e+00 : f32
    %377 = vector.broadcast %cst_149 : f32 to vector<16x128xf32>
    %378 = arith.maximumf %376, %377 : vector<16x128xf32>
    %c768 = arith.constant 768 : index
    %c0_150 = arith.constant 0 : index
    %379 = vector.load %arg1[%c768, %c0_150] : memref<1760x128xf32, #tpu.memory_space<vmem>>, vector<16x16xf32>
    %cst_151 = arith.constant dense<0.000000e+00> : vector<16x128xf32>
    %380 = tpu.matmul %379, %378, %cst_151 {dimension_numbers = #tpu.dot_dimension_numbers<[1], [0], [0], [1], [0, 0, 1, 1], [], []>} : vector<16x16xf32>, vector<16x128xf32>, vector<16x128xf32> -> vector<16x128xf32>
    %381 = vector.extract_strided_slice %380 {offsets = [0, 0], sizes = [8, 128], strides = [1, 1]} : vector<16x128xf32> to vector<8x128xf32>
    %c1504_152 = arith.constant 1504 : index
    %c0_153 = arith.constant 0 : index
    %382 = vector.load %arg1[%c1504_152, %c0_153] : memref<1760x128xf32, #tpu.memory_space<vmem>>, vector<128x128xf32>
    %cst_154 = arith.constant dense<0.000000e+00> : vector<8x128xf32>
    %383 = tpu.matmul %381, %382, %cst_154 {dimension_numbers = #tpu.dot_dimension_numbers<[1], [0], [0], [1], [0, 0, 1, 1], [], []>} : vector<8x128xf32>, vector<128x128xf32>, vector<8x128xf32> -> vector<8x128xf32>
    %384 = vector.extract_strided_slice %380 {offsets = [8, 0], sizes = [8, 128], strides = [1, 1]} : vector<16x128xf32> to vector<8x128xf32>
    %c1632_155 = arith.constant 1632 : index
    %c0_156 = arith.constant 0 : index
    %385 = vector.load %arg1[%c1632_155, %c0_156] : memref<1760x128xf32, #tpu.memory_space<vmem>>, vector<128x128xf32>
    %cst_157 = arith.constant dense<0.000000e+00> : vector<8x128xf32>
    %386 = tpu.matmul %384, %385, %cst_157 {dimension_numbers = #tpu.dot_dimension_numbers<[1], [0], [0], [1], [0, 0, 1, 1], [], []>} : vector<8x128xf32>, vector<128x128xf32>, vector<8x128xf32> -> vector<8x128xf32>
    %387 = arith.addf %383, %386 : vector<8x128xf32>
    %c784 = arith.constant 784 : index
    %c0_158 = arith.constant 0 : index
    %388 = vector.load %arg1[%c784, %c0_158] : memref<1760x128xf32, #tpu.memory_space<vmem>>, vector<8x1xf32>
    %389 = vector.broadcast %388 : vector<8x1xf32> to vector<8x128xf32>
    %390 = arith.addf %387, %389 : vector<8x128xf32>
    %c1248 = arith.constant 1248 : index
    %c0_159 = arith.constant 0 : index
    %391 = vector.load %arg1[%c1248, %c0_159] : memref<1760x128xf32, #tpu.memory_space<vmem>>, vector<128x128xf32>
    %cst_160 = arith.constant dense<0.000000e+00> : vector<8x128xf32>
    %392 = tpu.matmul %101, %391, %cst_160 {dimension_numbers = #tpu.dot_dimension_numbers<[1], [0], [0], [1], [0, 0, 1, 1], [], []>} : vector<8x128xf32>, vector<128x128xf32>, vector<8x128xf32> -> vector<8x128xf32>
    %393 = tpu.concatenate %390, %392 in 0 : vector<8x128xf32>, vector<8x128xf32> -> vector<16x128xf32>
    %c792 = arith.constant 792 : index
    %c0_161 = arith.constant 0 : index
    %394 = vector.load %arg1[%c792, %c0_161] : memref<1760x128xf32, #tpu.memory_space<vmem>>, vector<24x16xf32>
    %cst_162 = arith.constant dense<0.000000e+00> : vector<24x128xf32>
    %395 = tpu.matmul %394, %393, %cst_162 {dimension_numbers = #tpu.dot_dimension_numbers<[1], [0], [0], [1], [0, 0, 1, 1], [], []>} : vector<24x16xf32>, vector<16x128xf32>, vector<24x128xf32> -> vector<24x128xf32>
    %396 = vector.extract_strided_slice %395 {offsets = [0, 0], sizes = [8, 128], strides = [1, 1]} : vector<24x128xf32> to vector<8x128xf32>
    %397 = vector.extract_strided_slice %395 {offsets = [8, 0], sizes = [8, 128], strides = [1, 1]} : vector<24x128xf32> to vector<8x128xf32>
    %c864_163 = arith.constant 864 : index
    %c0_164 = arith.constant 0 : index
    %398 = vector.load %arg1[%c864_163, %c0_164] : memref<1760x128xf32, #tpu.memory_space<vmem>>, vector<128x128xf32>
    %cst_165 = arith.constant dense<0.000000e+00> : vector<8x128xf32>
    %399 = tpu.matmul %397, %398, %cst_165 {dimension_numbers = #tpu.dot_dimension_numbers<[1], [0], [0], [1], [0, 0, 1, 1], [], []>} : vector<8x128xf32>, vector<128x128xf32>, vector<8x128xf32> -> vector<8x128xf32>
    %400 = arith.addf %396, %399 : vector<8x128xf32>
    %401 = vector.extract_strided_slice %395 {offsets = [16, 0], sizes = [8, 128], strides = [1, 1]} : vector<24x128xf32> to vector<8x128xf32>
    %c992_166 = arith.constant 992 : index
    %c0_167 = arith.constant 0 : index
    %402 = vector.load %arg1[%c992_166, %c0_167] : memref<1760x128xf32, #tpu.memory_space<vmem>>, vector<128x128xf32>
    %cst_168 = arith.constant dense<0.000000e+00> : vector<8x128xf32>
    %403 = tpu.matmul %401, %402, %cst_168 {dimension_numbers = #tpu.dot_dimension_numbers<[1], [0], [0], [1], [0, 0, 1, 1], [], []>} : vector<8x128xf32>, vector<128x128xf32>, vector<8x128xf32> -> vector<8x128xf32>
    %404 = arith.addf %400, %403 : vector<8x128xf32>
    %c26_i32_169 = arith.constant 26 : i32
    %405 = vector.broadcast %c26_i32_169 : i32 to vector<1x128xi32>
    %406 = arith.cmpi slt, %16, %405 : vector<1x128xi32>
    %407 = arith.extui %406 : vector<1x128xi1> to vector<1x128xi32>
    %408 = arith.sitofp %407 : vector<1x128xi32> to vector<1x128xf32>
    %409 = vector.broadcast %408 : vector<1x128xf32> to vector<8x128xf32>
    %410 = arith.mulf %404, %409 : vector<8x128xf32>
    %cst_170 = arith.constant dense<0.000000e+00> : vector<8xf32>
    %411 = vector.multi_reduction <add>, %410, %cst_170 [1] : vector<8x128xf32> to vector<8xf32>
    %412 = vector.shape_cast %411 : vector<8xf32> to vector<8x1xf32>
    %cst_171 = arith.constant 0.0192307699 : f32
    %413 = vector.broadcast %cst_171 : f32 to vector<8x1xf32>
    %414 = arith.mulf %412, %413 : vector<8x1xf32>
    %415 = vector.broadcast %414 : vector<8x1xf32> to vector<8x128xf32>
    %416 = arith.subf %404, %415 : vector<8x128xf32>
    %417 = arith.mulf %416, %416 : vector<8x128xf32>
    %418 = vector.broadcast %408 : vector<1x128xf32> to vector<8x128xf32>
    %419 = arith.mulf %417, %418 : vector<8x128xf32>
    %cst_172 = arith.constant dense<0.000000e+00> : vector<8xf32>
    %420 = vector.multi_reduction <add>, %419, %cst_172 [1] : vector<8x128xf32> to vector<8xf32>
    %421 = vector.shape_cast %420 : vector<8xf32> to vector<8x1xf32>
    %cst_173 = arith.constant 0.0192307699 : f32
    %422 = vector.broadcast %cst_173 : f32 to vector<8x1xf32>
    %423 = arith.mulf %421, %422 : vector<8x1xf32>
    %c816 = arith.constant 816 : index
    %c0_174 = arith.constant 0 : index
    %424 = vector.load %arg1[%c816, %c0_174] : memref<1760x128xf32, #tpu.memory_space<vmem>>, vector<8x1xf32>
    %c824 = arith.constant 824 : index
    %c0_175 = arith.constant 0 : index
    %425 = vector.load %arg1[%c824, %c0_175] : memref<1760x128xf32, #tpu.memory_space<vmem>>, vector<8x1xf32>
    %cst_176 = arith.constant 9.99999974E-6 : f32
    %426 = vector.broadcast %cst_176 : f32 to vector<8x1xf32>
    %427 = arith.addf %423, %426 : vector<8x1xf32>
    %428 = math.rsqrt %427 : vector<8x1xf32>
    %429 = arith.mulf %428, %424 : vector<8x1xf32>
    %430 = vector.broadcast %429 : vector<8x1xf32> to vector<8x128xf32>
    %431 = arith.mulf %416, %430 : vector<8x128xf32>
    %432 = vector.broadcast %425 : vector<8x1xf32> to vector<8x128xf32>
    %433 = arith.addf %431, %432 : vector<8x128xf32>
    %cst_177 = arith.constant 0.000000e+00 : f32
    %434 = vector.broadcast %cst_177 : f32 to vector<8x128xf32>
    %435 = arith.maximumf %433, %434 : vector<8x128xf32>
    %c832 = arith.constant 832 : index
    %c0_178 = arith.constant 0 : index
    %436 = vector.load %arg1[%c832, %c0_178] : memref<1760x128xf32, #tpu.memory_space<vmem>>, vector<24x8xf32>
    %cst_179 = arith.constant dense<0.000000e+00> : vector<24x128xf32>
    %437 = tpu.matmul %436, %435, %cst_179 {dimension_numbers = #tpu.dot_dimension_numbers<[1], [0], [0], [1], [0, 0, 1, 1], [], []>} : vector<24x8xf32>, vector<8x128xf32>, vector<24x128xf32> -> vector<24x128xf32>
    %438 = vector.extract_strided_slice %437 {offsets = [0, 0], sizes = [8, 128], strides = [1, 1]} : vector<24x128xf32> to vector<8x128xf32>
    %439 = vector.extract_strided_slice %437 {offsets = [8, 0], sizes = [8, 128], strides = [1, 1]} : vector<24x128xf32> to vector<8x128xf32>
    %c864_180 = arith.constant 864 : index
    %c0_181 = arith.constant 0 : index
    %440 = vector.load %arg1[%c864_180, %c0_181] : memref<1760x128xf32, #tpu.memory_space<vmem>>, vector<128x128xf32>
    %cst_182 = arith.constant dense<0.000000e+00> : vector<8x128xf32>
    %441 = tpu.matmul %439, %440, %cst_182 {dimension_numbers = #tpu.dot_dimension_numbers<[1], [0], [0], [1], [0, 0, 1, 1], [], []>} : vector<8x128xf32>, vector<128x128xf32>, vector<8x128xf32> -> vector<8x128xf32>
    %442 = arith.addf %438, %441 : vector<8x128xf32>
    %443 = vector.extract_strided_slice %437 {offsets = [16, 0], sizes = [8, 128], strides = [1, 1]} : vector<24x128xf32> to vector<8x128xf32>
    %c992_183 = arith.constant 992 : index
    %c0_184 = arith.constant 0 : index
    %444 = vector.load %arg1[%c992_183, %c0_184] : memref<1760x128xf32, #tpu.memory_space<vmem>>, vector<128x128xf32>
    %cst_185 = arith.constant dense<0.000000e+00> : vector<8x128xf32>
    %445 = tpu.matmul %443, %444, %cst_185 {dimension_numbers = #tpu.dot_dimension_numbers<[1], [0], [0], [1], [0, 0, 1, 1], [], []>} : vector<8x128xf32>, vector<128x128xf32>, vector<8x128xf32> -> vector<8x128xf32>
    %446 = arith.addf %442, %445 : vector<8x128xf32>
    %c856 = arith.constant 856 : index
    %c0_186 = arith.constant 0 : index
    %447 = vector.load %arg1[%c856, %c0_186] : memref<1760x128xf32, #tpu.memory_space<vmem>>, vector<8x1xf32>
    %448 = vector.broadcast %447 : vector<8x1xf32> to vector<8x128xf32>
    %449 = arith.addf %446, %448 : vector<8x128xf32>
    %c0_187 = arith.constant 0 : index
    %c0_188 = arith.constant 0 : index
    %450 = vector.load %arg2[%c0_187, %c0_188] : memref<8x128xf32, #tpu.memory_space<vmem>>, vector<8x128xf32>
    tpu.vector_store %arg2[%c0_187, %c0_188], %449 {strides = array<i32>} : memref<8x128xf32, #tpu.memory_space<vmem>>, vector<8x128xf32>,
    return
  }
}

</mosaic_0001>

<bundles_post_ra>
// kernel: tpu_custom_call.1
= control target key start
LH: loop header
LB: loop body
LE: loop exit
PB: predicated region body
PF: predicated region fallthrough
CT: control target
= control target key end

     0   :  { %7 = vsyncpa [#allocation3], 0  ;;  %s8223_s0 = inlined_call_operand.hbm [shape: f32[4,128], index: 0, kind: input, shape index: {}]   ;;  %s8224_s1 = inlined_call_operand.hbm [shape: f32[1760,128], index: 1, kind: input, shape index: {}]   ;;  %s8225_s2 = inlined_call_operand.hbm [shape: f32[8,128], index: 2, kind: output, shape index: {}]  }
   0x1   :  { %8 = vsyncpa [#allocation6], 0 }
   0x2   :  { %9 = vsyncpa [#allocation4], 0  ;;  %s7415_s9 = smov [#allocation2]   ;;  %s7416_s11 = smov [#allocation5]  }
   0x3   :  { %s16_s10 = sshll.u32 %s7415_s9, 4  ;;  %s25_s12 = sshll.u32 %s7416_s11, 4  ;;  %s17_s10 = int_to_ptr.vmem [resolvable:$true] %s16_s10  ;;  %s7439_s12 = int_to_ptr.vmem [resolvable:$true] %s25_s12 }
   0x4   :  { %s7343_s15 = scalar_lea.hbm %s8223_s0, 64 }
   0x5   :  { %p7344_p0 = scmp.ne.s32.totalorder %s8223_s0, %s7343_s15  ;;  %p7347_p1 = scmp.lt.u32.totalorder %s7343_s15, %s8223_s0 }
   0x7   :  { %p7349_p2 = pnand %p7347_p1, %p7344_p0 }
   0x9   :  { %7352 = shalt.err (!%p7349_p2)
}
   0xa   :  { %s7353_s20 = scalar_lea.vmem %s17_s10, 64  ;;  %p7358_p4 = scmp.lt.s32.totalorder %s17_s10, %s17_s10 }
   0xb   :  { %p7354_p3 = scmp.ne.s32.totalorder %s17_s10, %s7353_s20  ;;  %p7359_p5 = scmp.lt.s32.totalorder %s7353_s20, %s7353_s20 }
   0xd   :  { %p7360_p6 = por %p7359_p5, %p7358_p4 }
   0xf   :  { %p7361_p7 = pnand %p7360_p6, %p7354_p3 }
  0x11   :  { %7364 = shalt.err (!%p7361_p7)
}
  0x12   :  { %19 = dma.hbm_to_vmem [thread:$0]  %s8223_s0, 64, %s17_s10, [#allocation3]  }
  0x13   :  { %s7365_s25 = scalar_lea.hbm %s8224_s1, 28160 }
  0x14   :  { %p7366_p8 = scmp.ne.s32.totalorder %s8224_s1, %s7365_s25  ;;  %p7369_p9 = scmp.lt.u32.totalorder %s7365_s25, %s8224_s1 }
  0x16   :  { %p7371_p10 = pnand %p7369_p9, %p7366_p8 }
  0x18   :  { %7374 = shalt.err (!%p7371_p10)
}
  0x19   :  { %s7375_s30 = scalar_lea.vmem %s7439_s12, 28160  ;;  %p7380_p12 = scmp.lt.s32.totalorder %s7439_s12, %s7439_s12 }
  0x1a   :  { %p7376_p11 = scmp.ne.s32.totalorder %s7439_s12, %s7375_s30  ;;  %p7381_p13 = scmp.lt.s32.totalorder %s7375_s30, %s7375_s30 }
  0x1c   :  { %p7382_p0 = por %p7381_p13, %p7380_p12 }
  0x1e   :  { %p7383_p1 = pnand %p7382_p0, %p7376_p11 }
  0x20   :  { %7386 = shalt.err (!%p7383_p1)
}
  0x21   :  { %s7417_s0 = smov 128   ;;  %s7418_s3 = smov 8  }
  0x22   :  { %31 = dma.hbm_to_vmem [thread:$0]  %s8224_s1, 28160, %s7439_s12, [#allocation6], %s7417_s0, %s7417_s0, %s7418_s3  }
  0x23   :  { %7409 = dma.done.wait [#allocation3], 64  }
  0x24   :  { %7410 = vsyncadd [#allocation3], 4294967232 }
  0x25   :  { %7411 = dma.done.wait [#allocation6], 28160  }
  0x26   :  { %7412 = vsyncadd [#allocation6], 4294939136  ;;  %v7419_v0 = vmov 0.0   ;;  %vm7420_vm0 = vmmov 0   ;;  %vm66_vm1 = vcmask 1043456   ;;  %vm56_vm2 = vcmask 31744  }
  0x27   :  { %5118 = vmatprep.subr.mxu0 %v7419_v0  ;;  %5120 = vmatprep.mubr.msk.f32.mxu0 %vm7420_vm0, %v7419_v0  ;;  %v52_v1 = vld [vmem:[#allocation2] sm:$0xf]  ;;  %v53_v2 = vld [vmem:[#allocation5] sm:$0xff]  ;;  %v151_v4 = vld [vmem:[#allocation5 + $0x368] sm:$0xff]  ;;  %v7421_v5 = vmov 0.0|0.0   ;;  %v38_v58 = vlaneseq  ;;  %vm358_vm4 = vcmask 64512  }
  0x28   :  { %5199 = vmatprep.subr.mxu1 %v7419_v0  ;;  %5201 = vmatprep.mubr.msk.f32.mxu1 %vm7420_vm0, %v7419_v0  ;;  %v150_v3 = vld [vmem:[#allocation5 + $0x360] sm:$0xff]  ;;  %v152_v7 = vld [vmem:[#allocation5 + $0x370] sm:$0xff]  ;;  %v153_v8 = vld [vmem:[#allocation5 + $0x378] sm:$0xff]  ;;  %vm1116_vm7 = vcmask 130048   ;;  %vm2073_vm10 = vcmask 261120   ;;  %s7423_s1 = smov [#allocation7]  }
  0x29   :  { %5119 = vmatpush3.msk.msra.mxu0 %vm66_vm1, %v52_v1  ;;  %v7478_v6 = vpack.c.bf16 %v151_v4, %v150_v3  ;;  %v54_v9 = vld [vmem:[#allocation5 + $0x8] sm:$0xff]  ;;  %v7483_v10 = vpack.c.bf16 %v153_v8, %v152_v7  ;;  %v154_v11 = vld [vmem:[#allocation5 + $0x380] sm:$0xff]  ;;  %v55_v13 = vld [vmem:[#allocation5 + $0x10] sm:$0xff]  ;;  %v39_v59 = vand.u32 127, %v38_v58  ;;  %s4406_s6 = sshll.u32 %s7423_s1, 4  ;;  %s4407_s6 = int_to_ptr.vmem [resolvable:$true] %s4406_s6 }
  0x2a   :  { %5121 = vmatmul.mubr.msk.f32.vlgmr.msra.gmra.mrb[0].mxu0 %vm56_vm2, %v53_v2  ;;  %6349 = vmatprep.subr.bf16.mxu0 %v7421_v5  ;;  %v155_v12 = vld [vmem:[#allocation5 + $0x388] sm:$0xff]  ;;  %v156_v15 = vld [vmem:[#allocation5 + $0x390] sm:$0xff]  ;;  %v157_v16 = vld [vmem:[#allocation5 + $0x398] sm:$0xff]  ;;  %s7387_s7 = scalar_lea.vmem %s4407_s6, 128  ;;  %p7392_p3 = scmp.lt.s32.totalorder %s4407_s6, %s4407_s6 }
  0x2b   :  { %5123 = vmatprep.mubr.msk.f32.mxu0 %vm7420_vm0, %v7419_v0  ;;  %6351 = vmatpush3.bf16.msra.mxu0 %v7478_v6  ;;  %v7490_v14 = vpack.c.bf16 %v155_v12, %v154_v11  ;;  %v7497_v17 = vpack.c.bf16 %v157_v16, %v156_v15  ;;  %v158_v18 = vld [vmem:[#allocation5 + $0x3a0] sm:$0xff]  ;;  %v159_v19 = vld [vmem:[#allocation5 + $0x3a8] sm:$0xff]  ;;  %v160_v21 = vld [vmem:[#allocation5 + $0x3b0] sm:$0xff]  ;;  %v7569_v60 = vand.u32 63, %v39_v59  ;;  %p7388_p2 = scmp.ne.s32.totalorder %s4407_s6, %s7387_s7  ;;  %p7393_p4 = scmp.lt.s32.totalorder %s7387_s7, %s7387_s7 }
  0x2c   :  { %6352 = vmatprep.subr.bf16.mxu0 %v7421_v5  ;;  %v7501_v20 = vpack.c.bf16 %v159_v19, %v158_v18  ;;  %v161_v22 = vld [vmem:[#allocation5 + $0x3b8] sm:$0xff]  ;;  %v162_v24 = vld [vmem:[#allocation5 + $0x3c0] sm:$0xff]  ;;  %v163_v25 = vld [vmem:[#allocation5 + $0x3c8] sm:$0xff] }
  0x2d   :  { %v7505_v23 = vpack.c.bf16 %v161_v22, %v160_v21  ;;  %v7509_v26 = vpack.c.bf16 %v163_v25, %v162_v24  ;;  %v164_v27 = vld [vmem:[#allocation5 + $0x3d0] sm:$0xff]  ;;  %v165_v28 = vld [vmem:[#allocation5 + $0x3d8] sm:$0xff]  ;;  %v237_v30 = vld [vmem:[#allocation5 + $0x3e0] sm:$0xff]  ;;  %vm324_vm3 = vcmp.lt.s32.totalorder %v7569_v60, 62  ;;  %vm590_vm5 = vcmp.lt.s32.totalorder %v7569_v60, 60  ;;  %p7394_p5 = por %p7393_p4, %p7392_p3 }
  0x2e   :  { %5124 = vmatmul.mubr.msk.f32.gmra.mrb[2].mxu0 %vm56_vm2, %v54_v9  ;;  %v7513_v29 = vpack.c.bf16 %v165_v28, %v164_v27  ;;  %v238_v31 = vld [vmem:[#allocation5 + $0x3e8] sm:$0xff]  ;;  %v239_v33 = vld [vmem:[#allocation5 + $0x3f0] sm:$0xff]  ;;  %v240_v34 = vld [vmem:[#allocation5 + $0x3f8] sm:$0xff]  ;;  %v4420_v61 = vsel %vm324_vm3, 1.0, %v7419_v0  ;;  %v7422_v9 = vmov 0   ;;  %vm1051_vm6 = vcmp.lt.s32.totalorder %v7569_v60, 28 }
  0x2f   :  { %5126 = vmatprep.mubr.msk.f32.mxu0 %vm7420_vm0, %v7419_v0  ;;  %6354 = vmatpush3.bf16.msra.mxu0 %v7483_v10  ;;  %v7518_v32 = vpack.c.bf16 %v238_v31, %v237_v30  ;;  %v7521_v37 = vpack.c.bf16 %v240_v34, %v239_v33  ;;  %v241_v38 = vld [vmem:[#allocation5 + $0x400] sm:$0xff]  ;;  %v242_v39 = vld [vmem:[#allocation5 + $0x408] sm:$0xff]  ;;  %v243_v43 = vld [vmem:[#allocation5 + $0x410] sm:$0xff]  ;;  %vm1384_vm8 = vcmp.lt.s32.totalorder %v7569_v60, 26  ;;  %vm1946_vm9 = vcmp.lt.s32.totalorder %v7569_v60, 11  ;;  %p7395_p6 = pnand %p7394_p5, %p7388_p2 }
  0x30   :  { %6355 = vmatprep.subr.bf16.mxu0 %v7421_v5  ;;  %v7527_v42 = vpack.c.bf16 %v242_v39, %v241_v38  ;;  %v244_v44 = vld [vmem:[#allocation5 + $0x418] sm:$0xff]  ;;  %v245_v46 = vld [vmem:[#allocation5 + $0x420] sm:$0xff]  ;;  %v246_v47 = vld [vmem:[#allocation5 + $0x428] sm:$0xff]  ;;  %7303 = vset.pattern.permute.xlu1 %v7422_v9  ;;  %v4424_v38 = vsel %vm590_vm5, 1.0, %v7419_v0  ;;  %vm2413_vm11 = vcmp.lt.s32.totalorder %v7569_v60, 9  ;;  %vm3189_vm12 = vcmp.lt.s32.totalorder %v7569_v60, 16 }
  0x31   :  { %v7531_v45 = vpack.c.bf16 %v244_v44, %v243_v43  ;;  %v7535_v48 = vpack.c.bf16 %v246_v47, %v245_v46  ;;  %v247_v49 = vld [vmem:[#allocation5 + $0x430] sm:$0xff]  ;;  %v248_v50 = vld [vmem:[#allocation5 + $0x438] sm:$0xff]  ;;  %v249_v52 = vld [vmem:[#allocation5 + $0x440] sm:$0xff]  ;;  %7304 = vset.pattern.permute.xlu0 %v7422_v9  ;;  %vm3521_vm13 = vcmp.lt.s32.totalorder %v7569_v60, 14 }
  0x32   :  { %5127 = vmatmul.mubr.msk.f32.gmra.mrb[4].mxu0 %vm56_vm2, %v55_v13  ;;  %v7539_v51 = vpack.c.bf16 %v248_v50, %v247_v49  ;;  %v250_v53 = vld [vmem:[#allocation5 + $0x448] sm:$0xff]  ;;  %v251_v55 = vld [vmem:[#allocation5 + $0x450] sm:$0xff]  ;;  %v252_v56 = vld [vmem:[#allocation5 + $0x458] sm:$0xff] }
  0x33   :  { %5161 = vmatprep.mubr.msk.f32.mxu0 %vm7420_vm0, %v7419_v0  ;;  %6357 = vmatpush3.bf16.msra.mxu0 %v7490_v14  ;;  %v7543_v54 = vpack.c.bf16 %v250_v53, %v249_v52  ;;  %v7547_v57 = vpack.c.bf16 %v252_v56, %v251_v55  ;;  %v337_v15 = vld [vmem:[#allocation5 + $0x18] sm:$0xff]  ;;  %v338_v19 = vld [vmem:[#allocation5 + $0x20] sm:$0xff]  ;;  %v355_v28 = vld [vmem:[#allocation5 + $0x28] sm:$0xff] }
  0x34   :  { %6358 = vmatprep.subr.bf16.mxu0 %v7421_v5  ;;  %v356_v30 = vld [vmem:[#allocation5 + $0x30] sm:$0xff]  ;;  %v357_v31 = vld [vmem:[#allocation5 + $0x38] sm:$0xff]  ;;  %v604_v50 = vld [vmem:[#allocation5 + $0x48] sm:$0xff] }
  0x35   :  { %v603_v56 = vld [vmem:[#allocation5 + $0x40] sm:$0xff]  ;;  %v698_v9 = vld [vmem:[#allocation5 + $0x590] sm:$0xff] }
  0x37   :  { %6360 = vmatpush3.bf16.msra.mxu0 %v7497_v17 }
  0x38   :  { %6361 = vmatprep.subr.bf16.mxu0 %v7421_v5 }
  0x3b   :  { %6363 = vmatpush3.bf16.msra.mxu0 %v7501_v20 }
  0x3c   :  { %6364 = vmatprep.subr.bf16.mxu0 %v7421_v5 }
  0x3f   :  { %6366 = vmatpush3.bf16.msra.mxu0 %v7505_v23 }
  0x40   :  { %6367 = vmatprep.subr.bf16.mxu0 %v7421_v5 }
  0x43   :  { %6369 = vmatpush3.bf16.msra.mxu0 %v7509_v26 }
  0x44   :  { %6370 = vmatprep.subr.bf16.mxu0 %v7421_v5 }
  0x47   :  { %6372 = vmatpush3.bf16.msra.mxu0 %v7513_v29 }
  0x48   :  { %6373 = vmatprep.subr.bf16.mxu0 %v7421_v5 }
 0x101   :  { %v141_v35 = vpop.f32.mrb[2].mxu0 }
 0x102   :  { %v5125_v36 = vpop.f32.mrb[3].mxu0  ;;  %5162 = vmatmul.mubr.f32.vlgmr.msra.gmra.mrb[0].mxu0 %v141_v35 }
 0x103   :  { %6375 = vmatpush3.bf16.msra.mxu0 %v7518_v32  ;;  %5196 = vmatprep.mubr.msk.f32.mxu0 %vm7420_vm0, %v7419_v0 }
 0x104   :  { %6376 = vmatprep.subr.bf16.mxu0 %v7421_v5 }
 0x105   :  { %v146_v40 = vpop.f32.mrb[4].mxu0 }
 0x106   :  { %v5128_v41 = vpop.f32.mrb[5].mxu0 }
 0x107   :  { %6378 = vmatpush3.bf16.msra.mxu0 %v7521_v37 }
 0x108   :  { %6379 = vmatprep.subr.bf16.mxu0 %v7421_v5 }
 0x10b   :  { %6381 = vmatpush3.bf16.msra.mxu0 %v7527_v42 }
 0x10c   :  { %6382 = vmatprep.subr.bf16.mxu0 %v7421_v5 }
 0x10f   :  { %6384 = vmatpush3.bf16.msra.mxu0 %v7531_v45 }
 0x110   :  { %6385 = vmatprep.subr.bf16.mxu0 %v7421_v5 }
 0x113   :  { %6387 = vmatpush3.bf16.msra.mxu0 %v7535_v48 }
 0x114   :  { %6388 = vmatprep.subr.bf16.mxu0 %v7421_v5 }
 0x117   :  { %6390 = vmatpush3.bf16.msra.mxu0 %v7539_v51 }
 0x118   :  { %6391 = vmatprep.subr.bf16.mxu0 %v7421_v5 }
 0x11b   :  { %6393 = vmatpush3.bf16.msra.mxu0 %v7543_v54 }
 0x11c   :  { %6394 = vmatprep.subr.bf16.mxu0 %v7421_v5 }
 0x11f   :  { %6396 = vmatpush3.bf16.msra.mxu0 %v7547_v57 }
 0x120   :  { %6445 = vmatprep.subr.bf16.mxu0 %v7421_v5 }
 0x122   :  { %5197 = vmatmul.mubr.f32.vlgmr.msra.gmra.mrb[0].mxu0 %v146_v40 }
 0x123   :  { %6447 = vmatpush3.bf16.msra.mxu0 %v7478_v6  ;;  %5312 = vmatprep.mubr.msk.f32.mxu0 %vm7420_vm0, %v7419_v0 }
 0x124   :  { %6448 = vmatprep.subr.bf16.mxu0 %v7421_v5 }
 0x127   :  { %6450 = vmatpush3.bf16.msra.mxu0 %v7483_v10 }
 0x128   :  { %6451 = vmatprep.subr.bf16.mxu0 %v7421_v5 }
 0x12b   :  { %6453 = vmatpush3.bf16.msra.mxu0 %v7490_v14 }
 0x12c   :  { %6454 = vmatprep.subr.bf16.mxu0 %v7421_v5 }
 0x12f   :  { %6456 = vmatpush3.bf16.msra.mxu0 %v7497_v17 }
 0x130   :  { %6457 = vmatprep.subr.bf16.mxu0 %v7421_v5 }
 0x133   :  { %6459 = vmatpush3.bf16.msra.mxu0 %v7501_v20 }
 0x134   :  { %6460 = vmatprep.subr.bf16.mxu0 %v7421_v5 }
 0x137   :  { %6462 = vmatpush3.bf16.msra.mxu0 %v7505_v23 }
 0x138   :  { %6463 = vmatprep.subr.bf16.mxu0 %v7421_v5 }
 0x13b   :  { %6465 = vmatpush3.bf16.msra.mxu0 %v7509_v26 }
 0x13c   :  { %6466 = vmatprep.subr.bf16.mxu0 %v7421_v5 }
 0x13f   :  { %6468 = vmatpush3.bf16.msra.mxu0 %v7513_v29 }
 0x1f5   :  { %v319_v62 = vpop.f32.mrb[0].mxu0 }
 0x1f6   :  { %v5198_v63 = vpop.f32.mrb[1].mxu0  ;;  %v327_v1 = vmul.f32 %v4420_v61, %v319_v62 }
 0x1f7   :  { %v694_v63 = vld [vmem:[#allocation5 + $0x570] sm:$0xff] }
 0x1f8   :  { %328 = vadd.xlane.f32.xlu0 %v327_v1 }
 0x285   :  { %v329_v2 = vpop.xlane.xlu0 %328 }
 0x286   :  { %v330_v3 = vmul.f32 0.008064516, %v329_v2  ;;  %v695_v2 = vld [vmem:[#allocation5 + $0x578] sm:$0xff] }
 0x288   :  { %v331_v4 = vsub.f32 %v319_v62, %v330_v3  ;;  %v693_v62 = vld [vmem:[#allocation5 + $0x568] sm:$0xff]  ;;  %v7624_v3 = vpack.c.bf16 %v695_v2, %v694_v63 }
 0x28a   :  { %v332_v7 = vmul.f32 %v331_v4, %v331_v4 }
 0x28c   :  { %v333_v8 = vmul.f32 %v4420_v61, %v332_v7  ;;  %v692_v61 = vld [vmem:[#allocation5 + $0x560] sm:$0xff]  ;;  %v697_v7 = vld [vmem:[#allocation5 + $0x588] sm:$0xff] }
 0x28d   :  { %v7621_v1 = vpack.c.bf16 %v693_v62, %v692_v61 }
 0x28e   :  { %334 = vadd.xlane.f32.xlu0 %v333_v8 }
 0x31b   :  { %v335_v11 = vpop.xlane.xlu0 %334 }
 0x31c   :  { %v336_v12 = vmul.f32 0.008064516, %v335_v11  ;;  %v699_v11 = vld [vmem:[#allocation5 + $0x598] sm:$0xff] }
 0x31e   :  { %v339_v13 = vadd.f32 1e-05, %v336_v12  ;;  %v7632_v12 = vpack.c.bf16 %v699_v11, %v698_v9 }
 0x320   :  { %7305 = vrsqrt.f32 %v339_v13  ;;  %v700_v13 = vld [vmem:[#allocation5 + $0x5a0] sm:$0xff] }
 0x32a   :  { %v7306_v16 = vpop.eup %7305 }
 0x32b   :  { %v341_v18 = vmul.f32 %v7306_v16, %v337_v15  ;;  %v701_v15 = vld [vmem:[#allocation5 + $0x5a8] sm:$0xff] }
 0x32c   :  { %v7636_v16 = vpack.c.bf16 %v701_v15, %v700_v13 }
 0x32d   :  { %344 = vperm.xlu1 %7303, %v341_v18   ;;  %v702_v18 = vld [vmem:[#allocation5 + $0x5b0] sm:$0xff] }
 0x331   :  { %350 = vperm.xlu1 %7303, %v338_v19   ;;  %v703_v19 = vld [vmem:[#allocation5 + $0x5b8] sm:$0xff] }
 0x3ac   :  { %v345_v21 = vpop.permute.xlu1 %344 }
 0x3ad   :  { %v347_v22 = vmul.f32 %v345_v21, %v331_v4  ;;  %v696_v4 = vld [vmem:[#allocation5 + $0x580] sm:$0xff]  ;;  %v7640_v21 = vpack.c.bf16 %v703_v19, %v702_v18 }
 0x3ae   :  { %v7628_v8 = vpack.c.bf16 %v697_v7, %v696_v4 }
 0x3b0   :  { %v351_v24 = vpop.permute.xlu1 %350 }
 0x3b1   :  { %v353_v25 = vadd.f32 %v351_v24, %v347_v22  ;;  %v704_v22 = vld [vmem:[#allocation5 + $0x5c0] sm:$0xff]  ;;  %v705_v24 = vld [vmem:[#allocation5 + $0x5c8] sm:$0xff] }
 0x3b3   :  { %v354_v27 = vmax.f32 %v353_v25, 0.0  ;;  %v7644_v25 = vpack.c.bf16 %v705_v24, %v704_v22 }
 0x3b5   :  { %5200 = vmatpush3.msra.mxu1 %v354_v27 }
 0x3b6   :  { %5202 = vmatmul.mubr.msk.f32.vlgmr.msra.gmra.mrb[0].mxu1 %vm358_vm4, %v355_v28  ;;  %6397 = vmatprep.subr.bf16.mxu1 %v7421_v5 }
 0x3b7   :  { %5204 = vmatprep.mubr.msk.f32.mxu1 %vm7420_vm0, %v7419_v0  ;;  %6399 = vmatpush3.bf16.msra.mxu1 %v7478_v6 }
 0x3b8   :  { %6400 = vmatprep.subr.bf16.mxu1 %v7421_v5 }
 0x3ba   :  { %5205 = vmatmul.mubr.msk.f32.gmra.mrb[2].mxu1 %vm358_vm4, %v356_v30 }
 0x3bb   :  { %5207 = vmatprep.mubr.msk.f32.mxu1 %vm7420_vm0, %v7419_v0  ;;  %6402 = vmatpush3.bf16.msra.mxu1 %v7483_v10 }
 0x3bc   :  { %6403 = vmatprep.subr.bf16.mxu1 %v7421_v5 }
 0x3be   :  { %5208 = vmatmul.mubr.msk.f32.gmra.mrb[4].mxu1 %vm358_vm4, %v357_v31 }
 0x3bf   :  { %6405 = vmatpush3.bf16.msra.mxu1 %v7490_v14  ;;  %5242 = vmatprep.mubr.msk.f32.mxu1 %vm7420_vm0, %v7419_v0 }
 0x3c0   :  { %6406 = vmatprep.subr.bf16.mxu1 %v7421_v5 }
 0x3c3   :  { %6408 = vmatpush3.bf16.msra.mxu1 %v7497_v17 }
 0x3c4   :  { %6409 = vmatprep.subr.bf16.mxu1 %v7421_v5 }
 0x3c7   :  { %6411 = vmatpush3.bf16.msra.mxu1 %v7501_v20 }
 0x3c8   :  { %6412 = vmatprep.subr.bf16.mxu1 %v7421_v5 }
 0x3cb   :  { %6414 = vmatpush3.bf16.msra.mxu1 %v7505_v23 }
 0x3cc   :  { %6415 = vmatprep.subr.bf16.mxu1 %v7421_v5 }
 0x3cf   :  { %6417 = vmatpush3.bf16.msra.mxu1 %v7509_v26 }
 0x3d0   :  { %6418 = vmatprep.subr.bf16.mxu1 %v7421_v5 }
 0x3d3   :  { %6420 = vmatpush3.bf16.msra.mxu1 %v7513_v29 }
 0x3d4   :  { %6421 = vmatprep.subr.bf16.mxu1 %v7421_v5 }
 0x48d   :  { %v439_v33 = vpop.f32.mrb[2].mxu1 }
 0x48e   :  { %v5206_v34 = vpop.f32.mrb[3].mxu1  ;;  %5243 = vmatmul.mubr.f32.vlgmr.msra.gmra.mrb[0].mxu1 %v439_v33 }
 0x48f   :  { %6423 = vmatpush3.bf16.msra.mxu1 %v7518_v32  ;;  %5277 = vmatprep.mubr.msk.f32.mxu1 %vm7420_vm0, %v7419_v0  ;;  %v706_v34 = vld [vmem:[#allocation5 + $0x5d0] sm:$0xff] }
 0x490   :  { %6424 = vmatprep.subr.bf16.mxu1 %v7421_v5 }
 0x491   :  { %v444_v35 = vpop.f32.mrb[4].mxu1 }
 0x492   :  { %v5209_v36 = vpop.f32.mrb[5].mxu1 }
 0x493   :  { %6426 = vmatpush3.bf16.msra.mxu1 %v7521_v37 }
 0x494   :  { %6427 = vmatprep.subr.bf16.mxu1 %v7421_v5 }
 0x497   :  { %6429 = vmatpush3.bf16.msra.mxu1 %v7527_v42 }
 0x498   :  { %6430 = vmatprep.subr.bf16.mxu1 %v7421_v5 }
 0x49b   :  { %6432 = vmatpush3.bf16.msra.mxu1 %v7531_v45 }
 0x49c   :  { %6433 = vmatprep.subr.bf16.mxu1 %v7421_v5 }
 0x49f   :  { %6435 = vmatpush3.bf16.msra.mxu1 %v7535_v48 }
 0x4a0   :  { %6436 = vmatprep.subr.bf16.mxu1 %v7421_v5 }
 0x4a3   :  { %6438 = vmatpush3.bf16.msra.mxu1 %v7539_v51 }
 0x4a4   :  { %6439 = vmatprep.subr.bf16.mxu1 %v7421_v5 }
 0x4a7   :  { %6441 = vmatpush3.bf16.msra.mxu1 %v7543_v54 }
 0x4a8   :  { %6442 = vmatprep.subr.bf16.mxu1 %v7421_v5 }
 0x4ab   :  { %6444 = vmatpush3.bf16.msra.mxu1 %v7547_v57 }
 0x4ac   :  { %6469 = vmatprep.subr.bf16.mxu1 %v7421_v5 }
 0x4ae   :  { %5278 = vmatmul.mubr.f32.vlgmr.msra.gmra.mrb[0].mxu1 %v444_v35  ;;  %v707_v35 = vld [vmem:[#allocation5 + $0x5d8] sm:$0xff] }
 0x4af   :  { %5347 = vmatprep.mubr.msk.f32.mxu1 %vm7420_vm0, %v7419_v0  ;;  %6471 = vmatpush3.bf16.msra.mxu1 %v7621_v1  ;;  %v7652_v36 = vpack.c.bf16 %v707_v35, %v706_v34 }
 0x4b0   :  { %6472 = vmatprep.subr.bf16.mxu1 %v7421_v5 }
 0x4b3   :  { %6474 = vmatpush3.bf16.msra.mxu1 %v7624_v3 }
 0x4b4   :  { %6475 = vmatprep.subr.bf16.mxu1 %v7421_v5 }
 0x4b7   :  { %6477 = vmatpush3.bf16.msra.mxu1 %v7628_v8 }
 0x4b8   :  { %6478 = vmatprep.subr.bf16.mxu1 %v7421_v5 }
 0x4bb   :  { %6480 = vmatpush3.bf16.msra.mxu1 %v7632_v12 }
 0x4bc   :  { %6481 = vmatprep.subr.bf16.mxu1 %v7421_v5 }
 0x4bf   :  { %6483 = vmatpush3.bf16.msra.mxu1 %v7636_v16 }
 0x4c0   :  { %6484 = vmatprep.subr.bf16.mxu1 %v7421_v5 }
 0x4c3   :  { %6486 = vmatpush3.bf16.msra.mxu1 %v7640_v21 }
 0x4c4   :  { %6487 = vmatprep.subr.bf16.mxu1 %v7421_v5 }
 0x4c7   :  { %6489 = vmatpush3.bf16.msra.mxu1 %v7644_v25 }
 0x4c8   :  { %6490 = vmatprep.subr.bf16.mxu1 %v7421_v5 }
 0x4cb   :  { %6492 = vmatpush3.bf16.msra.mxu1 %v7652_v36 }
 0x581   :  { %v585_v39 = vpop.f32.mrb[0].mxu1 }
 0x582   :  { %v5279_v40 = vpop.f32.mrb[1].mxu1  ;;  %v593_v41 = vmul.f32 %v4424_v38, %v585_v39 }
 0x584   :  { %594 = vadd.xlane.f32.xlu0 %v593_v41  ;;  %v778_v41 = vld [vmem:[#allocation5 + $0x50] sm:$0xff] }
 0x611   :  { %v595_v43 = vpop.xlane.xlu0 %594 }
 0x612   :  { %v596_v44 = vmul.f32 0.008333334, %v595_v43 }
 0x614   :  { %v597_v46 = vsub.f32 %v585_v39, %v596_v44  ;;  %v779_v44 = vld [vmem:[#allocation5 + $0x58] sm:$0xff] }
 0x616   :  { %v598_v47 = vmul.f32 %v597_v46, %v597_v46 }
 0x618   :  { %v599_v49 = vmul.f32 %v4424_v38, %v598_v47  ;;  %v780_v47 = vld [vmem:[#allocation5 + $0x60] sm:$0xff] }
 0x61a   :  { %600 = vadd.xlane.f32.xlu1 %v599_v49  ;;  %v781_v49 = vld [vmem:[#allocation5 + $0x68] sm:$0xff] }
 0x62b   :  { %616 = vperm.xlu1 %7303, %v604_v50   ;;  %v782_v50 = vld [vmem:[#allocation5 + $0x70] sm:$0xff] }
 0x6a7   :  { %v601_v52 = vpop.xlane.xlu1 %600 }
 0x6a8   :  { %v602_v53 = vmul.f32 0.008333334, %v601_v52  ;;  %v783_v52 = vld [vmem:[#allocation5 + $0x78] sm:$0xff] }
 0x6aa   :  { %v605_v55 = vadd.f32 1e-05, %v602_v53 }
 0x6ab   :  { %v617_v30 = vpop.permute.xlu1 %616 }
 0x6ac   :  { %7307 = vrsqrt.f32 %v605_v55 }
 0x6b6   :  { %v7308_v58 = vpop.eup %7307 }
 0x6b7   :  { %v607_v59 = vmul.f32 %v7308_v58, %v603_v56 }
 0x6b9   :  { %610 = vperm.xlu0 %7304, %v607_v59   ;;  %v4431_v59 = vsel %vm1051_vm6, 1.0, %v7419_v0 }
 0x738   :  { %v611_v27 = vpop.permute.xlu0 %610 }
 0x739   :  { %v613_v28 = vmul.f32 %v611_v27, %v597_v46 }
 0x73b   :  { %v619_v31 = vadd.f32 %v617_v30, %v613_v28 }
 0x73d   :  { %v7649_v33 = vmax.f32 %v619_v31, 0.0 }
 0x73f   :  { %5313 = vmatmul.mubr.f32.vlgmr.msra.gmra.mrb[6].mxu0 %v7649_v33 }
 0x740   :  { %5352 = vmatprep.mubr.msk.f32.mxu0 %vm358_vm4, %v778_v41  ;;  %v1075_v41 = vld [vmem:[#allocation5 + $0x88] sm:$0xff] }
 0x812   :  { %v687_v38 = vpop.f32.mrb[6].mxu0 }
 0x813   :  { %v691_v39 = vmax.f32 %v7649_v33, %v687_v38  ;;  %v5314_v40 = vpop.f32.mrb[7].mxu0  ;;  %v1074_v38 = vld [vmem:[#allocation5 + $0x80] sm:$0xff] }
 0x815   :  { %5348 = vmatmul.mubr.f32.vlgmr.msra.gmra.mrb[6].mxu1 %v691_v39 }
 0x8e8   :  { %v774_v43 = vpop.f32.mrb[6].mxu1 }
 0x8e9   :  { %v5349_v46 = vpop.f32.mrb[7].mxu1  ;;  %5350 = vmatprep.subr.mxu0 %v774_v43 }
 0x8ea   :  { %5351 = vmatpush3.msra.mxu0 %v774_v43 }
 0x8eb   :  { %5353 = vmatmul.mubr.msk.f32.vlgmr.msra.gmra.mrb[8].mxu0 %vm358_vm4, %v779_v44  ;;  %6494 = vmatprep.subr.bf16.mxu0 %v7478_v6  ;;  %v1077_v44 = vld [vmem:[#allocation5 + $0x98] sm:$0xff] }
 0x8ec   :  { %5355 = vmatprep.mubr.msk.f32.mxu0 %vm358_vm4, %v780_v47  ;;  %6496 = vmatpush3.bf16.msra.mxu0 %v7478_v6  ;;  %v1076_v47 = vld [vmem:[#allocation5 + $0x90] sm:$0xff] }
 0x8ed   :  { %6498 = vmatprep.subr.bf16.mxu0 %v7483_v10 }
 0x8ef   :  { %5356 = vmatmul.mubr.msk.f32.gmra.mrb[10].mxu0 %vm358_vm4, %v781_v49  ;;  %v1110_v49 = vld [vmem:[#allocation5 + $0xa0] sm:$0xff] }
 0x8f0   :  { %5358 = vmatprep.mubr.msk.f32.mxu0 %vm358_vm4, %v782_v50  ;;  %6500 = vmatpush3.bf16.msra.mxu0 %v7483_v10 }
 0x8f1   :  { %6502 = vmatprep.subr.bf16.mxu0 %v7490_v14  ;;  %5435 = vmatprep.mubr.msk.f32.mxu1 %vm1116_vm7, %v1110_v49 }
 0x8f3   :  { %5359 = vmatmul.mubr.msk.f32.gmra.mrb[12].mxu0 %vm358_vm4, %v783_v52 }
 0x8f4   :  { %6504 = vmatpush3.bf16.msra.mxu0 %v7490_v14 }
 0x8f5   :  { %6506 = vmatprep.subr.bf16.mxu0 %v7497_v17 }
 0x8f8   :  { %6508 = vmatpush3.bf16.msra.mxu0 %v7497_v17 }
 0x8f9   :  { %6510 = vmatprep.subr.bf16.mxu0 %v7501_v20 }
 0x8fc   :  { %6512 = vmatpush3.bf16.msra.mxu0 %v7501_v20 }
 0x8fd   :  { %6514 = vmatprep.subr.bf16.mxu0 %v7505_v23 }
 0x900   :  { %6516 = vmatpush3.bf16.msra.mxu0 %v7505_v23 }
 0x901   :  { %6518 = vmatprep.subr.bf16.mxu0 %v7509_v26 }
 0x904   :  { %6520 = vmatpush3.bf16.msra.mxu0 %v7509_v26 }
 0x905   :  { %6522 = vmatprep.subr.bf16.mxu0 %v7513_v29 }
 0x908   :  { %6524 = vmatpush3.bf16.msra.mxu0 %v7513_v29 }
 0x909   :  { %6526 = vmatprep.subr.bf16.mxu0 %v7518_v32 }
 0x9c2   :  { %v5357_v53 = vpop.f32.mrb[10].mxu0 }
 0x9c3   :  { %v878_v55 = vpop.f32.mrb[11].mxu0 }
 0x9c4   :  { %5393 = vmatprep.mubr.f32.mxu0 %v878_v55 }
 0x9c5   :  { %5394 = vmatmul.mubr.f32.vlgmr.msra.gmra.mrb[8].mxu0 %v5357_v53 }
 0x9c6   :  { %6528 = vmatpush3.bf16.msra.mxu0 %v7518_v32  ;;  %v5360_v56 = vpop.f32.mrb[12].mxu0 }
 0x9c7   :  { %6530 = vmatprep.subr.bf16.mxu0 %v7521_v37  ;;  %v888_v58 = vpop.f32.mrb[13].mxu0 }
 0x9c8   :  { %5428 = vmatprep.mubr.f32.mxu0 %v888_v58 }
 0x9ca   :  { %6532 = vmatpush3.bf16.msra.mxu0 %v7521_v37 }
 0x9cb   :  { %6534 = vmatprep.subr.bf16.mxu0 %v7527_v42 }
 0x9ce   :  { %6536 = vmatpush3.bf16.msra.mxu0 %v7527_v42 }
 0x9cf   :  { %6538 = vmatprep.subr.bf16.mxu0 %v7531_v45 }
 0x9d2   :  { %6540 = vmatpush3.bf16.msra.mxu0 %v7531_v45 }
 0x9d3   :  { %6542 = vmatprep.subr.bf16.mxu0 %v7535_v48 }
 0x9d6   :  { %6544 = vmatpush3.bf16.msra.mxu0 %v7535_v48 }
 0x9d7   :  { %6546 = vmatprep.subr.bf16.mxu0 %v7539_v51 }
 0x9da   :  { %6548 = vmatpush3.bf16.msra.mxu0 %v7539_v51 }
 0x9db   :  { %6550 = vmatprep.subr.bf16.mxu0 %v7543_v54 }
 0x9de   :  { %6552 = vmatpush3.bf16.msra.mxu0 %v7543_v54 }
 0x9df   :  { %6554 = vmatprep.subr.bf16.mxu0 %v7547_v57 }
 0x9e2   :  { %6556 = vmatpush3.bf16.msra.mxu0 %v7547_v57 }
 0x9e3   :  { %6626 = vmatprep.subr.bf16.mxu0 %v7478_v6 }
 0x9e5   :  { %5429 = vmatmul.mubr.f32.vlgmr.msra.gmra.mrb[8].mxu0 %v5360_v56 }
 0x9e6   :  { %6628 = vmatpush3.bf16.msra.mxu0 %v7478_v6 }
 0x9e7   :  { %6630 = vmatprep.subr.bf16.mxu0 %v7483_v10 }
 0x9ea   :  { %6632 = vmatpush3.bf16.msra.mxu0 %v7483_v10 }
 0x9eb   :  { %6634 = vmatprep.subr.bf16.mxu0 %v7490_v14 }
 0x9ee   :  { %6636 = vmatpush3.bf16.msra.mxu0 %v7490_v14 }
 0x9ef   :  { %6638 = vmatprep.subr.bf16.mxu0 %v7497_v17 }
 0x9f2   :  { %6640 = vmatpush3.bf16.msra.mxu0 %v7497_v17 }
 0x9f3   :  { %6642 = vmatprep.subr.bf16.mxu0 %v7501_v20 }
 0x9f6   :  { %6644 = vmatpush3.bf16.msra.mxu0 %v7501_v20 }
 0x9f7   :  { %6646 = vmatprep.subr.bf16.mxu0 %v7505_v23 }
 0x9fa   :  { %6648 = vmatpush3.bf16.msra.mxu0 %v7505_v23 }
 0x9fb   :  { %6650 = vmatprep.subr.bf16.mxu0 %v7509_v26 }
 0x9fe   :  { %6652 = vmatpush3.bf16.msra.mxu0 %v7509_v26 }
 0x9ff   :  { %6654 = vmatprep.subr.bf16.mxu0 %v7513_v29 }
 0xa02   :  { %6656 = vmatpush3.bf16.msra.mxu0 %v7513_v29 }
 0xab8   :  { %v5430_v61 = vpop.f32.mrb[8].mxu0 }
 0xab9   :  { %v1040_v62 = vpop.f32.mrb[9].mxu0  ;;  %v1055_v63 = vmul.f32 %v5430_v61, %v4431_v59 }
 0xaba   :  { %v1054_v2 = vmul.f32 %v4431_v59, %v1040_v62 }
 0xabb   :  { %1058 = vadd.xlane.f32.xlu1 %v1055_v63 }
 0xabc   :  { %1056 = vadd.xlane.f32.xlu0 %v1054_v2 }
 0xb48   :  { %v1059_v4 = vpop.xlane.xlu1 %1058 }
 0xb49   :  { %v1061_v7 = vmul.f32 0.017857144, %v1059_v4  ;;  %v1057_v9 = vpop.xlane.xlu0 %1056  ;;  %v1111_v4 = vld [vmem:[#allocation5 + $0xa8] sm:$0xff] }
 0xb4a   :  { %v1060_v11 = vmul.f32 0.017857144, %v1057_v9  ;;  %v1113_v9 = vld [vmem:[#allocation5 + $0xb8] sm:$0xff] }
 0xb4b   :  { %v1063_v13 = vsub.f32 %v5430_v61, %v1061_v7  ;;  %v1112_v7 = vld [vmem:[#allocation5 + $0xb0] sm:$0xff] }
 0xb4c   :  { %v1062_v15 = vsub.f32 %v1040_v62, %v1060_v11  ;;  %v1114_v11 = vld [vmem:[#allocation5 + $0xc0] sm:$0xff] }
 0xb4d   :  { %v1065_v22 = vmul.f32 %v1063_v13, %v1063_v13 }
 0xb4e   :  { %v1064_v18 = vmul.f32 %v1062_v15, %v1062_v15 }
 0xb4f   :  { %v1067_v24 = vmul.f32 %v4431_v59, %v1065_v22 }
 0xb50   :  { %v1066_v19 = vmul.f32 %v4431_v59, %v1064_v18 }
 0xb52   :  { %1068 = vadd.xlane.f32.xlu0 %v1066_v19 }
 0xb56   :  { %1070 = vadd.xlane.f32.xlu0 %v1067_v24 }
 0xbdf   :  { %v1069_v27 = vpop.xlane.xlu0 %1068 }
 0xbe0   :  { %v1072_v28 = vmul.f32 0.017857144, %v1069_v27 }
 0xbe2   :  { %v1078_v30 = vadd.f32 1e-05, %v1072_v28 }
 0xbe3   :  { %v1071_v31 = vpop.xlane.xlu0 %1070 }
 0xbe4   :  { %7309 = vrsqrt.f32 %v1078_v30  ;;  %v1073_v34 = vmul.f32 0.017857144, %v1071_v31 }
 0xbe6   :  { %v1079_v35 = vadd.f32 1e-05, %v1073_v34 }
 0xbe8   :  { %7311 = vrsqrt.f32 %v1079_v35 }
 0xbee   :  { %v7310_v39 = vpop.eup %7309 }
 0xbef   :  { %v1082_v40 = vmul.f32 %v7310_v39, %v1074_v38 }
 0xbf1   :  { %1086 = vperm.xlu0 %7304, %v1082_v40  }
 0xbf2   :  { %v7312_v43 = vpop.eup %7311 }
 0xbf3   :  { %v1083_v46 = vmul.f32 %v7312_v43, %v1075_v41 }
 0xbf5   :  { %1103 = vperm.xlu0 %7304, %v1077_v44   ;;  %1091 = vperm.xlu1 %7303, %v1083_v46   ;;  %v1408_v46 = vld [vmem:[#allocation5 + $0xd8] sm:$0xff] }
 0xbf9   :  { %1098 = vperm.xlu1 %7303, %v1076_v47   ;;  %v1407_v47 = vld [vmem:[#allocation5 + $0xd0] sm:$0xff] }
 0xc70   :  { %v1087_v50 = vpop.permute.xlu0 %1086 }
 0xc71   :  { %v1094_v56 = vmul.f32 %v1087_v50, %v1062_v15 }
 0xc74   :  { %v1092_v52 = vpop.permute.xlu1 %1091  ;;  %v1104_v55 = vpop.permute.xlu0 %1103 }
 0xc75   :  { %v1095_v53 = vmul.f32 %v1092_v52, %v1063_v13  ;;  %v1115_v13 = vld [vmem:[#allocation5 + $0xc8] sm:$0xff] }
 0xc77   :  { %v1107_v58 = vadd.f32 %v1104_v55, %v1095_v53  ;;  %v1409_v55 = vld [vmem:[#allocation5 + $0xe0] sm:$0xff] }
 0xc78   :  { %v1099_v59 = vpop.permute.xlu1 %1098 }
 0xc79   :  { %v1106_v61 = vadd.f32 %v1099_v59, %v1094_v56  ;;  %v1109_v62 = vmax.f32 %v1107_v58, 0.0  ;;  %v1410_v56 = vld [vmem:[#allocation5 + $0xe8] sm:$0xff] }
 0xc7b   :  { %v1108_v63 = vmax.f32 %v1106_v61, 0.0 }
 0xc7d   :  { %v6557_v2 = vpack.c.bf16 %v1109_v62, %v1108_v63 }
 0xc7f   :  { %6558 = vmatprep.subr.bf16.mxu1 %v6557_v2 }
 0xc80   :  { %6560 = vmatpush3.bf16.msra.mxu1 %v6557_v2 }
 0xc81   :  { %6562 = vmatprep.subr.bf16.mxu1 %v7478_v6 }
 0xc83   :  { %5436 = vmatmul.mubr.msk.f32.vlgmr.msra.gmra.mrb[8].mxu1 %vm1116_vm7, %v1111_v4 }
 0xc84   :  { %5438 = vmatprep.mubr.msk.f32.mxu1 %vm1116_vm7, %v1112_v7  ;;  %6564 = vmatpush3.bf16.msra.mxu1 %v7478_v6 }
 0xc85   :  { %6566 = vmatprep.subr.bf16.mxu1 %v7483_v10 }
 0xc87   :  { %5439 = vmatmul.mubr.msk.f32.gmra.mrb[10].mxu1 %vm1116_vm7, %v1113_v9 }
 0xc88   :  { %5441 = vmatprep.mubr.msk.f32.mxu1 %vm1116_vm7, %v1114_v11  ;;  %6568 = vmatpush3.bf16.msra.mxu1 %v7483_v10 }
 0xc89   :  { %6570 = vmatprep.subr.bf16.mxu1 %v7490_v14 }
 0xc8b   :  { %5442 = vmatmul.mubr.msk.f32.gmra.mrb[12].mxu1 %vm1116_vm7, %v1115_v13 }
 0xc8c   :  { %6572 = vmatpush3.bf16.msra.mxu1 %v7490_v14 }
 0xc8d   :  { %6574 = vmatprep.subr.bf16.mxu1 %v7497_v17 }
 0xc90   :  { %6576 = vmatpush3.bf16.msra.mxu1 %v7497_v17 }
 0xc91   :  { %6578 = vmatprep.subr.bf16.mxu1 %v7501_v20 }
 0xc94   :  { %6580 = vmatpush3.bf16.msra.mxu1 %v7501_v20 }
 0xc95   :  { %6582 = vmatprep.subr.bf16.mxu1 %v7505_v23 }
 0xc98   :  { %6584 = vmatpush3.bf16.msra.mxu1 %v7505_v23 }
 0xc99   :  { %6586 = vmatprep.subr.bf16.mxu1 %v7509_v26 }
 0xc9c   :  { %6588 = vmatpush3.bf16.msra.mxu1 %v7509_v26 }
 0xc9d   :  { %6590 = vmatprep.subr.bf16.mxu1 %v7513_v29 }
 0xca0   :  { %6592 = vmatpush3.bf16.msra.mxu1 %v7513_v29 }
 0xca1   :  { %6594 = vmatprep.subr.bf16.mxu1 %v7518_v32 }
 0xd5a   :  { %v5440_v15 = vpop.f32.mrb[10].mxu1 }
 0xd5b   :  { %v1211_v18 = vpop.f32.mrb[11].mxu1 }
 0xd5c   :  { %5476 = vmatprep.mubr.f32.mxu1 %v1211_v18 }
 0xd5d   :  { %5477 = vmatmul.mubr.f32.vlgmr.msra.gmra.mrb[8].mxu1 %v5440_v15 }
 0xd5e   :  { %6596 = vmatpush3.bf16.msra.mxu1 %v7518_v32  ;;  %v5443_v19 = vpop.f32.mrb[12].mxu1 }
 0xd5f   :  { %6598 = vmatprep.subr.bf16.mxu1 %v7521_v37  ;;  %v1221_v22 = vpop.f32.mrb[13].mxu1 }
 0xd60   :  { %5511 = vmatprep.mubr.f32.mxu1 %v1221_v22  ;;  %v1595_v22 = vld [vmem:[#allocation5 + $0xf0] sm:$0xff] }
 0xd62   :  { %6600 = vmatpush3.bf16.msra.mxu1 %v7521_v37 }
 0xd63   :  { %6602 = vmatprep.subr.bf16.mxu1 %v7527_v42 }
 0xd66   :  { %6604 = vmatpush3.bf16.msra.mxu1 %v7527_v42 }
 0xd67   :  { %6606 = vmatprep.subr.bf16.mxu1 %v7531_v45 }
 0xd6a   :  { %6608 = vmatpush3.bf16.msra.mxu1 %v7531_v45 }
 0xd6b   :  { %6610 = vmatprep.subr.bf16.mxu1 %v7535_v48 }
 0xd6e   :  { %6612 = vmatpush3.bf16.msra.mxu1 %v7535_v48 }
 0xd6f   :  { %6614 = vmatprep.subr.bf16.mxu1 %v7539_v51 }
 0xd72   :  { %6616 = vmatpush3.bf16.msra.mxu1 %v7539_v51 }
 0xd73   :  { %6618 = vmatprep.subr.bf16.mxu1 %v7543_v54 }
 0xd76   :  { %6620 = vmatpush3.bf16.msra.mxu1 %v7543_v54 }
 0xd77   :  { %6622 = vmatprep.subr.bf16.mxu1 %v7547_v57 }
 0xd7a   :  { %6624 = vmatpush3.bf16.msra.mxu1 %v7547_v57 }
 0xd7b   :  { %6658 = vmatprep.subr.bf16.mxu1 %v7621_v1 }
 0xd7d   :  { %5512 = vmatmul.mubr.f32.vlgmr.msra.gmra.mrb[8].mxu1 %v5443_v19 }
 0xd7e   :  { %6660 = vmatpush3.bf16.msra.mxu1 %v7621_v1  ;;  %v7768_v1 = vsel %vm1384_vm8, 1.0, %v7419_v0 }
 0xd7f   :  { %6662 = vmatprep.subr.bf16.mxu1 %v7624_v3 }
 0xd82   :  { %6664 = vmatpush3.bf16.msra.mxu1 %v7624_v3 }
 0xd83   :  { %6666 = vmatprep.subr.bf16.mxu1 %v7628_v8 }
 0xd86   :  { %6668 = vmatpush3.bf16.msra.mxu1 %v7628_v8 }
 0xd87   :  { %6670 = vmatprep.subr.bf16.mxu1 %v7632_v12 }
 0xd8a   :  { %6672 = vmatpush3.bf16.msra.mxu1 %v7632_v12 }
 0xd8b   :  { %6674 = vmatprep.subr.bf16.mxu1 %v7636_v16 }
 0xd8e   :  { %6676 = vmatpush3.bf16.msra.mxu1 %v7636_v16 }
 0xd8f   :  { %6678 = vmatprep.subr.bf16.mxu1 %v7640_v21 }
 0xd92   :  { %6680 = vmatpush3.bf16.msra.mxu1 %v7640_v21 }
 0xd93   :  { %6682 = vmatprep.subr.bf16.mxu1 %v7644_v25 }
 0xd96   :  { %6684 = vmatpush3.bf16.msra.mxu1 %v7644_v25 }
 0xd97   :  { %6686 = vmatprep.subr.bf16.mxu1 %v7652_v36 }
 0xd9a   :  { %6688 = vmatpush3.bf16.msra.mxu1 %v7652_v36 }
 0xe50   :  { %v5513_v3 = vpop.f32.mrb[8].mxu1 }
 0xe51   :  { %v1373_v8 = vpop.f32.mrb[9].mxu1  ;;  %v1388_v12 = vmul.f32 %v5513_v3, %v7768_v1 }
 0xe52   :  { %v1387_v16 = vmul.f32 %v7768_v1, %v1373_v8 }
 0xe53   :  { %1391 = vadd.xlane.f32.xlu0 %v1388_v12 }
 0xe54   :  { %1389 = vadd.xlane.f32.xlu1 %v1387_v16  ;;  %v1596_v16 = vld [vmem:[#allocation5 + $0xf8] sm:$0xff] }
 0xee0   :  { %v1392_v21 = vpop.xlane.xlu0 %1391 }
 0xee1   :  { %v1394_v24 = vmul.f32 0.01923077, %v1392_v21  ;;  %v1390_v25 = vpop.xlane.xlu1 %1389  ;;  %v1597_v21 = vld [vmem:[#allocation5 + $0x100] sm:$0xff] }
 0xee2   :  { %v1393_v27 = vmul.f32 0.01923077, %v1390_v25  ;;  %v1599_v25 = vld [vmem:[#allocation5 + $0x110] sm:$0xff] }
 0xee3   :  { %v1396_v28 = vsub.f32 %v5513_v3, %v1394_v24  ;;  %v1598_v24 = vld [vmem:[#allocation5 + $0x108] sm:$0xff] }
 0xee4   :  { %v1395_v30 = vsub.f32 %v1373_v8, %v1393_v27  ;;  %v1600_v27 = vld [vmem:[#allocation5 + $0x118] sm:$0xff] }
 0xee5   :  { %v1398_v36 = vmul.f32 %v1396_v28, %v1396_v28 }
 0xee6   :  { %v1397_v31 = vmul.f32 %v1395_v30, %v1395_v30 }
 0xee7   :  { %v1400_v34 = vmul.f32 %v7768_v1, %v1398_v36  ;;  %v1603_v36 = vld [vmem:[#allocation5 + $0x130] sm:$0xff] }
 0xee8   :  { %v1399_v35 = vmul.f32 %v7768_v1, %v1397_v31  ;;  %v1604_v31 = vld [vmem:[#allocation5 + $0x138] sm:$0xff] }
 0xee9   :  { %1403 = vadd.xlane.f32.xlu1 %v1400_v34  ;;  %v1605_v34 = vld [vmem:[#allocation5 + $0x140] sm:$0xff] }
 0xeea   :  { %1401 = vadd.xlane.f32.xlu0 %v1399_v35  ;;  %v1606_v35 = vld [vmem:[#allocation5 + $0x148] sm:$0xff] }
 0xf76   :  { %v1404_v38 = vpop.xlane.xlu1 %1403 }
 0xf77   :  { %v1406_v39 = vmul.f32 0.01923077, %v1404_v38  ;;  %v1402_v40 = vpop.xlane.xlu0 %1401 }
 0xf78   :  { %v1405_v41 = vmul.f32 0.01923077, %v1402_v40 }
 0xf79   :  { %v1412_v43 = vadd.f32 1e-05, %v1406_v39 }
 0xf7a   :  { %v1411_v44 = vadd.f32 1e-05, %v1405_v41 }
 0xf7b   :  { %7313 = vrsqrt.f32 %v1412_v43 }
 0xf7c   :  { %7315 = vrsqrt.f32 %v1411_v44 }
 0xf85   :  { %v7314_v49 = vpop.eup %7313 }
 0xf86   :  { %v7316_v50 = vpop.eup %7315  ;;  %v1416_v52 = vmul.f32 %v7314_v49, %v1408_v46  ;;  %v2825_v49 = vld [vmem:[#allocation5 + $0x460] sm:$0xff] }
 0xf87   :  { %v1415_v53 = vmul.f32 %v7316_v50, %v1407_v47  ;;  %v2826_v50 = vld [vmem:[#allocation5 + $0x468] sm:$0xff] }
 0xf88   :  { %1424 = vperm.xlu1 %7303, %v1416_v52   ;;  %v6901_v52 = vpack.c.bf16 %v2826_v50, %v2825_v49 }
 0xf89   :  { %1419 = vperm.xlu0 %7304, %v1415_v53   ;;  %v2827_v53 = vld [vmem:[#allocation5 + $0x470] sm:$0xff] }
 0xf8c   :  { %1431 = vperm.xlu1 %7303, %v1409_v55   ;;  %v2828_v55 = vld [vmem:[#allocation5 + $0x478] sm:$0xff] }
 0xf8d   :  { %1436 = vperm.xlu0 %7304, %v1410_v56   ;;  %v6905_v56 = vpack.c.bf16 %v2828_v55, %v2827_v53 }
0x1007   :  { %v1425_v58 = vpop.permute.xlu1 %1424 }
0x1008   :  { %v1420_v59 = vpop.permute.xlu0 %1419  ;;  %v1428_v62 = vmul.f32 %v1425_v58, %v1396_v28  ;;  %v1601_v28 = vld [vmem:[#allocation5 + $0x120] sm:$0xff] }
0x1009   :  { %v1427_v61 = vmul.f32 %v1420_v59, %v1395_v30  ;;  %v1602_v30 = vld [vmem:[#allocation5 + $0x128] sm:$0xff]  ;;  %v2829_v58 = vld [vmem:[#allocation5 + $0x480] sm:$0xff] }
0x100a   :  { %v2830_v59 = vld [vmem:[#allocation5 + $0x488] sm:$0xff] }
0x100b   :  { %v1432_v63 = vpop.permute.xlu1 %1431 }
0x100c   :  { %v1439_v2 = vadd.f32 %v1432_v63, %v1427_v61  ;;  %v1437_v4 = vpop.permute.xlu0 %1436  ;;  %v6909_v61 = vpack.c.bf16 %v2830_v59, %v2829_v58  ;;  %v2832_v63 = vld [vmem:[#allocation5 + $0x498] sm:$0xff] }
0x100d   :  { %v1440_v7 = vadd.f32 %v1437_v4, %v1428_v62  ;;  %v2831_v62 = vld [vmem:[#allocation5 + $0x490] sm:$0xff]  ;;  %v2833_v4 = vld [vmem:[#allocation5 + $0x4a0] sm:$0xff] }
0x100e   :  { %v7774_v9 = vmax.f32 %v1439_v2, 0.0  ;;  %v6913_v2 = vpack.c.bf16 %v2832_v63, %v2831_v62 }
0x100f   :  { %v7776_v11 = vmax.f32 %v1440_v7, 0.0  ;;  %v2834_v7 = vld [vmem:[#allocation5 + $0x4a8] sm:$0xff] }
0x1010   :  { %5546 = vmatprep.mubr.f32.mxu0 %v7774_v9 }
0x1011   :  { %5547 = vmatmul.mubr.f32.vlgmr.msra.gmra.mrb[14].mxu0 %v7776_v11 }
0x1012   :  { %5588 = vmatprep.mubr.msk.f32.mxu0 %vm1116_vm7, %v1595_v22  ;;  %v2837_v22 = vld [vmem:[#allocation5 + $0x4c0] sm:$0xff] }
0x10e4   :  { %v5548_v13 = vpop.f32.mrb[14].mxu0 }
0x10e5   :  { %v1509_v15 = vpop.f32.mrb[15].mxu0  ;;  %v1519_v19 = vmax.f32 %v7776_v11, %v5548_v13  ;;  %v6917_v13 = vpack.c.bf16 %v2834_v7, %v2833_v4  ;;  %v1993_v7 = vld [vmem:[#allocation5 + $0x170] sm:$0xff] }
0x10e6   :  { %v1518_v18 = vmax.f32 %v7774_v9, %v1509_v15  ;;  %v2835_v15 = vld [vmem:[#allocation5 + $0x4b0] sm:$0xff] }
0x10e8   :  { %5581 = vmatprep.mubr.f32.mxu1 %v1518_v18  ;;  %v2836_v18 = vld [vmem:[#allocation5 + $0x4b8] sm:$0xff] }
0x10e9   :  { %5582 = vmatmul.mubr.f32.vlgmr.msra.gmra.mrb[14].mxu1 %v1519_v19  ;;  %v6921_v19 = vpack.c.bf16 %v2836_v18, %v2835_v15 }
0x11bc   :  { %v5583_v3 = vpop.f32.mrb[14].mxu1 }
0x11bd   :  { %v1586_v8 = vpop.f32.mrb[15].mxu1 }
0x11be   :  { %v6689_v12 = vpack.c.bf16 %v5583_v3, %v1586_v8  ;;  %v2838_v3 = vld [vmem:[#allocation5 + $0x4c8] sm:$0xff] }
0x11bf   :  { %v6925_v8 = vpack.c.bf16 %v2838_v3, %v2837_v22 }
0x11c0   :  { %6690 = vmatprep.subr.bf16.mxu0 %v6689_v12 }
0x11c1   :  { %6692 = vmatpush3.bf16.msra.mxu0 %v6689_v12  ;;  %v2839_v12 = vld [vmem:[#allocation5 + $0x4d0] sm:$0xff] }
0x11c2   :  { %6694 = vmatprep.subr.bf16.mxu0 %v7478_v6 }
0x11c4   :  { %5589 = vmatmul.mubr.msk.f32.vlgmr.msra.gmra.mrb[16].mxu0 %vm1116_vm7, %v1596_v16  ;;  %v2840_v16 = vld [vmem:[#allocation5 + $0x4d8] sm:$0xff] }
0x11c5   :  { %5591 = vmatprep.mubr.msk.f32.mxu0 %vm1116_vm7, %v1597_v21  ;;  %6696 = vmatpush3.bf16.msra.mxu0 %v7478_v6  ;;  %v4451_v21 = vsel %vm1946_vm9, 1.0, %v7419_v0 }
0x11c6   :  { %6698 = vmatprep.subr.bf16.mxu0 %v7483_v10 }
0x11c8   :  { %5592 = vmatmul.mubr.msk.f32.gmra.mrb[18].mxu0 %vm1116_vm7, %v1598_v24 }
0x11c9   :  { %5594 = vmatprep.mubr.msk.f32.mxu0 %vm1116_vm7, %v1599_v25  ;;  %6700 = vmatpush3.bf16.msra.mxu0 %v7483_v10 }
0x11ca   :  { %6702 = vmatprep.subr.bf16.mxu0 %v7490_v14 }
0x11cc   :  { %5595 = vmatmul.mubr.msk.f32.gmra.mrb[20].mxu0 %vm1116_vm7, %v1600_v27 }
0x11cd   :  { %5597 = vmatprep.mubr.msk.f32.mxu0 %vm1116_vm7, %v1601_v28  ;;  %6704 = vmatpush3.bf16.msra.mxu0 %v7490_v14 }
0x11ce   :  { %6706 = vmatprep.subr.bf16.mxu0 %v7497_v17 }
0x11d0   :  { %5598 = vmatmul.mubr.msk.f32.gmra.mrb[22].mxu0 %vm1116_vm7, %v1602_v30 }
0x11d1   :  { %5600 = vmatprep.mubr.msk.f32.mxu0 %vm1116_vm7, %v1603_v36  ;;  %6708 = vmatpush3.bf16.msra.mxu0 %v7497_v17 }
0x11d2   :  { %6710 = vmatprep.subr.bf16.mxu0 %v7501_v20 }
0x11d4   :  { %5601 = vmatmul.mubr.msk.f32.gmra.mrb[24].mxu0 %vm1116_vm7, %v1604_v31 }
0x11d5   :  { %5603 = vmatprep.mubr.msk.f32.mxu0 %vm1116_vm7, %v1605_v34  ;;  %6712 = vmatpush3.bf16.msra.mxu0 %v7501_v20 }
0x11d6   :  { %6714 = vmatprep.subr.bf16.mxu0 %v7505_v23 }
0x11d8   :  { %5604 = vmatmul.mubr.msk.f32.gmra.mrb[26].mxu0 %vm1116_vm7, %v1606_v35 }
0x11d9   :  { %6716 = vmatpush3.bf16.msra.mxu0 %v7505_v23 }
0x11da   :  { %6718 = vmatprep.subr.bf16.mxu0 %v7509_v26 }
0x11dd   :  { %6720 = vmatpush3.bf16.msra.mxu0 %v7509_v26 }
0x11de   :  { %6722 = vmatprep.subr.bf16.mxu0 %v7513_v29 }
0x11e1   :  { %6724 = vmatpush3.bf16.msra.mxu0 %v7513_v29 }
0x11e2   :  { %6726 = vmatprep.subr.bf16.mxu0 %v7518_v32 }
0x129f   :  { %v5596_v38 = vpop.f32.mrb[20].mxu0 }
0x12a0   :  { %v1729_v39 = vpop.f32.mrb[21].mxu0 }
0x12a1   :  { %5638 = vmatprep.mubr.f32.mxu0 %v1729_v39 }
0x12a2   :  { %5639 = vmatmul.mubr.f32.vlgmr.msra.gmra.mrb[16].mxu0 %v5596_v38 }
0x12a3   :  { %6728 = vmatpush3.bf16.msra.mxu0 %v7518_v32  ;;  %v5599_v40 = vpop.f32.mrb[22].mxu0 }
0x12a4   :  { %6730 = vmatprep.subr.bf16.mxu0 %v7521_v37  ;;  %v1739_v41 = vpop.f32.mrb[23].mxu0 }
0x12a5   :  { %5641 = vmatprep.mubr.f32.mxu0 %v1739_v41 }
0x12a6   :  { %5642 = vmatmul.mubr.f32.gmra.mrb[18].mxu0 %v5599_v40 }
0x12a7   :  { %6732 = vmatpush3.bf16.msra.mxu0 %v7521_v37  ;;  %v5602_v43 = vpop.f32.mrb[24].mxu0 }
0x12a8   :  { %6734 = vmatprep.subr.bf16.mxu0 %v7527_v42  ;;  %v1749_v44 = vpop.f32.mrb[25].mxu0 }
0x12a9   :  { %5676 = vmatprep.mubr.f32.mxu0 %v1749_v44 }
0x12ab   :  { %6736 = vmatpush3.bf16.msra.mxu0 %v7527_v42  ;;  %v5605_v46 = vpop.f32.mrb[26].mxu0 }
0x12ac   :  { %6738 = vmatprep.subr.bf16.mxu0 %v7531_v45  ;;  %v1759_v47 = vpop.f32.mrb[27].mxu0 }
0x12af   :  { %6740 = vmatpush3.bf16.msra.mxu0 %v7531_v45 }
0x12b0   :  { %6742 = vmatprep.subr.bf16.mxu0 %v7535_v48 }
0x12b3   :  { %6744 = vmatpush3.bf16.msra.mxu0 %v7535_v48 }
0x12b4   :  { %6746 = vmatprep.subr.bf16.mxu0 %v7539_v51 }
0x12b7   :  { %6748 = vmatpush3.bf16.msra.mxu0 %v7539_v51 }
0x12b8   :  { %6750 = vmatprep.subr.bf16.mxu0 %v7543_v54 }
0x12bb   :  { %6752 = vmatpush3.bf16.msra.mxu0 %v7543_v54 }
0x12bc   :  { %6754 = vmatprep.subr.bf16.mxu0 %v7547_v57 }
0x12bf   :  { %6756 = vmatpush3.bf16.msra.mxu0 %v7547_v57 }
0x12c0   :  { %6902 = vmatprep.subr.bf16.mxu0 %v6901_v52 }
0x12c2   :  { %5677 = vmatmul.mubr.f32.vlgmr.msra.gmra.mrb[16].mxu0 %v5602_v43 }
0x12c3   :  { %6904 = vmatpush3.bf16.msra.mxu0 %v6901_v52  ;;  %5679 = vmatprep.mubr.f32.mxu0 %v1759_v47 }
0x12c4   :  { %6906 = vmatprep.subr.bf16.mxu0 %v6905_v56 }
0x12c6   :  { %5680 = vmatmul.mubr.f32.gmra.mrb[18].mxu0 %v5605_v46 }
0x12c7   :  { %6908 = vmatpush3.bf16.msra.mxu0 %v6905_v56  ;;  %5900 = vmatprep.mubr.f32.mxu0 %v7774_v9  ;;  %v6929_v9 = vpack.c.bf16 %v2840_v16, %v2839_v12 }
0x12c8   :  { %6910 = vmatprep.subr.bf16.mxu0 %v6909_v61 }
0x12cb   :  { %6912 = vmatpush3.bf16.msra.mxu0 %v6909_v61 }
0x12cc   :  { %6914 = vmatprep.subr.bf16.mxu0 %v6913_v2 }
0x12cf   :  { %6916 = vmatpush3.bf16.msra.mxu0 %v6913_v2 }
0x12d0   :  { %6918 = vmatprep.subr.bf16.mxu0 %v6917_v13 }
0x12d3   :  { %6920 = vmatpush3.bf16.msra.mxu0 %v6917_v13  ;;  %v1994_v13 = vld [vmem:[#allocation5 + $0x178] sm:$0xff] }
0x12d4   :  { %6922 = vmatprep.subr.bf16.mxu0 %v6921_v19 }
0x12d7   :  { %6924 = vmatpush3.bf16.msra.mxu0 %v6921_v19 }
0x12d8   :  { %6926 = vmatprep.subr.bf16.mxu0 %v6925_v8 }
0x12db   :  { %6928 = vmatpush3.bf16.msra.mxu0 %v6925_v8 }
0x12dc   :  { %6930 = vmatprep.subr.bf16.mxu0 %v6929_v9 }
0x12df   :  { %6932 = vmatpush3.bf16.msra.mxu0 %v6929_v9 }
0x12e2   :  { %5901 = vmatmul.mubr.f32.vlgmr.msra.gmra.mrb[28].mxu0 %v7776_v11 }
0x1395   :  { %v5678_v24 = vpop.f32.mrb[16].mxu0 }
0x1396   :  { %v1923_v25 = vpop.f32.mrb[17].mxu0  ;;  %v1950_v27 = vmul.f32 %v5678_v24, %v4451_v21 }
0x1397   :  { %v1949_v28 = vmul.f32 %v4451_v21, %v1923_v25 }
0x1398   :  { %1955 = vadd.xlane.f32.xlu0 %v1950_v27  ;;  %v1990_v27 = vld [vmem:[#allocation5 + $0x158] sm:$0xff] }
0x1399   :  { %1953 = vadd.xlane.f32.xlu1 %v1949_v28  ;;  %v5681_v30 = vpop.f32.mrb[18].mxu0  ;;  %v1989_v28 = vld [vmem:[#allocation5 + $0x150] sm:$0xff] }
0x139a   :  { %v1933_v36 = vpop.f32.mrb[19].mxu0  ;;  %v1952_v31 = vmul.f32 %v5681_v30, %v4451_v21 }
0x139b   :  { %v1951_v34 = vmul.f32 %v4451_v21, %v1933_v36 }
0x139d   :  { %1959 = vadd.xlane.f32.xlu1 %v1952_v31  ;;  %1957 = vadd.xlane.f32.xlu0 %v1951_v34 }
0x13b5   :  { %v5902_v35 = vpop.f32.mrb[28].mxu0 }
0x13b6   :  { %v2907_v38 = vpop.f32.mrb[29].mxu0 }
0x13b7   :  { %v7830_v39 = vpack.c.bf16 %v5902_v35, %v2907_v38  ;;  %v1992_v35 = vld [vmem:[#allocation5 + $0x168] sm:$0xff]  ;;  %v1991_v38 = vld [vmem:[#allocation5 + $0x160] sm:$0xff] }
0x1425   :  { %v1956_v11 = vpop.xlane.xlu0 %1955 }
0x1426   :  { %v1962_v40 = vmul.f32 0.045454547, %v1956_v11  ;;  %v1954_v41 = vpop.xlane.xlu1 %1953 }
0x1427   :  { %v1961_v43 = vmul.f32 0.045454547, %v1954_v41 }
0x1428   :  { %v7832_v44 = vsub.f32 %v5678_v24, %v1962_v40 }
0x1429   :  { %v7834_v46 = vsub.f32 %v1923_v25, %v1961_v43 }
0x142a   :  { %v1960_v47 = vpop.xlane.xlu1 %1959  ;;  %v1958_v49 = vpop.xlane.xlu0 %1957  ;;  %v1970_v50 = vmul.f32 %v7832_v44, %v7832_v44 }
0x142b   :  { %v1964_v52 = vmul.f32 0.045454547, %v1960_v47  ;;  %v1963_v53 = vmul.f32 0.045454547, %v1958_v49  ;;  %v1969_v55 = vmul.f32 %v7834_v46, %v7834_v46  ;;  %v1996_v47 = vld [vmem:[#allocation5 + $0x188] sm:$0xff]  ;;  %v1995_v49 = vld [vmem:[#allocation5 + $0x180] sm:$0xff] }
0x142c   :  { %v1974_v56 = vmul.f32 %v4451_v21, %v1970_v50  ;;  %v2061_v50 = vld [vmem:[#allocation5 + $0x190] sm:$0xff] }
0x142d   :  { %v7840_v58 = vsub.f32 %v5681_v30, %v1964_v52  ;;  %v7842_v59 = vsub.f32 %v1933_v36, %v1963_v53  ;;  %v1973_v61 = vmul.f32 %v4451_v21, %v1969_v55  ;;  %5690 = vmatprep.mubr.msk.f32.mxu1 %vm2073_vm10, %v2061_v50  ;;  %v4464_v50 = vsel %vm2413_vm11, 1.0, %v7419_v0 }
0x142e   :  { %1979 = vadd.xlane.f32.xlu1 %v1974_v56 }
0x142f   :  { %1977 = vadd.xlane.f32.xlu0 %v1973_v61  ;;  %v1972_v62 = vmul.f32 %v7840_v58, %v7840_v58  ;;  %v1971_v63 = vmul.f32 %v7842_v59, %v7842_v59 }
0x1431   :  { %v1976_v2 = vmul.f32 %v4451_v21, %v1972_v62  ;;  %v1975_v4 = vmul.f32 %v4451_v21, %v1971_v63 }
0x1433   :  { %1983 = vadd.xlane.f32.xlu1 %v1976_v2  ;;  %1981 = vadd.xlane.f32.xlu0 %v1975_v4 }
0x1444   :  { %2035 = vperm.xlu1 %7303, %v1993_v7  }
0x1449   :  { %2040 = vperm.xlu0 %7304, %v1994_v13  }
0x14bb   :  { %v1980_v15 = vpop.xlane.xlu1 %1979 }
0x14bc   :  { %v1986_v18 = vmul.f32 0.045454547, %v1980_v15  ;;  %v1978_v19 = vpop.xlane.xlu0 %1977 }
0x14bd   :  { %v1985_v22 = vmul.f32 0.045454547, %v1978_v19 }
0x14be   :  { %v1998_v3 = vadd.f32 1e-05, %v1986_v18 }
0x14bf   :  { %v1997_v8 = vadd.f32 1e-05, %v1985_v22 }
0x14c0   :  { %7317 = vrsqrt.f32 %v1998_v3  ;;  %v1984_v12 = vpop.xlane.xlu1 %1983  ;;  %v1982_v16 = vpop.xlane.xlu0 %1981 }
0x14c1   :  { %7319 = vrsqrt.f32 %v1997_v8  ;;  %v1988_v9 = vmul.f32 0.045454547, %v1984_v12  ;;  %v1987_v24 = vmul.f32 0.045454547, %v1982_v16 }
0x14c3   :  { %v2000_v25 = vadd.f32 1e-05, %v1988_v9  ;;  %v1999_v21 = vadd.f32 1e-05, %v1987_v24  ;;  %v2062_v24 = vld [vmem:[#allocation5 + $0x198] sm:$0xff] }
0x14c4   :  { %v2036_v52 = vpop.permute.xlu1 %2035 }
0x14c5   :  { %7321 = vrsqrt.f32 %v2000_v25  ;;  %v2063_v25 = vld [vmem:[#allocation5 + $0x1a0] sm:$0xff] }
0x14c6   :  { %7323 = vrsqrt.f32 %v1999_v21  ;;  %v2066_v21 = vld [vmem:[#allocation5 + $0x1b8] sm:$0xff] }
0x14c8   :  { %v2041_v53 = vpop.permute.xlu0 %2040 }
0x14ca   :  { %v7318_v30 = vpop.eup %7317 }
0x14cb   :  { %v7320_v36 = vpop.eup %7319  ;;  %v2006_v31 = vmul.f32 %v7318_v30, %v1990_v27  ;;  %v2067_v27 = vld [vmem:[#allocation5 + $0x1c0] sm:$0xff]  ;;  %v2069_v30 = vld [vmem:[#allocation5 + $0x1d0] sm:$0xff] }
0x14cc   :  { %v2005_v34 = vmul.f32 %v7320_v36, %v1989_v28  ;;  %v2068_v28 = vld [vmem:[#allocation5 + $0x1c8] sm:$0xff]  ;;  %v2070_v36 = vld [vmem:[#allocation5 + $0x1d8] sm:$0xff] }
0x14cd   :  { %2016 = vperm.xlu1 %7303, %v2006_v31   ;;  %v2071_v31 = vld [vmem:[#allocation5 + $0x1e0] sm:$0xff] }
0x14ce   :  { %2011 = vperm.xlu0 %7304, %v2005_v34   ;;  %v2072_v34 = vld [vmem:[#allocation5 + $0x1e8] sm:$0xff] }
0x14cf   :  { %v7322_v11 = vpop.eup %7321 }
0x14d0   :  { %v7324_v40 = vpop.eup %7323  ;;  %v2008_v41 = vmul.f32 %v7322_v11, %v1992_v35 }
0x14d1   :  { %v2007_v43 = vmul.f32 %v7324_v40, %v1991_v38 }
0x14d2   :  { %2026 = vperm.xlu0 %7304, %v2008_v41  }
0x14d3   :  { %2021 = vperm.xlu1 %7303, %v2007_v43  }
0x14d6   :  { %2050 = vperm.xlu0 %7304, %v1996_v47  }
0x14d7   :  { %2045 = vperm.xlu1 %7303, %v1995_v49  }
0x154c   :  { %v2017_v55 = vpop.permute.xlu1 %2016 }
0x154d   :  { %v2030_v56 = vmul.f32 %v2017_v55, %v7832_v44  ;;  %v2012_v61 = vpop.permute.xlu0 %2011 }
0x154e   :  { %v2029_v62 = vmul.f32 %v2012_v61, %v7834_v46 }
0x154f   :  { %v2054_v63 = vadd.f32 %v2041_v53, %v2030_v56 }
0x1550   :  { %v2053_v2 = vadd.f32 %v2036_v52, %v2029_v62 }
0x1551   :  { %v2058_v4 = vmax.f32 %v2054_v63, 0.0  ;;  %v2027_v7 = vpop.permute.xlu0 %2026 }
0x1552   :  { %v2057_v13 = vmax.f32 %v2053_v2, 0.0  ;;  %v2022_v15 = vpop.permute.xlu1 %2021  ;;  %v2032_v18 = vmul.f32 %v2027_v7, %v7840_v58  ;;  %v2064_v58 = vld [vmem:[#allocation5 + $0x1a8] sm:$0xff] }
0x1553   :  { %v2031_v22 = vmul.f32 %v2022_v15, %v7842_v59  ;;  %v2065_v59 = vld [vmem:[#allocation5 + $0x1b0] sm:$0xff] }
0x1554   :  { %v6757_v19 = vpack.c.bf16 %v2058_v4, %v2057_v13 }
0x1555   :  { %v2051_v3 = vpop.permute.xlu0 %2050 }
0x1556   :  { %v2046_v8 = vpop.permute.xlu1 %2045  ;;  %v2056_v12 = vadd.f32 %v2051_v3, %v2032_v18  ;;  %6758 = vmatprep.subr.bf16.mxu1 %v6757_v19 }
0x1557   :  { %v2055_v16 = vadd.f32 %v2046_v8, %v2031_v22  ;;  %6760 = vmatpush3.bf16.msra.mxu1 %v6757_v19 }
0x1558   :  { %v2060_v44 = vmax.f32 %v2056_v12, 0.0 }
0x1559   :  { %v2059_v9 = vmax.f32 %v2055_v16, 0.0 }
0x155b   :  { %v6761_v46 = vpack.c.bf16 %v2060_v44, %v2059_v9 }
0x155d   :  { %6762 = vmatprep.subr.bf16.mxu1 %v6761_v46 }
0x155e   :  { %6764 = vmatpush3.bf16.msra.mxu1 %v6761_v46 }
0x155f   :  { %6766 = vmatprep.subr.bf16.mxu1 %v7478_v6 }
0x1561   :  { %5691 = vmatmul.mubr.msk.f32.vlgmr.msra.gmra.mrb[16].mxu1 %vm2073_vm10, %v2062_v24 }
0x1562   :  { %5693 = vmatprep.mubr.msk.f32.mxu1 %vm2073_vm10, %v2063_v25  ;;  %6768 = vmatpush3.bf16.msra.mxu1 %v7478_v6 }
0x1563   :  { %6770 = vmatprep.subr.bf16.mxu1 %v7483_v10 }
0x1565   :  { %5694 = vmatmul.mubr.msk.f32.gmra.mrb[18].mxu1 %vm2073_vm10, %v2064_v58 }
0x1566   :  { %5696 = vmatprep.mubr.msk.f32.mxu1 %vm2073_vm10, %v2065_v59  ;;  %6772 = vmatpush3.bf16.msra.mxu1 %v7483_v10 }
0x1567   :  { %6774 = vmatprep.subr.bf16.mxu1 %v7490_v14 }
0x1569   :  { %5697 = vmatmul.mubr.msk.f32.gmra.mrb[20].mxu1 %vm2073_vm10, %v2066_v21 }
0x156a   :  { %5699 = vmatprep.mubr.msk.f32.mxu1 %vm2073_vm10, %v2067_v27  ;;  %6776 = vmatpush3.bf16.msra.mxu1 %v7490_v14 }
0x156b   :  { %6778 = vmatprep.subr.bf16.mxu1 %v7497_v17 }
0x156d   :  { %5700 = vmatmul.mubr.msk.f32.gmra.mrb[22].mxu1 %vm2073_vm10, %v2068_v28  ;;  %v2460_v28 = vld [vmem:[#allocation5 + $0x210] sm:$0xff] }
0x156e   :  { %5702 = vmatprep.mubr.msk.f32.mxu1 %vm2073_vm10, %v2069_v30  ;;  %6780 = vmatpush3.bf16.msra.mxu1 %v7497_v17  ;;  %v2461_v30 = vld [vmem:[#allocation5 + $0x218] sm:$0xff] }
0x156f   :  { %6782 = vmatprep.subr.bf16.mxu1 %v7501_v20 }
0x1571   :  { %5703 = vmatmul.mubr.msk.f32.gmra.mrb[24].mxu1 %vm2073_vm10, %v2070_v36 }
0x1572   :  { %5705 = vmatprep.mubr.msk.f32.mxu1 %vm2073_vm10, %v2071_v31  ;;  %6784 = vmatpush3.bf16.msra.mxu1 %v7501_v20 }
0x1573   :  { %6786 = vmatprep.subr.bf16.mxu1 %v7505_v23 }
0x1575   :  { %5706 = vmatmul.mubr.msk.f32.gmra.mrb[26].mxu1 %vm2073_vm10, %v2072_v34 }
0x1576   :  { %6788 = vmatpush3.bf16.msra.mxu1 %v7505_v23 }
0x1577   :  { %6790 = vmatprep.subr.bf16.mxu1 %v7509_v26 }
0x157a   :  { %6792 = vmatpush3.bf16.msra.mxu1 %v7509_v26 }
0x157b   :  { %6794 = vmatprep.subr.bf16.mxu1 %v7513_v29 }
0x157e   :  { %6796 = vmatpush3.bf16.msra.mxu1 %v7513_v29 }
0x157f   :  { %6798 = vmatprep.subr.bf16.mxu1 %v7518_v32 }
0x163c   :  { %v5698_v35 = vpop.f32.mrb[20].mxu1 }
0x163d   :  { %v2196_v38 = vpop.f32.mrb[21].mxu1 }
0x163e   :  { %5740 = vmatprep.mubr.f32.mxu1 %v2196_v38 }
0x163f   :  { %5741 = vmatmul.mubr.f32.vlgmr.msra.gmra.mrb[16].mxu1 %v5698_v35 }
0x1640   :  { %6800 = vmatpush3.bf16.msra.mxu1 %v7518_v32  ;;  %v5701_v11 = vpop.f32.mrb[22].mxu1 }
0x1641   :  { %6802 = vmatprep.subr.bf16.mxu1 %v7521_v37  ;;  %v2206_v40 = vpop.f32.mrb[23].mxu1 }
0x1642   :  { %5743 = vmatprep.mubr.f32.mxu1 %v2206_v40 }
0x1643   :  { %5744 = vmatmul.mubr.f32.gmra.mrb[18].mxu1 %v5701_v11 }
0x1644   :  { %6804 = vmatpush3.bf16.msra.mxu1 %v7521_v37  ;;  %v5704_v41 = vpop.f32.mrb[24].mxu1 }
0x1645   :  { %6806 = vmatprep.subr.bf16.mxu1 %v7527_v42  ;;  %v2216_v43 = vpop.f32.mrb[25].mxu1 }
0x1646   :  { %5778 = vmatprep.mubr.f32.mxu1 %v2216_v43 }
0x1648   :  { %6808 = vmatpush3.bf16.msra.mxu1 %v7527_v42  ;;  %v5707_v47 = vpop.f32.mrb[26].mxu1 }
0x1649   :  { %6810 = vmatprep.subr.bf16.mxu1 %v7531_v45  ;;  %v2226_v49 = vpop.f32.mrb[27].mxu1 }
0x164c   :  { %6812 = vmatpush3.bf16.msra.mxu1 %v7531_v45 }
0x164d   :  { %6814 = vmatprep.subr.bf16.mxu1 %v7535_v48 }
0x1650   :  { %6816 = vmatpush3.bf16.msra.mxu1 %v7535_v48 }
0x1651   :  { %6818 = vmatprep.subr.bf16.mxu1 %v7539_v51 }
0x1654   :  { %6820 = vmatpush3.bf16.msra.mxu1 %v7539_v51 }
0x1655   :  { %6822 = vmatprep.subr.bf16.mxu1 %v7543_v54 }
0x1658   :  { %6824 = vmatpush3.bf16.msra.mxu1 %v7543_v54 }
0x1659   :  { %6826 = vmatprep.subr.bf16.mxu1 %v7547_v57 }
0x165c   :  { %6828 = vmatpush3.bf16.msra.mxu1 %v7547_v57 }
0x165f   :  { %5779 = vmatmul.mubr.f32.vlgmr.msra.gmra.mrb[16].mxu1 %v5704_v41 }
0x1660   :  { %5781 = vmatprep.mubr.f32.mxu1 %v2226_v49 }
0x1663   :  { %5782 = vmatmul.mubr.f32.gmra.mrb[18].mxu1 %v5707_v47 }
0x1732   :  { %v5780_v52 = vpop.f32.mrb[16].mxu1 }
0x1733   :  { %v2390_v53 = vpop.f32.mrb[17].mxu1  ;;  %v2417_v55 = vmul.f32 %v5780_v52, %v4464_v50 }
0x1734   :  { %v2416_v56 = vmul.f32 %v4464_v50, %v2390_v53 }
0x1735   :  { %2422 = vadd.xlane.f32.xlu0 %v2417_v55 }
0x1736   :  { %2420 = vadd.xlane.f32.xlu1 %v2416_v56  ;;  %v5783_v61 = vpop.f32.mrb[18].mxu1 }
0x1737   :  { %v2400_v62 = vpop.f32.mrb[19].mxu1  ;;  %v2419_v63 = vmul.f32 %v5783_v61, %v4464_v50 }
0x1738   :  { %v2418_v2 = vmul.f32 %v4464_v50, %v2400_v62 }
0x173a   :  { %2426 = vadd.xlane.f32.xlu1 %v2419_v63  ;;  %2424 = vadd.xlane.f32.xlu0 %v2418_v2  ;;  %v2459_v63 = vld [vmem:[#allocation5 + $0x208] sm:$0xff]  ;;  %v2458_v2 = vld [vmem:[#allocation5 + $0x200] sm:$0xff] }
0x17c2   :  { %v2423_v4 = vpop.xlane.xlu0 %2422 }
0x17c3   :  { %v2429_v7 = vmul.f32 0.055555556, %v2423_v4  ;;  %v2421_v13 = vpop.xlane.xlu1 %2420 }
0x17c4   :  { %v2428_v15 = vmul.f32 0.055555556, %v2421_v13 }
0x17c5   :  { %v7898_v18 = vsub.f32 %v5780_v52, %v2429_v7  ;;  %v2457_v52 = vld [vmem:[#allocation5 + $0x1f8] sm:$0xff] }
0x17c6   :  { %v7900_v19 = vsub.f32 %v2390_v53, %v2428_v15  ;;  %v2456_v53 = vld [vmem:[#allocation5 + $0x1f0] sm:$0xff] }
0x17c7   :  { %v2427_v22 = vpop.xlane.xlu1 %2426  ;;  %v2425_v3 = vpop.xlane.xlu0 %2424  ;;  %v2437_v8 = vmul.f32 %v7898_v18, %v7898_v18 }
0x17c8   :  { %v2431_v12 = vmul.f32 0.055555556, %v2427_v22  ;;  %v2430_v16 = vmul.f32 0.055555556, %v2425_v3  ;;  %v2436_v44 = vmul.f32 %v7900_v19, %v7900_v19  ;;  %v2463_v22 = vld [vmem:[#allocation5 + $0x228] sm:$0xff]  ;;  %v2462_v3 = vld [vmem:[#allocation5 + $0x220] sm:$0xff] }
0x17c9   :  { %v2441_v9 = vmul.f32 %v4464_v50, %v2437_v8  ;;  %v2812_v8 = vld [vmem:[#allocation5 + $0x258] sm:$0xff] }
0x17ca   :  { %v7906_v46 = vsub.f32 %v5783_v61, %v2431_v12  ;;  %v7908_v24 = vsub.f32 %v2400_v62, %v2430_v16  ;;  %v2440_v25 = vmul.f32 %v4464_v50, %v2436_v44  ;;  %v2811_v12 = vld [vmem:[#allocation5 + $0x250] sm:$0xff] }
0x17cb   :  { %2446 = vadd.xlane.f32.xlu1 %v2441_v9  ;;  %v2528_v16 = vld [vmem:[#allocation5 + $0x230] sm:$0xff] }
0x17cc   :  { %2444 = vadd.xlane.f32.xlu0 %v2440_v25  ;;  %v2439_v58 = vmul.f32 %v7906_v46, %v7906_v46  ;;  %v2438_v59 = vmul.f32 %v7908_v24, %v7908_v24  ;;  %5792 = vmatprep.mubr.msk.f32.mxu1 %vm2073_vm10, %v2528_v16  ;;  %v2656_v16 = vld [vmem:[#allocation5 + $0x6b8] sm:$0xff] }
0x17ce   :  { %v2443_v21 = vmul.f32 %v4464_v50, %v2439_v58  ;;  %v2442_v27 = vmul.f32 %v4464_v50, %v2438_v59 }
0x17d0   :  { %2450 = vadd.xlane.f32.xlu1 %v2443_v21  ;;  %2448 = vadd.xlane.f32.xlu0 %v2442_v27 }
0x17e1   :  { %2502 = vperm.xlu1 %7303, %v2460_v28  }
0x17e6   :  { %2507 = vperm.xlu0 %7304, %v2461_v30  }
0x1858   :  { %v2447_v36 = vpop.xlane.xlu1 %2446 }
0x1859   :  { %v2453_v31 = vmul.f32 0.055555556, %v2447_v36  ;;  %v2445_v34 = vpop.xlane.xlu0 %2444 }
0x185a   :  { %v2452_v35 = vmul.f32 0.055555556, %v2445_v34 }
0x185b   :  { %v2465_v38 = vadd.f32 1e-05, %v2453_v31 }
0x185c   :  { %v2464_v11 = vadd.f32 1e-05, %v2452_v35 }
0x185d   :  { %7325 = vrsqrt.f32 %v2465_v38  ;;  %v2451_v40 = vpop.xlane.xlu1 %2450  ;;  %v2449_v41 = vpop.xlane.xlu0 %2448 }
0x185e   :  { %7327 = vrsqrt.f32 %v2464_v11  ;;  %v2455_v43 = vmul.f32 0.055555556, %v2451_v40  ;;  %v2454_v47 = vmul.f32 0.055555556, %v2449_v41 }
0x1860   :  { %v2467_v49 = vadd.f32 1e-05, %v2455_v43  ;;  %v2466_v50 = vadd.f32 1e-05, %v2454_v47 }
0x1861   :  { %v2503_v44 = vpop.permute.xlu1 %2502 }
0x1862   :  { %7329 = vrsqrt.f32 %v2467_v49  ;;  %v2645_v49 = vld [vmem:[#allocation5 + $0x660] sm:$0xff] }
0x1863   :  { %7331 = vrsqrt.f32 %v2466_v50 }
0x1865   :  { %v2508_v9 = vpop.permute.xlu0 %2507 }
0x1867   :  { %v7326_v55 = vpop.eup %7325 }
0x1868   :  { %v7328_v56 = vpop.eup %7327  ;;  %v2473_v61 = vmul.f32 %v7326_v55, %v2457_v52  ;;  %v2647_v55 = vld [vmem:[#allocation5 + $0x670] sm:$0xff] }
0x1869   :  { %v2472_v62 = vmul.f32 %v7328_v56, %v2456_v53  ;;  %v2648_v56 = vld [vmem:[#allocation5 + $0x678] sm:$0xff] }
0x186a   :  { %2483 = vperm.xlu1 %7303, %v2473_v61   ;;  %v2530_v61 = vld [vmem:[#allocation5 + $0x240] sm:$0xff] }
0x186b   :  { %2478 = vperm.xlu0 %7304, %v2472_v62   ;;  %v2649_v62 = vld [vmem:[#allocation5 + $0x680] sm:$0xff] }
0x186c   :  { %v7330_v4 = vpop.eup %7329 }
0x186d   :  { %v7332_v7 = vpop.eup %7331  ;;  %v2475_v13 = vmul.f32 %v7330_v4, %v2459_v63  ;;  %v2650_v63 = vld [vmem:[#allocation5 + $0x688] sm:$0xff] }
0x186e   :  { %v2474_v15 = vmul.f32 %v7332_v7, %v2458_v2  ;;  %v2531_v2 = vld [vmem:[#allocation5 + $0x248] sm:$0xff]  ;;  %v7928_v4 = vpack.c.bf16 %v2650_v63, %v2649_v62  ;;  %v2651_v7 = vld [vmem:[#allocation5 + $0x690] sm:$0xff]  ;;  %v2641_v63 = vld [vmem:[#allocation5 + $0x640] sm:$0xff] }
0x186f   :  { %2493 = vperm.xlu0 %7304, %v2475_v13   ;;  %v2652_v13 = vld [vmem:[#allocation5 + $0x698] sm:$0xff] }
0x1870   :  { %2488 = vperm.xlu1 %7303, %v2474_v15   ;;  %v7933_v15 = vpack.c.bf16 %v2652_v13, %v2651_v7  ;;  %v2643_v13 = vld [vmem:[#allocation5 + $0x650] sm:$0xff] }
0x1873   :  { %2517 = vperm.xlu0 %7304, %v2463_v22   ;;  %v2653_v22 = vld [vmem:[#allocation5 + $0x6a0] sm:$0xff] }
0x1874   :  { %2512 = vperm.xlu1 %7303, %v2462_v3   ;;  %v2654_v3 = vld [vmem:[#allocation5 + $0x6a8] sm:$0xff] }
0x1877   :  { %2820 = vperm.xlu0 %7304, %v2812_v8   ;;  %v7937_v8 = vpack.c.bf16 %v2654_v3, %v2653_v22  ;;  %v2644_v22 = vld [vmem:[#allocation5 + $0x658] sm:$0xff] }
0x1878   :  { %2815 = vperm.xlu1 %7303, %v2811_v12   ;;  %v2655_v12 = vld [vmem:[#allocation5 + $0x6b0] sm:$0xff]  ;;  %v7981_v3 = vpack.c.bf16 %v2644_v22, %v2643_v13 }
0x18e9   :  { %v2484_v25 = vpop.permute.xlu1 %2483 }
0x18ea   :  { %v2497_v58 = vmul.f32 %v2484_v25, %v7898_v18  ;;  %v2479_v59 = vpop.permute.xlu0 %2478  ;;  %v2658_v25 = vld [vmem:[#allocation5 + $0x6c8] sm:$0xff] }
0x18eb   :  { %v2496_v21 = vmul.f32 %v2479_v59, %v7900_v19  ;;  %v2646_v19 = vld [vmem:[#allocation5 + $0x668] sm:$0xff]  ;;  %v2659_v59 = vld [vmem:[#allocation5 + $0x6d0] sm:$0xff] }
0x18ec   :  { %v2521_v27 = vadd.f32 %v2508_v9, %v2497_v58  ;;  %v7919_v53 = vpack.c.bf16 %v2646_v19, %v2645_v49  ;;  %v2657_v9 = vld [vmem:[#allocation5 + $0x6c0] sm:$0xff]  ;;  %v2635_v49 = vld [vmem:[#allocation5 + $0x610] sm:$0xff]  ;;  %v2636_v19 = vld [vmem:[#allocation5 + $0x618] sm:$0xff] }
0x18ed   :  { %v2520_v28 = vadd.f32 %v2503_v44, %v2496_v21  ;;  %v7941_v44 = vpack.c.bf16 %v2656_v16, %v2655_v12  ;;  %v7945_v58 = vpack.c.bf16 %v2658_v25, %v2657_v9  ;;  %v2660_v21 = vld [vmem:[#allocation5 + $0x6d8] sm:$0xff]  ;;  %v2916_v12 = vld [vmem:[#allocation5 + $0x260] sm:$0xff] }
0x18ee   :  { %v2525_v30 = vmax.f32 %v2521_v27, 0.0  ;;  %v2494_v36 = vpop.permute.xlu0 %2493  ;;  %v7950_v27 = vpack.c.bf16 %v2660_v21, %v2659_v59  ;;  %5911 = vmatprep.mubr.msk.f32.mxu0 %vm2073_vm10, %v2916_v12 }
0x18ef   :  { %v2524_v31 = vmax.f32 %v2520_v28, 0.0  ;;  %v2489_v34 = vpop.permute.xlu1 %2488  ;;  %v2499_v35 = vmul.f32 %v2494_v36, %v7906_v46  ;;  %v2529_v46 = vld [vmem:[#allocation5 + $0x238] sm:$0xff]  ;;  %v2629_v28 = vld [vmem:[#allocation5 + $0x5e0] sm:$0xff] }
0x18f0   :  { %v2498_v11 = vmul.f32 %v2489_v34, %v7908_v24  ;;  %v7922_v24 = vpack.c.bf16 %v2648_v56, %v2647_v55  ;;  %v2638_v55 = vld [vmem:[#allocation5 + $0x628] sm:$0xff] }
0x18f1   :  { %v6829_v38 = vpack.c.bf16 %v2525_v30, %v2524_v31  ;;  %v2630_v30 = vld [vmem:[#allocation5 + $0x5e8] sm:$0xff] }
0x18f2   :  { %v2518_v40 = vpop.permute.xlu0 %2517  ;;  %v7954_v36 = vpack.c.bf16 %v2630_v30, %v2629_v28 }
0x18f3   :  { %v2513_v41 = vpop.permute.xlu1 %2512  ;;  %v2523_v43 = vadd.f32 %v2518_v40, %v2499_v35  ;;  %6830 = vmatprep.subr.bf16.mxu1 %v6829_v38  ;;  %v2631_v35 = vld [vmem:[#allocation5 + $0x5f0] sm:$0xff] }
0x18f4   :  { %v2522_v47 = vadd.f32 %v2513_v41, %v2498_v11  ;;  %6832 = vmatpush3.bf16.msra.mxu1 %v6829_v38  ;;  %v2632_v38 = vld [vmem:[#allocation5 + $0x5f8] sm:$0xff] }
0x18f5   :  { %v2527_v18 = vmax.f32 %v2523_v43, 0.0  ;;  %v7957_v41 = vpack.c.bf16 %v2632_v38, %v2631_v35  ;;  %v2633_v43 = vld [vmem:[#allocation5 + $0x600] sm:$0xff]  ;;  %v2918_v35 = vld [vmem:[#allocation5 + $0x270] sm:$0xff] }
0x18f6   :  { %v2526_v50 = vmax.f32 %v2522_v47, 0.0  ;;  %v2634_v47 = vld [vmem:[#allocation5 + $0x608] sm:$0xff]  ;;  %v2821_v16 = vpop.permute.xlu0 %2820  ;;  %v2920_v38 = vld [vmem:[#allocation5 + $0x280] sm:$0xff] }
0x18f7   :  { %v2816_v25 = vpop.permute.xlu1 %2815 }
0x18f8   :  { %v6833_v52 = vpack.c.bf16 %v2527_v18, %v2526_v50  ;;  %v7961_v18 = vpack.c.bf16 %v2634_v47, %v2633_v43  ;;  %v7965_v50 = vpack.c.bf16 %v2636_v19, %v2635_v49  ;;  %v4475_v49 = vsel %vm3189_vm12, 1.0, %v7419_v0 }
0x18fa   :  { %6834 = vmatprep.subr.bf16.mxu1 %v6833_v52 }
0x18fb   :  { %6836 = vmatpush3.bf16.msra.mxu1 %v6833_v52  ;;  %v2637_v52 = vld [vmem:[#allocation5 + $0x620] sm:$0xff] }
0x18fc   :  { %6838 = vmatprep.subr.bf16.mxu1 %v7919_v53  ;;  %v7969_v56 = vpack.c.bf16 %v2638_v55, %v2637_v52 }
0x18fe   :  { %5793 = vmatmul.mubr.msk.f32.vlgmr.msra.gmra.mrb[28].mxu1 %vm2073_vm10, %v2529_v46  ;;  %v2639_v46 = vld [vmem:[#allocation5 + $0x630] sm:$0xff] }
0x18ff   :  { %5795 = vmatprep.mubr.msk.f32.mxu1 %vm2073_vm10, %v2530_v61  ;;  %6840 = vmatpush3.bf16.msra.mxu1 %v7919_v53  ;;  %v2640_v61 = vld [vmem:[#allocation5 + $0x638] sm:$0xff] }
0x1900   :  { %6842 = vmatprep.subr.bf16.mxu1 %v7922_v24  ;;  %v7973_v62 = vpack.c.bf16 %v2640_v61, %v2639_v46 }
0x1902   :  { %5796 = vmatmul.mubr.msk.f32.gmra.mrb[30].mxu1 %vm2073_vm10, %v2531_v2  ;;  %v2642_v2 = vld [vmem:[#allocation5 + $0x648] sm:$0xff] }
0x1903   :  { %6844 = vmatpush3.bf16.msra.mxu1 %v7922_v24  ;;  %v7977_v7 = vpack.c.bf16 %v2642_v2, %v2641_v63 }
0x1904   :  { %6846 = vmatprep.subr.bf16.mxu1 %v7928_v4 }
0x1907   :  { %6848 = vmatpush3.bf16.msra.mxu1 %v7928_v4 }
0x1908   :  { %6850 = vmatprep.subr.bf16.mxu1 %v7933_v15 }
0x190b   :  { %6852 = vmatpush3.bf16.msra.mxu1 %v7933_v15 }
0x190c   :  { %6854 = vmatprep.subr.bf16.mxu1 %v7937_v8 }
0x190f   :  { %6856 = vmatpush3.bf16.msra.mxu1 %v7937_v8 }
0x1910   :  { %6858 = vmatprep.subr.bf16.mxu1 %v7941_v44 }
0x1913   :  { %6860 = vmatpush3.bf16.msra.mxu1 %v7941_v44 }
0x1914   :  { %6862 = vmatprep.subr.bf16.mxu1 %v7945_v58 }
0x1917   :  { %6864 = vmatpush3.bf16.msra.mxu1 %v7945_v58 }
0x1918   :  { %6866 = vmatprep.subr.bf16.mxu1 %v7950_v27 }
0x191b   :  { %6868 = vmatpush3.bf16.msra.mxu1 %v7950_v27 }
0x191c   :  { %6870 = vmatprep.subr.bf16.mxu1 %v7954_v36 }
0x19d1   :  { %v5794_v31 = vpop.f32.mrb[28].mxu1 }
0x19d2   :  { %v2610_v34 = vpop.f32.mrb[29].mxu1 }
0x19d5   :  { %v5797_v11 = vpop.f32.mrb[30].mxu1 }
0x19d6   :  { %v2620_v40 = vpop.f32.mrb[31].mxu1 }
0x19d7   :  { %5830 = vmatprep.mubr.f32.mxu1 %v2620_v40 }
0x19d8   :  { %5831 = vmatmul.mubr.f32.vlgmr.msra.gmra.mrb[32].mxu1 %v5797_v11  ;;  %v2921_v11 = vld [vmem:[#allocation5 + $0x288] sm:$0xff] }
0x19d9   :  { %6872 = vmatpush3.bf16.msra.mxu1 %v7954_v36  ;;  %5865 = vmatprep.mubr.f32.mxu1 %v2610_v34  ;;  %v2917_v34 = vld [vmem:[#allocation5 + $0x268] sm:$0xff] }
0x19da   :  { %6874 = vmatprep.subr.bf16.mxu1 %v7957_v41 }
0x19dd   :  { %6876 = vmatpush3.bf16.msra.mxu1 %v7957_v41 }
0x19de   :  { %6878 = vmatprep.subr.bf16.mxu1 %v7961_v18 }
0x19e1   :  { %6880 = vmatpush3.bf16.msra.mxu1 %v7961_v18 }
0x19e2   :  { %6882 = vmatprep.subr.bf16.mxu1 %v7965_v50 }
0x19e5   :  { %6884 = vmatpush3.bf16.msra.mxu1 %v7965_v50 }
0x19e6   :  { %6886 = vmatprep.subr.bf16.mxu1 %v7969_v56 }
0x19e9   :  { %6888 = vmatpush3.bf16.msra.mxu1 %v7969_v56 }
0x19ea   :  { %6890 = vmatprep.subr.bf16.mxu1 %v7973_v62 }
0x19ed   :  { %6892 = vmatpush3.bf16.msra.mxu1 %v7973_v62 }
0x19ee   :  { %6894 = vmatprep.subr.bf16.mxu1 %v7977_v7 }
0x19f1   :  { %6896 = vmatpush3.bf16.msra.mxu1 %v7977_v7 }
0x19f2   :  { %6898 = vmatprep.subr.bf16.mxu1 %v7981_v3 }
0x19f5   :  { %6900 = vmatpush3.bf16.msra.mxu1 %v7981_v3 }
0x19f8   :  { %5866 = vmatmul.mubr.f32.vlgmr.msra.gmra.mrb[32].mxu1 %v5794_v31  ;;  %v2919_v31 = vld [vmem:[#allocation5 + $0x278] sm:$0xff] }
0x1acb   :  { %v5867_v9 = vpop.f32.mrb[32].mxu1 }
0x1acc   :  { %v2824_v59 = vadd.f32 %v5867_v9, %v2821_v16  ;;  %v2802_v21 = vpop.f32.mrb[33].mxu1 }
0x1acd   :  { %v2823_v28 = vadd.f32 %v2816_v25, %v2802_v21 }
0x1acf   :  { %v6933_v30 = vpack.c.bf16 %v2824_v59, %v2823_v28 }
0x1ad1   :  { %6934 = vmatprep.subr.bf16.mxu0 %v6933_v30 }
0x1ad2   :  { %6936 = vmatpush3.bf16.msra.mxu0 %v6933_v30 }
0x1ad3   :  { %6938 = vmatprep.subr.bf16.mxu0 %v7830_v39 }
0x1ad6   :  { %6940 = vmatpush3.bf16.msra.mxu0 %v7830_v39 }
0x1ad7   :  { %6942 = vmatprep.subr.bf16.mxu0 %v7478_v6 }
0x1ad9   :  { %5912 = vmatmul.mubr.msk.f32.vlgmr.msra.gmra.mrb[30].mxu0 %vm2073_vm10, %v2917_v34 }
0x1ada   :  { %5914 = vmatprep.mubr.msk.f32.mxu0 %vm2073_vm10, %v2918_v35  ;;  %6944 = vmatpush3.bf16.msra.mxu0 %v7478_v6 }
0x1adb   :  { %6946 = vmatprep.subr.bf16.mxu0 %v7483_v10 }
0x1add   :  { %5915 = vmatmul.mubr.msk.f32.gmra.mrb[32].mxu0 %vm2073_vm10, %v2919_v31 }
0x1ade   :  { %5917 = vmatprep.mubr.msk.f32.mxu0 %vm2073_vm10, %v2920_v38  ;;  %6948 = vmatpush3.bf16.msra.mxu0 %v7483_v10  ;;  %v3213_v38 = vld [vmem:[#allocation5 + $0x298] sm:$0xff] }
0x1adf   :  { %6950 = vmatprep.subr.bf16.mxu0 %v7490_v14 }
0x1ae1   :  { %5918 = vmatmul.mubr.msk.f32.gmra.mrb[34].mxu0 %vm2073_vm10, %v2921_v11  ;;  %v3212_v11 = vld [vmem:[#allocation5 + $0x290] sm:$0xff] }
0x1ae2   :  { %6952 = vmatpush3.bf16.msra.mxu0 %v7490_v14 }
0x1ae3   :  { %6954 = vmatprep.subr.bf16.mxu0 %v7497_v17 }
0x1ae6   :  { %6956 = vmatpush3.bf16.msra.mxu0 %v7497_v17 }
0x1ae7   :  { %6958 = vmatprep.subr.bf16.mxu0 %v7501_v20 }
0x1aea   :  { %6960 = vmatpush3.bf16.msra.mxu0 %v7501_v20 }
0x1aeb   :  { %6962 = vmatprep.subr.bf16.mxu0 %v7505_v23 }
0x1aee   :  { %6964 = vmatpush3.bf16.msra.mxu0 %v7505_v23 }
0x1aef   :  { %6966 = vmatprep.subr.bf16.mxu0 %v7509_v26 }
0x1af2   :  { %6968 = vmatpush3.bf16.msra.mxu0 %v7509_v26 }
0x1af3   :  { %6970 = vmatprep.subr.bf16.mxu0 %v7513_v29 }
0x1af6   :  { %6972 = vmatpush3.bf16.msra.mxu0 %v7513_v29 }
0x1af7   :  { %6974 = vmatprep.subr.bf16.mxu0 %v7518_v32 }
0x1bb0   :  { %v5916_v39 = vpop.f32.mrb[32].mxu0 }
0x1bb1   :  { %v3016_v40 = vpop.f32.mrb[33].mxu0 }
0x1bb2   :  { %5952 = vmatprep.mubr.f32.mxu0 %v3016_v40 }
0x1bb3   :  { %5953 = vmatmul.mubr.f32.vlgmr.msra.gmra.mrb[30].mxu0 %v5916_v39 }
0x1bb4   :  { %6976 = vmatpush3.bf16.msra.mxu0 %v7518_v32  ;;  %v5919_v43 = vpop.f32.mrb[34].mxu0 }
0x1bb5   :  { %6978 = vmatprep.subr.bf16.mxu0 %v7521_v37  ;;  %v3026_v47 = vpop.f32.mrb[35].mxu0 }
0x1bb6   :  { %5987 = vmatprep.mubr.f32.mxu0 %v3026_v47 }
0x1bb8   :  { %6980 = vmatpush3.bf16.msra.mxu0 %v7521_v37 }
0x1bb9   :  { %6982 = vmatprep.subr.bf16.mxu0 %v7527_v42 }
0x1bbc   :  { %6984 = vmatpush3.bf16.msra.mxu0 %v7527_v42 }
0x1bbd   :  { %6986 = vmatprep.subr.bf16.mxu0 %v7531_v45 }
0x1bc0   :  { %6988 = vmatpush3.bf16.msra.mxu0 %v7531_v45 }
0x1bc1   :  { %6990 = vmatprep.subr.bf16.mxu0 %v7535_v48 }
0x1bc4   :  { %6992 = vmatpush3.bf16.msra.mxu0 %v7535_v48 }
0x1bc5   :  { %6994 = vmatprep.subr.bf16.mxu0 %v7539_v51 }
0x1bc8   :  { %6996 = vmatpush3.bf16.msra.mxu0 %v7539_v51 }
0x1bc9   :  { %6998 = vmatprep.subr.bf16.mxu0 %v7543_v54 }
0x1bcc   :  { %7000 = vmatpush3.bf16.msra.mxu0 %v7543_v54 }
0x1bcd   :  { %7002 = vmatprep.subr.bf16.mxu0 %v7547_v57 }
0x1bd0   :  { %7004 = vmatpush3.bf16.msra.mxu0 %v7547_v57 }
0x1bd3   :  { %5988 = vmatmul.mubr.f32.vlgmr.msra.gmra.mrb[30].mxu0 %v5919_v43 }
0x1ca6   :  { %v5989_v19 = vpop.f32.mrb[30].mxu0 }
0x1ca7   :  { %v3178_v52 = vpop.f32.mrb[31].mxu0  ;;  %v3193_v55 = vmul.f32 %v5989_v19, %v4475_v49 }
0x1ca8   :  { %v3192_v46 = vmul.f32 %v4475_v49, %v3178_v52 }
0x1ca9   :  { %3196 = vadd.xlane.f32.xlu0 %v3193_v55 }
0x1caa   :  { %3194 = vadd.xlane.f32.xlu1 %v3192_v46 }
0x1d36   :  { %v3197_v61 = vpop.xlane.xlu0 %3196 }
0x1d37   :  { %v3199_v63 = vmul.f32 0.03125, %v3197_v61  ;;  %v3195_v2 = vpop.xlane.xlu1 %3194 }
0x1d38   :  { %v3198_v13 = vmul.f32 0.03125, %v3195_v2 }
0x1d39   :  { %v3201_v22 = vsub.f32 %v5989_v19, %v3199_v63  ;;  %v3214_v19 = vld [vmem:[#allocation5 + $0x2a0] sm:$0xff] }
0x1d3a   :  { %v3200_v12 = vsub.f32 %v3178_v52, %v3198_v13  ;;  %v3248_v52 = vld [vmem:[#allocation5 + $0x2b0] sm:$0xff] }
0x1d3b   :  { %v3203_v16 = vmul.f32 %v3201_v22, %v3201_v22  ;;  %5994 = vmatprep.mubr.msk.f32.mxu1 %vm1116_vm7, %v3248_v52 }
0x1d3c   :  { %v3202_v9 = vmul.f32 %v3200_v12, %v3200_v12 }
0x1d3d   :  { %v3205_v25 = vmul.f32 %v4475_v49, %v3203_v16 }
0x1d3e   :  { %v3204_v59 = vmul.f32 %v4475_v49, %v3202_v9  ;;  %v3215_v49 = vld [vmem:[#allocation5 + $0x2a8] sm:$0xff] }
0x1d3f   :  { %3208 = vadd.xlane.f32.xlu1 %v3205_v25 }
0x1d40   :  { %3206 = vadd.xlane.f32.xlu0 %v3204_v59 }
0x1dcc   :  { %v3209_v21 = vpop.xlane.xlu1 %3208 }
0x1dcd   :  { %v3211_v28 = vmul.f32 0.03125, %v3209_v21  ;;  %v3207_v30 = vpop.xlane.xlu0 %3206 }
0x1dce   :  { %v3210_v34 = vmul.f32 0.03125, %v3207_v30  ;;  %v3250_v30 = vld [vmem:[#allocation5 + $0x2c0] sm:$0xff] }
0x1dcf   :  { %v3217_v35 = vadd.f32 1e-05, %v3211_v28  ;;  %v3249_v28 = vld [vmem:[#allocation5 + $0x2b8] sm:$0xff] }
0x1dd0   :  { %v3216_v31 = vadd.f32 1e-05, %v3210_v34  ;;  %v3251_v34 = vld [vmem:[#allocation5 + $0x2c8] sm:$0xff] }
0x1dd1   :  { %7333 = vrsqrt.f32 %v3217_v35 }
0x1dd2   :  { %7335 = vrsqrt.f32 %v3216_v31 }
0x1ddb   :  { %v7334_v39 = vpop.eup %7333 }
0x1ddc   :  { %v7336_v40 = vpop.eup %7335  ;;  %v3221_v43 = vmul.f32 %v7334_v39, %v3213_v38 }
0x1ddd   :  { %v3220_v47 = vmul.f32 %v7336_v40, %v3212_v11 }
0x1dde   :  { %3229 = vperm.xlu1 %7303, %v3221_v43  }
0x1ddf   :  { %3224 = vperm.xlu0 %7304, %v3220_v47  }
0x1de2   :  { %3236 = vperm.xlu1 %7303, %v3214_v19  }
0x1de3   :  { %3241 = vperm.xlu0 %7304, %v3215_v49  }
0x1e5d   :  { %v3230_v55 = vpop.permute.xlu1 %3229 }
0x1e5e   :  { %v3225_v46 = vpop.permute.xlu0 %3224  ;;  %v3233_v63 = vmul.f32 %v3230_v55, %v3201_v22  ;;  %v3252_v22 = vld [vmem:[#allocation5 + $0x2d0] sm:$0xff] }
0x1e5f   :  { %v3232_v61 = vmul.f32 %v3225_v46, %v3200_v12  ;;  %v3253_v12 = vld [vmem:[#allocation5 + $0x2d8] sm:$0xff] }
0x1e61   :  { %v3237_v2 = vpop.permute.xlu1 %3236 }
0x1e62   :  { %v3244_v13 = vadd.f32 %v3237_v2, %v3232_v61  ;;  %v3242_v16 = vpop.permute.xlu0 %3241 }
0x1e63   :  { %v3245_v9 = vadd.f32 %v3242_v16, %v3233_v63  ;;  %v3544_v16 = vld [vmem:[#allocation5 + $0x2e0] sm:$0xff] }
0x1e64   :  { %v3246_v25 = vmax.f32 %v3244_v13, 0.0  ;;  %v3545_v13 = vld [vmem:[#allocation5 + $0x2e8] sm:$0xff] }
0x1e65   :  { %v3247_v59 = vmax.f32 %v3245_v9, 0.0 }
0x1e67   :  { %v7005_v21 = vpack.c.bf16 %v3247_v59, %v3246_v25 }
0x1e69   :  { %7006 = vmatprep.subr.bf16.mxu1 %v7005_v21 }
0x1e6a   :  { %7008 = vmatpush3.bf16.msra.mxu1 %v7005_v21 }
0x1e6b   :  { %7010 = vmatprep.subr.bf16.mxu1 %v7478_v6 }
0x1e6d   :  { %5995 = vmatmul.mubr.msk.f32.vlgmr.msra.gmra.mrb[34].mxu1 %vm1116_vm7, %v3249_v28  ;;  %v3546_v28 = vld [vmem:[#allocation5 + $0x2f0] sm:$0xff] }
0x1e6e   :  { %5997 = vmatprep.mubr.msk.f32.mxu1 %vm1116_vm7, %v3250_v30  ;;  %7012 = vmatpush3.bf16.msra.mxu1 %v7478_v6  ;;  %v3547_v30 = vld [vmem:[#allocation5 + $0x2f8] sm:$0xff] }
0x1e6f   :  { %7014 = vmatprep.subr.bf16.mxu1 %v7483_v10 }
0x1e71   :  { %5998 = vmatmul.mubr.msk.f32.gmra.mrb[36].mxu1 %vm1116_vm7, %v3251_v34  ;;  %v3803_v34 = vld [vmem:[#allocation5 + $0x310] sm:$0xff] }
0x1e72   :  { %6000 = vmatprep.mubr.msk.f32.mxu1 %vm1116_vm7, %v3252_v22  ;;  %7016 = vmatpush3.bf16.msra.mxu1 %v7483_v10  ;;  %v3580_v22 = vld [vmem:[#allocation5 + $0x300] sm:$0xff] }
0x1e73   :  { %7018 = vmatprep.subr.bf16.mxu1 %v7490_v14  ;;  %6077 = vmatprep.mubr.msk.f32.mxu0 %vm1116_vm7, %v3580_v22 }
0x1e75   :  { %6001 = vmatmul.mubr.msk.f32.gmra.mrb[38].mxu1 %vm1116_vm7, %v3253_v12 }
0x1e76   :  { %7020 = vmatpush3.bf16.msra.mxu1 %v7490_v14 }
0x1e77   :  { %7022 = vmatprep.subr.bf16.mxu1 %v7497_v17 }
0x1e7a   :  { %7024 = vmatpush3.bf16.msra.mxu1 %v7497_v17 }
0x1e7b   :  { %7026 = vmatprep.subr.bf16.mxu1 %v7501_v20 }
0x1e7e   :  { %7028 = vmatpush3.bf16.msra.mxu1 %v7501_v20 }
0x1e7f   :  { %7030 = vmatprep.subr.bf16.mxu1 %v7505_v23 }
0x1e82   :  { %7032 = vmatpush3.bf16.msra.mxu1 %v7505_v23 }
0x1e83   :  { %7034 = vmatprep.subr.bf16.mxu1 %v7509_v26 }
0x1e86   :  { %7036 = vmatpush3.bf16.msra.mxu1 %v7509_v26 }
0x1e87   :  { %7038 = vmatprep.subr.bf16.mxu1 %v7513_v29 }
0x1e8a   :  { %7040 = vmatpush3.bf16.msra.mxu1 %v7513_v29 }
0x1e8b   :  { %7042 = vmatprep.subr.bf16.mxu1 %v7518_v32 }
0x1f44   :  { %v5999_v35 = vpop.f32.mrb[36].mxu1 }
0x1f45   :  { %v3348_v31 = vpop.f32.mrb[37].mxu1 }
0x1f46   :  { %6035 = vmatprep.mubr.f32.mxu1 %v3348_v31 }
0x1f47   :  { %6036 = vmatmul.mubr.f32.vlgmr.msra.gmra.mrb[34].mxu1 %v5999_v35 }
0x1f48   :  { %7044 = vmatpush3.bf16.msra.mxu1 %v7518_v32  ;;  %v6002_v38 = vpop.f32.mrb[38].mxu1 }
0x1f49   :  { %7046 = vmatprep.subr.bf16.mxu1 %v7521_v37  ;;  %v3358_v11 = vpop.f32.mrb[39].mxu1 }
0x1f4a   :  { %6070 = vmatprep.mubr.f32.mxu1 %v3358_v11 }
0x1f4c   :  { %7048 = vmatpush3.bf16.msra.mxu1 %v7521_v37 }
0x1f4d   :  { %7050 = vmatprep.subr.bf16.mxu1 %v7527_v42 }
0x1f50   :  { %7052 = vmatpush3.bf16.msra.mxu1 %v7527_v42 }
0x1f51   :  { %7054 = vmatprep.subr.bf16.mxu1 %v7531_v45 }
0x1f54   :  { %7056 = vmatpush3.bf16.msra.mxu1 %v7531_v45 }
0x1f55   :  { %7058 = vmatprep.subr.bf16.mxu1 %v7535_v48 }
0x1f58   :  { %7060 = vmatpush3.bf16.msra.mxu1 %v7535_v48 }
0x1f59   :  { %7062 = vmatprep.subr.bf16.mxu1 %v7539_v51 }
0x1f5c   :  { %7064 = vmatpush3.bf16.msra.mxu1 %v7539_v51 }
0x1f5d   :  { %7066 = vmatprep.subr.bf16.mxu1 %v7543_v54 }
0x1f60   :  { %7068 = vmatpush3.bf16.msra.mxu1 %v7543_v54 }
0x1f61   :  { %7070 = vmatprep.subr.bf16.mxu1 %v7547_v57 }
0x1f64   :  { %7072 = vmatpush3.bf16.msra.mxu1 %v7547_v57 }
0x1f65   :  { %7101 = vmatprep.subr.bf16.mxu1 %v7421_v5 }
0x1f67   :  { %6071 = vmatmul.mubr.f32.vlgmr.msra.gmra.mrb[34].mxu1 %v6002_v38 }
0x1f68   :  { %7103 = vmatpush3.bf16.msra.mxu1 %v7954_v36  ;;  %6147 = vmatprep.mubr.msk.f32.mxu1 %vm7420_vm0, %v7419_v0  ;;  %v4482_v36 = vsel %vm3521_vm13, 1.0, %v7419_v0 }
0x1f69   :  { %7104 = vmatprep.subr.bf16.mxu1 %v7421_v5 }
0x1f6c   :  { %7106 = vmatpush3.bf16.msra.mxu1 %v7957_v41 }
0x1f6d   :  { %7107 = vmatprep.subr.bf16.mxu1 %v7421_v5 }
0x1f70   :  { %7109 = vmatpush3.bf16.msra.mxu1 %v7961_v18 }
0x1f71   :  { %7110 = vmatprep.subr.bf16.mxu1 %v7421_v5 }
0x1f74   :  { %7112 = vmatpush3.bf16.msra.mxu1 %v7965_v50 }
0x1f75   :  { %7113 = vmatprep.subr.bf16.mxu1 %v7421_v5 }
0x1f78   :  { %7115 = vmatpush3.bf16.msra.mxu1 %v7969_v56 }
0x1f79   :  { %7116 = vmatprep.subr.bf16.mxu1 %v7421_v5 }
0x1f7c   :  { %7118 = vmatpush3.bf16.msra.mxu1 %v7973_v62 }
0x1f7d   :  { %7119 = vmatprep.subr.bf16.mxu1 %v7421_v5 }
0x1f80   :  { %7121 = vmatpush3.bf16.msra.mxu1 %v7977_v7 }
0x1f81   :  { %7122 = vmatprep.subr.bf16.mxu1 %v7421_v5 }
0x1f84   :  { %7124 = vmatpush3.bf16.msra.mxu1 %v7981_v3 }
0x1f85   :  { %7149 = vmatprep.subr.bf16.mxu1 %v7421_v5 }
0x203a   :  { %v6072_v41 = vpop.f32.mrb[34].mxu1 }
0x203b   :  { %v3510_v18 = vpop.f32.mrb[35].mxu1  ;;  %v3525_v50 = vmul.f32 %v6072_v41, %v4482_v36 }
0x203c   :  { %v3524_v56 = vmul.f32 %v4482_v36, %v3510_v18 }
0x203d   :  { %3528 = vadd.xlane.f32.xlu0 %v3525_v50 }
0x203e   :  { %3526 = vadd.xlane.f32.xlu1 %v3524_v56 }
0x20ca   :  { %v3529_v62 = vpop.xlane.xlu0 %3528 }
0x20cb   :  { %v3531_v39 = vmul.f32 0.035714287, %v3529_v62  ;;  %v3527_v40 = vpop.xlane.xlu1 %3526 }
0x20cc   :  { %v3530_v7 = vmul.f32 0.035714287, %v3527_v40  ;;  %v3813_v40 = vld [vmem:[#allocation5 + $0x4f8] sm:$0xff] }
0x20cd   :  { %v3533_v43 = vsub.f32 %v6072_v41, %v3531_v39  ;;  %v3581_v39 = vld [vmem:[#allocation5 + $0x308] sm:$0xff] }
0x20ce   :  { %v3532_v47 = vsub.f32 %v3510_v18, %v3530_v7 }
0x20cf   :  { %v3535_v19 = vmul.f32 %v3533_v43, %v3533_v43 }
0x20d0   :  { %v3534_v3 = vmul.f32 %v3532_v47, %v3532_v47 }
0x20d1   :  { %v3537_v49 = vmul.f32 %v4482_v36, %v3535_v19  ;;  %v3817_v19 = vld [vmem:[#allocation5 + $0x518] sm:$0xff] }
0x20d2   :  { %v3536_v52 = vmul.f32 %v4482_v36, %v3534_v3 }
0x20d3   :  { %3540 = vadd.xlane.f32.xlu1 %v3537_v49  ;;  %v3818_v49 = vld [vmem:[#allocation5 + $0x520] sm:$0xff] }
0x20d4   :  { %3538 = vadd.xlane.f32.xlu0 %v3536_v52  ;;  %v3819_v52 = vld [vmem:[#allocation5 + $0x528] sm:$0xff] }
0x2160   :  { %v3541_v60 = vpop.xlane.xlu1 %3540 }
0x2161   :  { %v3543_v55 = vmul.f32 0.035714287, %v3541_v60  ;;  %v3539_v46 = vpop.xlane.xlu0 %3538  ;;  %v7138_v60 = vpack.c.bf16 %v3819_v52, %v3818_v49 }
0x2162   :  { %v3542_v61 = vmul.f32 0.035714287, %v3539_v46  ;;  %v3821_v46 = vld [vmem:[#allocation5 + $0x538] sm:$0xff] }
0x2163   :  { %v3549_v63 = vadd.f32 1e-05, %v3543_v55  ;;  %v3820_v55 = vld [vmem:[#allocation5 + $0x530] sm:$0xff] }
0x2164   :  { %v3548_v2 = vadd.f32 1e-05, %v3542_v61  ;;  %v7141_v61 = vpack.c.bf16 %v3821_v46, %v3820_v55 }
0x2165   :  { %7337 = vrsqrt.f32 %v3549_v63  ;;  %v3822_v63 = vld [vmem:[#allocation5 + $0x540] sm:$0xff] }
0x2166   :  { %7339 = vrsqrt.f32 %v3548_v2  ;;  %v3823_v2 = vld [vmem:[#allocation5 + $0x548] sm:$0xff] }
0x216f   :  { %v7338_v9 = vpop.eup %7337 }
0x2170   :  { %v7340_v25 = vpop.eup %7339  ;;  %v3553_v59 = vmul.f32 %v7338_v9, %v3545_v13  ;;  %v7144_v13 = vpack.c.bf16 %v3823_v2, %v3822_v63  ;;  %v3825_v9 = vld [vmem:[#allocation5 + $0x558] sm:$0xff]  ;;  %v4160_v63 = vld [vmem:[#allocation5 + $0x350] sm:$0xff] }
0x2171   :  { %v3552_v21 = vmul.f32 %v7340_v25, %v3544_v16  ;;  %v3824_v16 = vld [vmem:[#allocation5 + $0x550] sm:$0xff] }
0x2172   :  { %3561 = vperm.xlu1 %7303, %v3553_v59   ;;  %v7147_v25 = vpack.c.bf16 %v3825_v9, %v3824_v16 }
0x2173   :  { %3556 = vperm.xlu0 %7304, %v3552_v21  }
0x2176   :  { %3568 = vperm.xlu1 %7303, %v3546_v28  }
0x2177   :  { %3573 = vperm.xlu0 %7304, %v3547_v30  }
0x217a   :  { %3806 = vperm.xlu1 %7303, %v3803_v34  }
0x21f1   :  { %v3562_v12 = vpop.permute.xlu1 %3561 }
0x21f2   :  { %v3557_v35 = vpop.permute.xlu0 %3556  ;;  %v3565_v38 = vmul.f32 %v3562_v12, %v3533_v43  ;;  %v3815_v43 = vld [vmem:[#allocation5 + $0x508] sm:$0xff] }
0x21f3   :  { %v3564_v31 = vmul.f32 %v3557_v35, %v3532_v47  ;;  %v3816_v47 = vld [vmem:[#allocation5 + $0x510] sm:$0xff] }
0x21f4   :  { %v7135_v3 = vpack.c.bf16 %v3817_v19, %v3816_v47 }
0x21f5   :  { %v3569_v11 = vpop.permute.xlu1 %3568 }
0x21f6   :  { %v3576_v36 = vadd.f32 %v3569_v11, %v3564_v31  ;;  %v3574_v41 = vpop.permute.xlu0 %3573  ;;  %v3896_v11 = vld [vmem:[#allocation5 + $0x318] sm:$0xff] }
0x21f7   :  { %v3577_v18 = vadd.f32 %v3574_v41, %v3565_v38 }
0x21f8   :  { %v3578_v50 = vmax.f32 %v3576_v36, 0.0  ;;  %v3898_v36 = vld [vmem:[#allocation5 + $0x328] sm:$0xff] }
0x21f9   :  { %v3579_v56 = vmax.f32 %v3577_v18, 0.0  ;;  %v3807_v22 = vpop.permute.xlu1 %3806 }
0x21fb   :  { %v7073_v62 = vpack.c.bf16 %v3579_v56, %v3578_v50 }
0x21fd   :  { %7074 = vmatprep.subr.bf16.mxu0 %v7073_v62 }
0x21fe   :  { %7076 = vmatpush3.bf16.msra.mxu0 %v7073_v62 }
0x21ff   :  { %7077 = vmatprep.subr.bf16.mxu0 %v7421_v5 }
0x2201   :  { %6078 = vmatmul.mubr.msk.f32.vlgmr.msra.gmra.mrb[36].mxu0 %vm1116_vm7, %v3581_v39 }
0x2202   :  { %7079 = vmatpush3.bf16.msra.mxu0 %v7919_v53  ;;  %6112 = vmatprep.mubr.msk.f32.mxu0 %vm7420_vm0, %v7419_v0  ;;  %v3810_v53 = vld [vmem:[#allocation5 + $0x4e0] sm:$0xff] }
0x2203   :  { %7080 = vmatprep.subr.bf16.mxu0 %v7421_v5 }
0x2206   :  { %7082 = vmatpush3.bf16.msra.mxu0 %v7922_v24  ;;  %v3811_v24 = vld [vmem:[#allocation5 + $0x4e8] sm:$0xff] }
0x2207   :  { %7083 = vmatprep.subr.bf16.mxu0 %v7421_v5 }
0x220a   :  { %7085 = vmatpush3.bf16.msra.mxu0 %v7928_v4  ;;  %v7126_v4 = vpack.c.bf16 %v3811_v24, %v3810_v53 }
0x220b   :  { %7086 = vmatprep.subr.bf16.mxu0 %v7421_v5 }
0x220e   :  { %7088 = vmatpush3.bf16.msra.mxu0 %v7933_v15  ;;  %v3812_v15 = vld [vmem:[#allocation5 + $0x4f0] sm:$0xff] }
0x220f   :  { %7089 = vmatprep.subr.bf16.mxu0 %v7421_v5 }
0x2212   :  { %7091 = vmatpush3.bf16.msra.mxu0 %v7937_v8 }
0x2213   :  { %7092 = vmatprep.subr.bf16.mxu0 %v7421_v5 }
0x2216   :  { %7094 = vmatpush3.bf16.msra.mxu0 %v7941_v44  ;;  %v7129_v44 = vpack.c.bf16 %v3813_v40, %v3812_v15 }
0x2217   :  { %7095 = vmatprep.subr.bf16.mxu0 %v7421_v5 }
0x221a   :  { %7097 = vmatpush3.bf16.msra.mxu0 %v7945_v58  ;;  %v3814_v58 = vld [vmem:[#allocation5 + $0x500] sm:$0xff] }
0x221b   :  { %7098 = vmatprep.subr.bf16.mxu0 %v7421_v5 }
0x221e   :  { %7100 = vmatpush3.bf16.msra.mxu0 %v7950_v27  ;;  %v7132_v27 = vpack.c.bf16 %v3815_v43, %v3814_v58 }
0x221f   :  { %7125 = vmatprep.subr.bf16.mxu0 %v7421_v5 }
0x22d4   :  { %v6079_v8 = vpop.f32.mrb[36].mxu0 }
0x22d5   :  { %v3654_v7 = vpop.f32.mrb[37].mxu0  ;;  %6113 = vmatmul.mubr.f32.vlgmr.msra.gmra.mrb[38].mxu0 %v6079_v8 }
0x22d6   :  { %7127 = vmatpush3.bf16.msra.mxu0 %v7126_v4  ;;  %6148 = vmatmul.mubr.f32.vlgmr.msra.gmra.mrb[40].mxu1 %v3654_v7  ;;  %v4141_v7 = vld [vmem:[#allocation5 + $0x338] sm:$0xff] }
0x22d7   :  { %7128 = vmatprep.subr.bf16.mxu0 %v7421_v5  ;;  %6182 = vmatprep.mubr.msk.f32.mxu0 %vm7420_vm0, %v7419_v0 }
0x22d8   :  { %6189 = vmatprep.mubr.msk.f32.mxu1 %vm7420_vm0, %v7419_v0 }
0x22da   :  { %7130 = vmatpush3.bf16.msra.mxu0 %v7129_v44 }
0x22db   :  { %7131 = vmatprep.subr.bf16.mxu0 %v7421_v5 }
0x22de   :  { %7133 = vmatpush3.bf16.msra.mxu0 %v7132_v27  ;;  %v4140_v27 = vld [vmem:[#allocation5 + $0x330] sm:$0xff] }
0x22df   :  { %7134 = vmatprep.subr.bf16.mxu0 %v7421_v5 }
0x22e2   :  { %7136 = vmatpush3.bf16.msra.mxu0 %v7135_v3  ;;  %v4392_v3 = vld [vmem:[#allocation5 + $0x358] sm:$0xff] }
0x22e3   :  { %7137 = vmatprep.subr.bf16.mxu0 %v7421_v5 }
0x22e6   :  { %7139 = vmatpush3.bf16.msra.mxu0 %v7138_v60 }
0x22e7   :  { %7140 = vmatprep.subr.bf16.mxu0 %v7421_v5 }
0x22ea   :  { %7142 = vmatpush3.bf16.msra.mxu0 %v7141_v61  ;;  %v4158_v61 = vld [vmem:[#allocation5 + $0x340] sm:$0xff] }
0x22eb   :  { %7143 = vmatprep.subr.bf16.mxu0 %v7421_v5 }
0x22ee   :  { %7145 = vmatpush3.bf16.msra.mxu0 %v7144_v13 }
0x22ef   :  { %7146 = vmatprep.subr.bf16.mxu0 %v7421_v5 }
0x22f2   :  { %7148 = vmatpush3.bf16.msra.mxu0 %v7147_v25 }
0x22f3   :  { %6268 = vmatprep.subr.mxu0 %v7419_v0 }
0x22f5   :  { %6183 = vmatmul.mubr.f32.vlgmr.msra.gmra.mrb[40].mxu0 %v7649_v33  ;;  %v3897_v33 = vld [vmem:[#allocation5 + $0x320] sm:$0xff] }
0x22f6   :  { %6270 = vmatprep.mubr.msk.f32.mxu0 %vm7420_vm0, %v7419_v0 }
0x23a8   :  { %v3729_v59 = vpop.f32.mrb[38].mxu0 }
0x23a9   :  { %v6114_v21 = vpop.f32.mrb[39].mxu0  ;;  %v3799_v28 = vpop.f32.mrb[40].mxu1 }
0x23aa   :  { %v3800_v30 = vadd.f32 %v3799_v28, %v3729_v59  ;;  %v6149_v34 = vpop.f32.mrb[41].mxu1 }
0x23ac   :  { %v3809_v12 = vadd.f32 %v3807_v22, %v3800_v30 }
0x23c8   :  { %v3892_v35 = vpop.f32.mrb[40].mxu0 }
0x23c9   :  { %v7150_v31 = vpack.c.bf16 %v3892_v35, %v3809_v12  ;;  %v6184_v38 = vpop.f32.mrb[41].mxu0 }
0x23cb   :  { %7151 = vmatpush3.bf16.msra.mxu1 %v7150_v31 }
0x23cc   :  { %7152 = vmatprep.subr.bf16.mxu1 %v7421_v5 }
0x23ce   :  { %6190 = vmatmul.mubr.msk.f32.vlgmr.msra.gmra.mrb[42].mxu1 %vm1116_vm7, %v3896_v11 }
0x23cf   :  { %6192 = vmatprep.mubr.msk.f32.mxu1 %vm7420_vm0, %v7419_v0  ;;  %7154 = vmatpush3.bf16.msra.mxu1 %v7478_v6 }
0x23d0   :  { %7155 = vmatprep.subr.bf16.mxu1 %v7421_v5 }
0x23d2   :  { %6193 = vmatmul.mubr.msk.f32.gmra.mrb[44].mxu1 %vm1116_vm7, %v3897_v33 }
0x23d3   :  { %6195 = vmatprep.mubr.msk.f32.mxu1 %vm7420_vm0, %v7419_v0  ;;  %7157 = vmatpush3.bf16.msra.mxu1 %v7483_v10 }
0x23d4   :  { %7158 = vmatprep.subr.bf16.mxu1 %v7421_v5 }
0x23d6   :  { %6196 = vmatmul.mubr.msk.f32.gmra.mrb[46].mxu1 %vm1116_vm7, %v3898_v36 }
0x23d7   :  { %7160 = vmatpush3.bf16.msra.mxu1 %v7490_v14  ;;  %6230 = vmatprep.mubr.msk.f32.mxu1 %vm7420_vm0, %v7419_v0 }
0x23d8   :  { %7161 = vmatprep.subr.bf16.mxu1 %v7421_v5 }
0x23db   :  { %7163 = vmatpush3.bf16.msra.mxu1 %v7497_v17 }
0x23dc   :  { %7164 = vmatprep.subr.bf16.mxu1 %v7421_v5 }
0x23df   :  { %7166 = vmatpush3.bf16.msra.mxu1 %v7501_v20 }
0x23e0   :  { %7167 = vmatprep.subr.bf16.mxu1 %v7421_v5 }
0x23e3   :  { %7169 = vmatpush3.bf16.msra.mxu1 %v7505_v23 }
0x23e4   :  { %7170 = vmatprep.subr.bf16.mxu1 %v7421_v5 }
0x23e7   :  { %7172 = vmatpush3.bf16.msra.mxu1 %v7509_v26 }
0x23e8   :  { %7173 = vmatprep.subr.bf16.mxu1 %v7421_v5 }
0x23eb   :  { %7175 = vmatpush3.bf16.msra.mxu1 %v7513_v29 }
0x23ec   :  { %7176 = vmatprep.subr.bf16.mxu1 %v7421_v5 }
0x24a5   :  { %v3979_v41 = vpop.f32.mrb[44].mxu1 }
0x24a6   :  { %v6194_v18 = vpop.f32.mrb[45].mxu1  ;;  %6231 = vmatmul.mubr.f32.vlgmr.msra.gmra.mrb[42].mxu1 %v3979_v41 }
0x24a7   :  { %7178 = vmatpush3.bf16.msra.mxu1 %v7518_v32  ;;  %6265 = vmatprep.mubr.msk.f32.mxu1 %vm7420_vm0, %v7419_v0 }
0x24a8   :  { %7179 = vmatprep.subr.bf16.mxu1 %v7421_v5 }
0x24a9   :  { %v3984_v50 = vpop.f32.mrb[46].mxu1 }
0x24aa   :  { %v6197_v56 = vpop.f32.mrb[47].mxu1 }
0x24ab   :  { %7181 = vmatpush3.bf16.msra.mxu1 %v7521_v37 }
0x24ac   :  { %7182 = vmatprep.subr.bf16.mxu1 %v7421_v5 }
0x24af   :  { %7184 = vmatpush3.bf16.msra.mxu1 %v7527_v42 }
0x24b0   :  { %7185 = vmatprep.subr.bf16.mxu1 %v7421_v5 }
0x24b3   :  { %7187 = vmatpush3.bf16.msra.mxu1 %v7531_v45 }
0x24b4   :  { %7188 = vmatprep.subr.bf16.mxu1 %v7421_v5 }
0x24b7   :  { %7190 = vmatpush3.bf16.msra.mxu1 %v7535_v48 }
0x24b8   :  { %7191 = vmatprep.subr.bf16.mxu1 %v7421_v5 }
0x24bb   :  { %7193 = vmatpush3.bf16.msra.mxu1 %v7539_v51 }
0x24bc   :  { %7194 = vmatprep.subr.bf16.mxu1 %v7421_v5 }
0x24bf   :  { %7196 = vmatpush3.bf16.msra.mxu1 %v7543_v54 }
0x24c0   :  { %7197 = vmatprep.subr.bf16.mxu1 %v7421_v5 }
0x24c3   :  { %7199 = vmatpush3.bf16.msra.mxu1 %v7547_v57 }
0x24c6   :  { %6266 = vmatmul.mubr.f32.vlgmr.msra.gmra.mrb[42].mxu1 %v3984_v50 }
0x2599   :  { %v4125_v62 = vpop.f32.mrb[42].mxu1 }
0x259a   :  { %v6267_v39 = vpop.f32.mrb[43].mxu1  ;;  %v4130_v53 = vmul.f32 %v7768_v1, %v4125_v62 }
0x259c   :  { %4131 = vadd.xlane.f32.xlu0 %v4130_v53 }
0x2629   :  { %v4132_v24 = vpop.xlane.xlu0 %4131 }
0x262a   :  { %v4133_v4 = vmul.f32 0.01923077, %v4132_v24 }
0x262c   :  { %v4134_v15 = vsub.f32 %v4125_v62, %v4133_v4 }
0x262e   :  { %v4135_v40 = vmul.f32 %v4134_v15, %v4134_v15 }
0x2630   :  { %v4136_v8 = vmul.f32 %v7768_v1, %v4135_v40  ;;  %v4159_v1 = vld [vmem:[#allocation5 + $0x348] sm:$0xff] }
0x2632   :  { %4137 = vadd.xlane.f32.xlu1 %v4136_v8 }
0x2643   :  { %4153 = vperm.xlu1 %7303, %v4141_v7  }
0x26bf   :  { %v4138_v44 = vpop.xlane.xlu1 %4137 }
0x26c0   :  { %v4139_v58 = vmul.f32 0.01923077, %v4138_v44 }
0x26c2   :  { %v4142_v43 = vadd.f32 1e-05, %v4139_v58 }
0x26c3   :  { %v4154_v60 = vpop.permute.xlu1 %4153 }
0x26c4   :  { %7341 = vrsqrt.f32 %v4142_v43 }
0x26ce   :  { %v7342_v47 = vpop.eup %7341 }
0x26cf   :  { %v4144_v19 = vmul.f32 %v7342_v47, %v4140_v27 }
0x26d1   :  { %4147 = vperm.xlu0 %7304, %v4144_v19  }
0x26d5   :  { %4395 = vperm.xlu0 %7304, %v4392_v3  }
0x2750   :  { %v4148_v49 = vpop.permute.xlu0 %4147 }
0x2751   :  { %v4150_v52 = vmul.f32 %v4148_v49, %v4134_v15 }
0x2753   :  { %v4156_v55 = vadd.f32 %v4154_v60, %v4150_v52 }
0x2755   :  { %v4157_v46 = vmax.f32 %v4156_v55, 0.0 }
0x2757   :  { %6269 = vmatpush3.msra.mxu0 %v4157_v46 }
0x2758   :  { %6271 = vmatmul.mubr.msk.f32.vlgmr.msra.gmra.mrb[42].mxu0 %vm358_vm4, %v4158_v61  ;;  %7200 = vmatprep.subr.bf16.mxu0 %v7421_v5 }
0x2759   :  { %6273 = vmatprep.mubr.msk.f32.mxu0 %vm7420_vm0, %v7419_v0  ;;  %7202 = vmatpush3.bf16.msra.mxu0 %v7478_v6 }
0x275a   :  { %7203 = vmatprep.subr.bf16.mxu0 %v7421_v5 }
0x275c   :  { %6274 = vmatmul.mubr.msk.f32.gmra.mrb[44].mxu0 %vm358_vm4, %v4159_v1 }
0x275d   :  { %6276 = vmatprep.mubr.msk.f32.mxu0 %vm7420_vm0, %v7419_v0  ;;  %7205 = vmatpush3.bf16.msra.mxu0 %v7483_v10 }
0x275e   :  { %7206 = vmatprep.subr.bf16.mxu0 %v7421_v5 }
0x2760   :  { %6277 = vmatmul.mubr.msk.f32.gmra.mrb[46].mxu0 %vm358_vm4, %v4160_v63 }
0x2761   :  { %7208 = vmatpush3.bf16.msra.mxu0 %v7490_v14  ;;  %6311 = vmatprep.mubr.msk.f32.mxu0 %vm7420_vm0, %v7419_v0 }
0x2762   :  { %7209 = vmatprep.subr.bf16.mxu0 %v7421_v5 }
0x2765   :  { %7211 = vmatpush3.bf16.msra.mxu0 %v7497_v17 }
0x2766   :  { %7212 = vmatprep.subr.bf16.mxu0 %v7421_v5 }
0x2769   :  { %7214 = vmatpush3.bf16.msra.mxu0 %v7501_v20 }
0x276a   :  { %7215 = vmatprep.subr.bf16.mxu0 %v7421_v5 }
0x276d   :  { %7217 = vmatpush3.bf16.msra.mxu0 %v7505_v23 }
0x276e   :  { %7218 = vmatprep.subr.bf16.mxu0 %v7421_v5 }
0x2771   :  { %7220 = vmatpush3.bf16.msra.mxu0 %v7509_v26 }
0x2772   :  { %7221 = vmatprep.subr.bf16.mxu0 %v7421_v5 }
0x2775   :  { %7223 = vmatpush3.bf16.msra.mxu0 %v7513_v29 }
0x2776   :  { %7224 = vmatprep.subr.bf16.mxu0 %v7421_v5 }
0x282b   :  { %v4236_v6 = vpop.f32.mrb[42].mxu0 }
0x282c   :  { %v6272_v10 = vpop.f32.mrb[43].mxu0 }
0x282f   :  { %v4241_v14 = vpop.f32.mrb[44].mxu0 }
0x2830   :  { %6312 = vmatmul.mubr.f32.vlgmr.msra.gmra.mrb[48].mxu0 %v4241_v14  ;;  %v6275_v17 = vpop.f32.mrb[45].mxu0 }
0x2831   :  { %7226 = vmatpush3.bf16.msra.mxu0 %v7518_v32  ;;  %6346 = vmatprep.mubr.msk.f32.mxu0 %vm7420_vm0, %v7419_v0 }
0x2832   :  { %7227 = vmatprep.subr.bf16.mxu0 %v7421_v5 }
0x2833   :  { %v4246_v20 = vpop.f32.mrb[46].mxu0 }
0x2834   :  { %v6278_v23 = vpop.f32.mrb[47].mxu0 }
0x2835   :  { %7229 = vmatpush3.bf16.msra.mxu0 %v7521_v37 }
0x2836   :  { %7230 = vmatprep.subr.bf16.mxu0 %v7421_v5 }
0x2839   :  { %7232 = vmatpush3.bf16.msra.mxu0 %v7527_v42 }
0x283a   :  { %7233 = vmatprep.subr.bf16.mxu0 %v7421_v5 }
0x283d   :  { %7235 = vmatpush3.bf16.msra.mxu0 %v7531_v45  ;;  %v4396_v45 = vpop.permute.xlu0 %4395 }
0x283e   :  { %7236 = vmatprep.subr.bf16.mxu0 %v7421_v5 }
0x2841   :  { %7238 = vmatpush3.bf16.msra.mxu0 %v7535_v48 }
0x2842   :  { %7239 = vmatprep.subr.bf16.mxu0 %v7421_v5 }
0x2845   :  { %7241 = vmatpush3.bf16.msra.mxu0 %v7539_v51 }
0x2846   :  { %7242 = vmatprep.subr.bf16.mxu0 %v7421_v5 }
0x2849   :  { %7244 = vmatpush3.bf16.msra.mxu0 %v7543_v54 }
0x284a   :  { %7245 = vmatprep.subr.bf16.mxu0 %v7421_v5 }
0x284d   :  { %7247 = vmatpush3.bf16.msra.mxu0 %v7547_v57 }
0x2850   :  { %6347 = vmatmul.mubr.f32.vlgmr.msra.gmra.mrb[50].mxu0 %v4246_v20 }
0x2903   :  { %v4316_v0 = vpop.f32.mrb[48].mxu0 }
0x2904   :  { %v4320_v26 = vadd.f32 %v4316_v0, %v4236_v6  ;;  %v6313_v29 = vpop.f32.mrb[49].mxu0 }
0x2923   :  { %v4387_v32 = vpop.f32.mrb[50].mxu0 }
0x2924   :  { %v4391_v37 = vadd.f32 %v4387_v32, %v4320_v26  ;;  %v6348_v42 = vpop.f32.mrb[51].mxu0 }
0x2926   :  { %v4398_v48 = vadd.f32 %v4396_v45, %v4391_v37 }
0x2928   :  { %4399 = vst [vmem:[#allocation7] sm:$0xff] %v4398_v48 }
0x2929   :  { %7398 = shalt.err (!%p7395_p6)
}
0x292a   :  { %s7399_s10 = scalar_lea.hbm %s8225_s2, 128 }
0x292b   :  { %p7400_p7 = scmp.ne.s32.totalorder %s8225_s2, %s7399_s10  ;;  %p7403_p8 = scmp.lt.u32.totalorder %s7399_s10, %s8225_s2 }
0x292d   :  { %p7405_p9 = pnand %p7403_p8, %p7400_p7 }
0x292f   :  { %7408 = shalt.err (!%p7405_p9)
}
0x2930   :  { %4409 = dma.vmem_to_hbm [thread:$0]  %s4407_s6, 128, %s8225_s2, [#allocation4]  }
0x2931   :  { %7413 = dma.done.wait [#allocation4], 128  }
0x2932   :  { %7414 = vsyncadd [#allocation4], 4294967168 }
0x2933   :  { %4413 = vsyncpa [#allocation3], 1 }
0x2934   :  { %4414 = vsyncpa [#allocation6], 1 }
0x2935   :  { %4415 = vsyncpa [#allocation4], 1 }

</bundles_post_ra>
